<compile_context>
chip_gen: v7x
topology: tpu7x:2x2x1
jax: 0.10.0
libtpu: 0.0.40
codegen_flags: <defaults>
</compile_context>

<pallas_src>
import jax
import jax.numpy as jnp
from jax.experimental import pallas as pl
from jax.experimental.pallas import tpu as pltpu


# ----------------------------- Pallas kernel -------------------------------
def decoder_lstm_kernel(ids_ref, h0_ref, c0_ref,
                        w_xg0_ref, w_hh0_ref, b0_ref,
                        w_ih_ref, w_hh_ref, b_ref,
                        w_fc_ref, b_fc_ref,
                        pred_ref, h_out_ref, c_out_ref):
    SB = ids_ref.shape[0]
    L, B, H = h0_ref.shape
    V = w_xg0_ref.shape[0]
    Hp = w_hh0_ref.shape[0]          # lane-padded hidden width (multiple of 128)
    S = SB // B

    # ---- fused embedding gather + batched layer-0 input projection:
    # one-hot(ids) @ (embedding @ W_ih0^T): a single MXU pass over all
    # timesteps (no recurrent dependence in x_t @ W_ih0).
    ids = ids_ref[...]                                            # (S*B, 1) i32
    onehot = (ids == jax.lax.broadcasted_iota(jnp.int32, (SB, V), 1)
              ).astype(jnp.float32)                               # (S*B, V)
    gates0 = (jnp.dot(onehot, w_xg0_ref[...],
                      preferred_element_type=jnp.float32)
              + b0_ref[...])                                      # (S*B, 4Hp)

    # ---- hoist all weight / bias reads out of the unrolled loops.
    w_hh0 = w_hh0_ref[...]                                        # (Hp, 4Hp)
    w_ih_l = [w_ih_ref[l] for l in range(L - 1)]                  # (Hp, 4Hp)
    w_hh_l = [w_hh_ref[l] for l in range(L - 1)]                  # (Hp, 4Hp)
    b_l = [b_ref[l] for l in range(L - 1)]                        # (1, 4Hp)

    # ---- lane-pad the recurrent state to Hp (padding lanes provably stay 0
    # through the whole recurrence; done once, off the per-step path).
    if Hp > H:
        zpad = jnp.zeros((B, Hp - H), jnp.float32)
        h = [jnp.concatenate([h0_ref[l], zpad], axis=-1) for l in range(L)]
        c = [jnp.concatenate([c0_ref[l], zpad], axis=-1) for l in range(L)]
    else:
        h = [h0_ref[l] for l in range(L)]
        c = [c0_ref[l] for l in range(L)]

    def lstm_cell(gates, c_prev):
        # One EUP sigmoid over the full (B, 4Hp) tile; lane-aligned slices for
        # i/f/o; tanh only on the g slice (2 EUP pushes per cell).
        sg = jax.nn.sigmoid(gates)
        i_g = sg[:, 0 * Hp:1 * Hp]
        f_g = sg[:, 1 * Hp:2 * Hp]
        o_g = sg[:, 3 * Hp:4 * Hp]
        g_g = jnp.tanh(gates[:, 2 * Hp:3 * Hp])
        c_new = f_g * c_prev + i_g * g_g
        h_new = o_g * jnp.tanh(c_new)
        return h_new, c_new

    top = []   # top-layer h per step, kept in vregs (no scratch round trip)
    for t in range(S):
        # ---- layer 0: recurrent matmul only (input part precomputed above).
        gates = (gates0[t * B:(t + 1) * B, :]
                 + jnp.dot(h[0], w_hh0, preferred_element_type=jnp.float32))
        h[0], c[0] = lstm_cell(gates, c[0])
        x = h[0]

        # ---- layers >= 1: split matmuls (recurrent half issues as soon as
        # h[l] from step t-1 exists; no lane concat on the critical path).
        for l in range(1, L):
            gates = (jnp.dot(x, w_ih_l[l - 1],
                             preferred_element_type=jnp.float32)
                     + jnp.dot(h[l], w_hh_l[l - 1],
                               preferred_element_type=jnp.float32)
                     + b_l[l - 1])
            h[l], c[l] = lstm_cell(gates, c[l])
            x = h[l]

        top.append(x)

    # ---- batched fc_out: one (S*B, Hp) @ (Hp, O) matmul + single store.
    top_h = jnp.concatenate(top, axis=0)                          # (S*B, Hp)
    pred_ref[...] = (jnp.dot(top_h, w_fc_ref[...],
                             preferred_element_type=jnp.float32)
                     + b_fc_ref[...]).astype(pred_ref.dtype)

    for l in range(L):
        h_out_ref[l] = h[l][:, :H]
        c_out_ref[l] = c[l][:, :H]


# --------------------------- one-time weight prep ----------------------------
def _pad_gate_rows(w, H, Hp):
    """(4H, K) PyTorch gate-stacked weight -> (4Hp, K), each gate zero-padded."""
    if Hp == H:
        return w
    K = w.shape[1]
    return jnp.pad(w.reshape(4, H, K), ((0, 0), (0, Hp - H), (0, 0))
                   ).reshape(4 * Hp, K)


def _pad_cols(w, H, Hp):
    """Pad the input (column) dim from H to Hp with zeros."""
    if Hp == H:
        return w
    return jnp.pad(w, ((0, 0), (0, Hp - H)))


def _pad_gate_bias(b, H, Hp):
    if Hp == H:
        return b.reshape(1, 4 * H)
    return jnp.pad(b.reshape(4, H), ((0, 0), (0, Hp - H))).reshape(1, 4 * Hp)


def prepare_params(params):
    """One-time weight preparation (call once, reuse across forward calls):
    transposes, gate-block lane padding to Hp = roundup(H, 128), bias
    pre-sums, and fusion of the embedding table with layer-0's W_ih."""
    L = len(params["w_ih"])
    H = params["w_hh"][0].shape[1]
    Hp = -(-H // 128) * 128
    O = params["w_fc"].shape[0]

    # layer 0: fuse embedding table with the (gate-padded) input projection
    w_ih0_p = _pad_gate_rows(params["w_ih"][0], H, Hp)            # (4Hp, E)
    w_xg0 = jnp.dot(params["embedding"], w_ih0_p.T,
                    preferred_element_type=jnp.float32)           # (V, 4Hp)
    w_hh0 = _pad_cols(_pad_gate_rows(params["w_hh"][0], H, Hp), H, Hp).T
    b0 = _pad_gate_bias(params["b_ih"][0] + params["b_hh"][0], H, Hp)

    if L > 1:
        w_ih_r = jnp.stack(
            [_pad_cols(_pad_gate_rows(params["w_ih"][l], H, Hp), H, Hp).T
             for l in range(1, L)])                               # (L-1, Hp, 4Hp)
        w_hh_r = jnp.stack(
            [_pad_cols(_pad_gate_rows(params["w_hh"][l], H, Hp), H, Hp).T
             for l in range(1, L)])                               # (L-1, Hp, 4Hp)
        b_r = jnp.stack(
            [_pad_gate_bias(params["b_ih"][l] + params["b_hh"][l], H, Hp)
             for l in range(1, L)])                               # (L-1, 1, 4Hp)
    else:
        # tiny dummies: never indexed inside the kernel when L == 1
        w_ih_r = jnp.zeros((1, 8, 128), jnp.float32)
        w_hh_r = jnp.zeros((1, 8, 128), jnp.float32)
        b_r = jnp.zeros((1, 1, 128), jnp.float32)

    w_fc_t = _pad_cols(params["w_fc"], H, Hp).T                   # (Hp, O)
    b_fc = params["b_fc"].reshape(1, O)

    return {
        "w_xg0": jnp.asarray(w_xg0, jnp.float32),
        "w_hh0": jnp.asarray(w_hh0, jnp.float32),
        "b0": jnp.asarray(b0, jnp.float32),
        "w_ih_r": jnp.asarray(w_ih_r, jnp.float32),
        "w_hh_r": jnp.asarray(w_hh_r, jnp.float32),
        "b_r": jnp.asarray(b_r, jnp.float32),
        "w_fc_t": jnp.asarray(w_fc_t, jnp.float32),
        "b_fc": jnp.asarray(b_fc, jnp.float32),
    }


# ------------------------------- forward wrapper -----------------------------
def decoder_rnn_forward(input_ids, hidden, cell, prepped):
    """input_ids: (B, S) int32;  hidden, cell: (L, B, H) f32;
    prepped: output of prepare_params (cached across calls)."""
    B, S = input_ids.shape
    L, _, H = hidden.shape
    O = prepped["w_fc_t"].shape[1]

    # glue: time-major flatten of the ids (dropout = identity at inference)
    ids_flat = input_ids.T.reshape(S * B, 1).astype(jnp.int32)

    vmem = pl.BlockSpec(memory_space=pltpu.MemorySpace.VMEM)

    pred_flat, h_out, c_out = pl.pallas_call(
        decoder_lstm_kernel,
        out_shape=(
            jax.ShapeDtypeStruct((S * B, O), jnp.float32),
            jax.ShapeDtypeStruct((L, B, H), jnp.float32),
            jax.ShapeDtypeStruct((L, B, H), jnp.float32),
        ),
        in_specs=[vmem] * 11,
        out_specs=(vmem, vmem, vmem),
    )(
        ids_flat, hidden, cell,
        prepped["w_xg0"], prepped["w_hh0"], prepped["b0"],
        prepped["w_ih_r"], prepped["w_hh_r"], prepped["b_r"],
        prepped["w_fc_t"], prepped["b_fc"],
    )
    pred = pred_flat.reshape(S, B, O)   # row-major view, free
    return pred, h_out, c_out


# --------------------------- pure-JAX reference ------------------------------
def reference_forward(input_ids, hidden, cell, params):
    ids_t = input_ids.T
    x_seq = jnp.take(params["embedding"], ids_t, axis=0)         # (S, B, E)
    L, B, H = hidden.shape
    h = [hidden[l] for l in range(L)]
    c = [cell[l] for l in range(L)]
    outs = []
    for t in range(x_seq.shape[0]):
        x = x_seq[t]
        for l in range(L):
            gates = (x @ params["w_ih"][l].T + h[l] @ params["w_hh"][l].T
                     + params["b_ih"][l] + params["b_hh"][l])
            i_g = jax.nn.sigmoid(gates[:, 0 * H:1 * H])
            f_g = jax.nn.sigmoid(gates[:, 1 * H:2 * H])
            g_g = jnp.tanh(gates[:, 2 * H:3 * H])
            o_g = jax.nn.sigmoid(gates[:, 3 * H:4 * H])
            c[l] = f_g * c[l] + i_g * g_g
            h[l] = o_g * jnp.tanh(c[l])
            x = h[l]
        outs.append(x @ params["w_fc"].T + params["b_fc"])
    pred = jnp.stack(outs, axis=0)
    return pred, jnp.stack(h, axis=0), jnp.stack(c, axis=0)


# ------------------------------- main ----------------------------------------
if __name__ == "__main__":
    # hyperparameters implied by DecoderRNN.__init__ (kept small)
    input_size = 20        # vocab
    hidden_size = 32
    output_size = 24
    embedding_size = 32
    num_layers = 2
    B, S = 2, 8

    key = jax.random.PRNGKey(0)
    keys = jax.random.split(key, 16)
    bound = hidden_size ** -0.5

    def unif(k, shape):
        return jax.random.uniform(k, shape, jnp.float32, -bound, bound)

    params = {
        "embedding": jax.random.normal(keys[0], (input_size, embedding_size),
                                       jnp.float32),
        # per-layer LSTM weights (layer 0 input width = E, layers > 0 = H)
        "w_ih": [unif(keys[1 + 4 * l],
                      (4 * hidden_size,
                       embedding_size if l == 0 else hidden_size))
                 for l in range(num_layers)],
        "w_hh": [unif(keys[2 + 4 * l], (4 * hidden_size, hidden_size))
                 for l in range(num_layers)],
        "b_ih": [unif(keys[3 + 4 * l], (4 * hidden_size,))
                 for l in range(num_layers)],
        "b_hh": [unif(keys[4 + 4 * l], (4 * hidden_size,))
                 for l in range(num_layers)],
        "w_fc": unif(keys[9], (output_size, hidden_size)),
        "b_fc": unif(keys[10], (output_size,)),
    }

    input_ids = jax.random.randint(keys[11], (B, S), 0, input_size, jnp.int32)
    hidden0 = jax.random.normal(keys[12], (num_layers, B, hidden_size),
                                jnp.float32)
    cell0 = jax.random.normal(keys[13], (num_layers, B, hidden_size),
                              jnp.float32)

    # one-time weight preparation (amortized across decode steps)
    prepped = jax.tree_util.tree_map(jax.block_until_ready,
                                     prepare_params(params))

    pred, h_out, c_out = decoder_rnn_forward(input_ids, hidden0, cell0, prepped)
    jax.block_until_ready((pred, h_out, c_out))

    # numerical check against pure-JAX reference
    pred_r, h_r, c_r = reference_forward(input_ids, hidden0, cell0, params)
    assert jnp.allclose(pred, pred_r, atol=1e-4, rtol=1e-4)
    assert jnp.allclose(h_out, h_r, atol=1e-4, rtol=1e-4)
    assert jnp.allclose(c_out, c_r, atol=1e-4, rtol=1e-4)

    print("KERNEL_OK")
</pallas_src>

<mosaic_0001>
module attributes {stable_mosaic.version = 11 : i64} {
  func.func @decoder_lstm_kernel(%arg0: memref<16x1xi32, #tpu.memory_space<vmem>>, %arg1: memref<2x2x32xf32, #tpu.memory_space<vmem>>, %arg2: memref<2x2x32xf32, #tpu.memory_space<vmem>>, %arg3: memref<20x512xf32, #tpu.memory_space<vmem>>, %arg4: memref<128x512xf32, #tpu.memory_space<vmem>>, %arg5: memref<1x512xf32, #tpu.memory_space<vmem>>, %arg6: memref<1x128x512xf32, #tpu.memory_space<vmem>>, %arg7: memref<1x128x512xf32, #tpu.memory_space<vmem>>, %arg8: memref<1x1x512xf32, #tpu.memory_space<vmem>>, %arg9: memref<128x24xf32, #tpu.memory_space<vmem>>, %arg10: memref<1x24xf32, #tpu.memory_space<vmem>>, %arg11: memref<16x24xf32, #tpu.memory_space<vmem>>, %arg12: memref<2x2x32xf32, #tpu.memory_space<vmem>>, %arg13: memref<2x2x32xf32, #tpu.memory_space<vmem>>) attributes {dimension_semantics = [], scalar_prefetch = 0 : i64, scratch_operands = 0 : i64, tpu.core_type = #tpu.core_type<tc>} {
    %c0 = arith.constant 0 : index
    %c0_0 = arith.constant 0 : index
    %0 = vector.load %arg0[%c0, %c0_0] : memref<16x1xi32, #tpu.memory_space<vmem>>, vector<16x1xi32>
    %1 = tpu.iota {dimensions = array<i32: 1>} : vector<16x20xi32>
    %2 = vector.broadcast %0 : vector<16x1xi32> to vector<16x20xi32>
    %3 = arith.cmpi eq, %2, %1 : vector<16x20xi32>
    %4 = arith.extui %3 : vector<16x20xi1> to vector<16x20xi32>
    %5 = arith.sitofp %4 : vector<16x20xi32> to vector<16x20xf32>
    %c0_1 = arith.constant 0 : index
    %c0_2 = arith.constant 0 : index
    %6 = vector.load %arg3[%c0_1, %c0_2] : memref<20x512xf32, #tpu.memory_space<vmem>>, vector<20x512xf32>
    %cst = arith.constant dense<0.000000e+00> : vector<16x512xf32>
    %7 = tpu.matmul %5, %6, %cst {dimension_numbers = #tpu.dot_dimension_numbers<[1], [0], [0], [1], [0, 0, 1, 1], [], []>} : vector<16x20xf32>, vector<20x512xf32>, vector<16x512xf32> -> vector<16x512xf32>
    %c0_3 = arith.constant 0 : index
    %c0_4 = arith.constant 0 : index
    %8 = vector.load %arg5[%c0_3, %c0_4] : memref<1x512xf32, #tpu.memory_space<vmem>>, vector<1x512xf32>
    %9 = vector.broadcast %8 : vector<1x512xf32> to vector<16x512xf32>
    %10 = arith.addf %7, %9 : vector<16x512xf32>
    %c0_5 = arith.constant 0 : index
    %c0_6 = arith.constant 0 : index
    %11 = vector.load %arg4[%c0_5, %c0_6] : memref<128x512xf32, #tpu.memory_space<vmem>>, vector<128x512xf32>
    %c0_7 = arith.constant 0 : index
    %c0_8 = arith.constant 0 : index
    %c0_9 = arith.constant 0 : index
    %12 = vector.load %arg6[%c0_7, %c0_8, %c0_9] : memref<1x128x512xf32, #tpu.memory_space<vmem>>, vector<1x128x512xf32>
    %13 = vector.shape_cast %12 : vector<1x128x512xf32> to vector<128x512xf32>
    %c0_10 = arith.constant 0 : index
    %c0_11 = arith.constant 0 : index
    %c0_12 = arith.constant 0 : index
    %14 = vector.load %arg7[%c0_10, %c0_11, %c0_12] : memref<1x128x512xf32, #tpu.memory_space<vmem>>, vector<1x128x512xf32>
    %15 = vector.shape_cast %14 : vector<1x128x512xf32> to vector<128x512xf32>
    %c0_13 = arith.constant 0 : index
    %c0_14 = arith.constant 0 : index
    %c0_15 = arith.constant 0 : index
    %16 = vector.load %arg8[%c0_13, %c0_14, %c0_15] : memref<1x1x512xf32, #tpu.memory_space<vmem>>, vector<1x1x512xf32>
    %17 = vector.shape_cast %16 : vector<1x1x512xf32> to vector<1x512xf32>
    %cst_16 = arith.constant 0.000000e+00 : f32
    %18 = vector.broadcast %cst_16 : f32 to vector<2x96xf32>
    %c0_17 = arith.constant 0 : index
    %c0_18 = arith.constant 0 : index
    %c0_19 = arith.constant 0 : index
    %19 = vector.load %arg1[%c0_17, %c0_18, %c0_19] : memref<2x2x32xf32, #tpu.memory_space<vmem>>, vector<1x2x32xf32>
    %20 = vector.shape_cast %19 : vector<1x2x32xf32> to vector<2x32xf32>
    %21 = tpu.concatenate %20, %18 in 1 : vector<2x32xf32>, vector<2x96xf32> -> vector<2x128xf32>
    %c1 = arith.constant 1 : index
    %c0_20 = arith.constant 0 : index
    %c0_21 = arith.constant 0 : index
    %22 = vector.load %arg1[%c1, %c0_20, %c0_21] : memref<2x2x32xf32, #tpu.memory_space<vmem>>, vector<1x2x32xf32>
    %23 = vector.shape_cast %22 : vector<1x2x32xf32> to vector<2x32xf32>
    %24 = tpu.concatenate %23, %18 in 1 : vector<2x32xf32>, vector<2x96xf32> -> vector<2x128xf32>
    %c0_22 = arith.constant 0 : index
    %c0_23 = arith.constant 0 : index
    %c0_24 = arith.constant 0 : index
    %25 = vector.load %arg2[%c0_22, %c0_23, %c0_24] : memref<2x2x32xf32, #tpu.memory_space<vmem>>, vector<1x2x32xf32>
    %26 = vector.shape_cast %25 : vector<1x2x32xf32> to vector<2x32xf32>
    %27 = tpu.concatenate %26, %18 in 1 : vector<2x32xf32>, vector<2x96xf32> -> vector<2x128xf32>
    %c1_25 = arith.constant 1 : index
    %c0_26 = arith.constant 0 : index
    %c0_27 = arith.constant 0 : index
    %28 = vector.load %arg2[%c1_25, %c0_26, %c0_27] : memref<2x2x32xf32, #tpu.memory_space<vmem>>, vector<1x2x32xf32>
    %29 = vector.shape_cast %28 : vector<1x2x32xf32> to vector<2x32xf32>
    %30 = tpu.concatenate %29, %18 in 1 : vector<2x32xf32>, vector<2x96xf32> -> vector<2x128xf32>
    %31 = vector.extract_strided_slice %10 {offsets = [0, 0], sizes = [2, 512], strides = [1, 1]} : vector<16x512xf32> to vector<2x512xf32>
    %cst_28 = arith.constant dense<0.000000e+00> : vector<2x512xf32>
    %32 = tpu.matmul %21, %11, %cst_28 {dimension_numbers = #tpu.dot_dimension_numbers<[1], [0], [0], [1], [0, 0, 1, 1], [], []>} : vector<2x128xf32>, vector<128x512xf32>, vector<2x512xf32> -> vector<2x512xf32>
    %33 = arith.addf %31, %32 : vector<2x512xf32>
    %34 = arith.negf %33 : vector<2x512xf32>
    %35 = math.exp %34 : vector<2x512xf32>
    %cst_29 = arith.constant 1.000000e+00 : f32
    %36 = vector.broadcast %cst_29 : f32 to vector<2x512xf32>
    %37 = arith.addf %36, %35 : vector<2x512xf32>
    %38 = arith.divf %36, %37 : vector<2x512xf32>
    %39 = vector.extract_strided_slice %38 {offsets = [0, 0], sizes = [2, 128], strides = [1, 1]} : vector<2x512xf32> to vector<2x128xf32>
    %40 = vector.extract_strided_slice %38 {offsets = [0, 128], sizes = [2, 128], strides = [1, 1]} : vector<2x512xf32> to vector<2x128xf32>
    %41 = vector.extract_strided_slice %38 {offsets = [0, 384], sizes = [2, 128], strides = [1, 1]} : vector<2x512xf32> to vector<2x128xf32>
    %42 = vector.extract_strided_slice %33 {offsets = [0, 256], sizes = [2, 128], strides = [1, 1]} : vector<2x512xf32> to vector<2x128xf32>
    %43 = math.tanh %42 : vector<2x128xf32>
    %44 = arith.mulf %40, %27 : vector<2x128xf32>
    %45 = arith.mulf %39, %43 : vector<2x128xf32>
    %46 = arith.addf %44, %45 : vector<2x128xf32>
    %47 = math.tanh %46 : vector<2x128xf32>
    %48 = arith.mulf %41, %47 : vector<2x128xf32>
    %cst_30 = arith.constant dense<0.000000e+00> : vector<2x512xf32>
    %49 = tpu.matmul %48, %13, %cst_30 {dimension_numbers = #tpu.dot_dimension_numbers<[1], [0], [0], [1], [0, 0, 1, 1], [], []>} : vector<2x128xf32>, vector<128x512xf32>, vector<2x512xf32> -> vector<2x512xf32>
    %cst_31 = arith.constant dense<0.000000e+00> : vector<2x512xf32>
    %50 = tpu.matmul %24, %15, %cst_31 {dimension_numbers = #tpu.dot_dimension_numbers<[1], [0], [0], [1], [0, 0, 1, 1], [], []>} : vector<2x128xf32>, vector<128x512xf32>, vector<2x512xf32> -> vector<2x512xf32>
    %51 = arith.addf %49, %50 : vector<2x512xf32>
    %52 = vector.broadcast %17 : vector<1x512xf32> to vector<2x512xf32>
    %53 = arith.addf %51, %52 : vector<2x512xf32>
    %54 = arith.negf %53 : vector<2x512xf32>
    %55 = math.exp %54 : vector<2x512xf32>
    %cst_32 = arith.constant 1.000000e+00 : f32
    %56 = vector.broadcast %cst_32 : f32 to vector<2x512xf32>
    %57 = arith.addf %56, %55 : vector<2x512xf32>
    %58 = arith.divf %56, %57 : vector<2x512xf32>
    %59 = vector.extract_strided_slice %58 {offsets = [0, 0], sizes = [2, 128], strides = [1, 1]} : vector<2x512xf32> to vector<2x128xf32>
    %60 = vector.extract_strided_slice %58 {offsets = [0, 128], sizes = [2, 128], strides = [1, 1]} : vector<2x512xf32> to vector<2x128xf32>
    %61 = vector.extract_strided_slice %58 {offsets = [0, 384], sizes = [2, 128], strides = [1, 1]} : vector<2x512xf32> to vector<2x128xf32>
    %62 = vector.extract_strided_slice %53 {offsets = [0, 256], sizes = [2, 128], strides = [1, 1]} : vector<2x512xf32> to vector<2x128xf32>
    %63 = math.tanh %62 : vector<2x128xf32>
    %64 = arith.mulf %60, %30 : vector<2x128xf32>
    %65 = arith.mulf %59, %63 : vector<2x128xf32>
    %66 = arith.addf %64, %65 : vector<2x128xf32>
    %67 = math.tanh %66 : vector<2x128xf32>
    %68 = arith.mulf %61, %67 : vector<2x128xf32>
    %69 = vector.extract_strided_slice %10 {offsets = [2, 0], sizes = [2, 512], strides = [1, 1]} : vector<16x512xf32> to vector<2x512xf32>
    %cst_33 = arith.constant dense<0.000000e+00> : vector<2x512xf32>
    %70 = tpu.matmul %48, %11, %cst_33 {dimension_numbers = #tpu.dot_dimension_numbers<[1], [0], [0], [1], [0, 0, 1, 1], [], []>} : vector<2x128xf32>, vector<128x512xf32>, vector<2x512xf32> -> vector<2x512xf32>
    %71 = arith.addf %69, %70 : vector<2x512xf32>
    %72 = arith.negf %71 : vector<2x512xf32>
    %73 = math.exp %72 : vector<2x512xf32>
    %cst_34 = arith.constant 1.000000e+00 : f32
    %74 = vector.broadcast %cst_34 : f32 to vector<2x512xf32>
    %75 = arith.addf %74, %73 : vector<2x512xf32>
    %76 = arith.divf %74, %75 : vector<2x512xf32>
    %77 = vector.extract_strided_slice %76 {offsets = [0, 0], sizes = [2, 128], strides = [1, 1]} : vector<2x512xf32> to vector<2x128xf32>
    %78 = vector.extract_strided_slice %76 {offsets = [0, 128], sizes = [2, 128], strides = [1, 1]} : vector<2x512xf32> to vector<2x128xf32>
    %79 = vector.extract_strided_slice %76 {offsets = [0, 384], sizes = [2, 128], strides = [1, 1]} : vector<2x512xf32> to vector<2x128xf32>
    %80 = vector.extract_strided_slice %71 {offsets = [0, 256], sizes = [2, 128], strides = [1, 1]} : vector<2x512xf32> to vector<2x128xf32>
    %81 = math.tanh %80 : vector<2x128xf32>
    %82 = arith.mulf %78, %46 : vector<2x128xf32>
    %83 = arith.mulf %77, %81 : vector<2x128xf32>
    %84 = arith.addf %82, %83 : vector<2x128xf32>
    %85 = math.tanh %84 : vector<2x128xf32>
    %86 = arith.mulf %79, %85 : vector<2x128xf32>
    %cst_35 = arith.constant dense<0.000000e+00> : vector<2x512xf32>
    %87 = tpu.matmul %86, %13, %cst_35 {dimension_numbers = #tpu.dot_dimension_numbers<[1], [0], [0], [1], [0, 0, 1, 1], [], []>} : vector<2x128xf32>, vector<128x512xf32>, vector<2x512xf32> -> vector<2x512xf32>
    %cst_36 = arith.constant dense<0.000000e+00> : vector<2x512xf32>
    %88 = tpu.matmul %68, %15, %cst_36 {dimension_numbers = #tpu.dot_dimension_numbers<[1], [0], [0], [1], [0, 0, 1, 1], [], []>} : vector<2x128xf32>, vector<128x512xf32>, vector<2x512xf32> -> vector<2x512xf32>
    %89 = arith.addf %87, %88 : vector<2x512xf32>
    %90 = vector.broadcast %17 : vector<1x512xf32> to vector<2x512xf32>
    %91 = arith.addf %89, %90 : vector<2x512xf32>
    %92 = arith.negf %91 : vector<2x512xf32>
    %93 = math.exp %92 : vector<2x512xf32>
    %cst_37 = arith.constant 1.000000e+00 : f32
    %94 = vector.broadcast %cst_37 : f32 to vector<2x512xf32>
    %95 = arith.addf %94, %93 : vector<2x512xf32>
    %96 = arith.divf %94, %95 : vector<2x512xf32>
    %97 = vector.extract_strided_slice %96 {offsets = [0, 0], sizes = [2, 128], strides = [1, 1]} : vector<2x512xf32> to vector<2x128xf32>
    %98 = vector.extract_strided_slice %96 {offsets = [0, 128], sizes = [2, 128], strides = [1, 1]} : vector<2x512xf32> to vector<2x128xf32>
    %99 = vector.extract_strided_slice %96 {offsets = [0, 384], sizes = [2, 128], strides = [1, 1]} : vector<2x512xf32> to vector<2x128xf32>
    %100 = vector.extract_strided_slice %91 {offsets = [0, 256], sizes = [2, 128], strides = [1, 1]} : vector<2x512xf32> to vector<2x128xf32>
    %101 = math.tanh %100 : vector<2x128xf32>
    %102 = arith.mulf %98, %66 : vector<2x128xf32>
    %103 = arith.mulf %97, %101 : vector<2x128xf32>
    %104 = arith.addf %102, %103 : vector<2x128xf32>
    %105 = math.tanh %104 : vector<2x128xf32>
    %106 = arith.mulf %99, %105 : vector<2x128xf32>
    %107 = vector.extract_strided_slice %10 {offsets = [4, 0], sizes = [2, 512], strides = [1, 1]} : vector<16x512xf32> to vector<2x512xf32>
    %cst_38 = arith.constant dense<0.000000e+00> : vector<2x512xf32>
    %108 = tpu.matmul %86, %11, %cst_38 {dimension_numbers = #tpu.dot_dimension_numbers<[1], [0], [0], [1], [0, 0, 1, 1], [], []>} : vector<2x128xf32>, vector<128x512xf32>, vector<2x512xf32> -> vector<2x512xf32>
    %109 = arith.addf %107, %108 : vector<2x512xf32>
    %110 = arith.negf %109 : vector<2x512xf32>
    %111 = math.exp %110 : vector<2x512xf32>
    %cst_39 = arith.constant 1.000000e+00 : f32
    %112 = vector.broadcast %cst_39 : f32 to vector<2x512xf32>
    %113 = arith.addf %112, %111 : vector<2x512xf32>
    %114 = arith.divf %112, %113 : vector<2x512xf32>
    %115 = vector.extract_strided_slice %114 {offsets = [0, 0], sizes = [2, 128], strides = [1, 1]} : vector<2x512xf32> to vector<2x128xf32>
    %116 = vector.extract_strided_slice %114 {offsets = [0, 128], sizes = [2, 128], strides = [1, 1]} : vector<2x512xf32> to vector<2x128xf32>
    %117 = vector.extract_strided_slice %114 {offsets = [0, 384], sizes = [2, 128], strides = [1, 1]} : vector<2x512xf32> to vector<2x128xf32>
    %118 = vector.extract_strided_slice %109 {offsets = [0, 256], sizes = [2, 128], strides = [1, 1]} : vector<2x512xf32> to vector<2x128xf32>
    %119 = math.tanh %118 : vector<2x128xf32>
    %120 = arith.mulf %116, %84 : vector<2x128xf32>
    %121 = arith.mulf %115, %119 : vector<2x128xf32>
    %122 = arith.addf %120, %121 : vector<2x128xf32>
    %123 = math.tanh %122 : vector<2x128xf32>
    %124 = arith.mulf %117, %123 : vector<2x128xf32>
    %cst_40 = arith.constant dense<0.000000e+00> : vector<2x512xf32>
    %125 = tpu.matmul %124, %13, %cst_40 {dimension_numbers = #tpu.dot_dimension_numbers<[1], [0], [0], [1], [0, 0, 1, 1], [], []>} : vector<2x128xf32>, vector<128x512xf32>, vector<2x512xf32> -> vector<2x512xf32>
    %cst_41 = arith.constant dense<0.000000e+00> : vector<2x512xf32>
    %126 = tpu.matmul %106, %15, %cst_41 {dimension_numbers = #tpu.dot_dimension_numbers<[1], [0], [0], [1], [0, 0, 1, 1], [], []>} : vector<2x128xf32>, vector<128x512xf32>, vector<2x512xf32> -> vector<2x512xf32>
    %127 = arith.addf %125, %126 : vector<2x512xf32>
    %128 = vector.broadcast %17 : vector<1x512xf32> to vector<2x512xf32>
    %129 = arith.addf %127, %128 : vector<2x512xf32>
    %130 = arith.negf %129 : vector<2x512xf32>
    %131 = math.exp %130 : vector<2x512xf32>
    %cst_42 = arith.constant 1.000000e+00 : f32
    %132 = vector.broadcast %cst_42 : f32 to vector<2x512xf32>
    %133 = arith.addf %132, %131 : vector<2x512xf32>
    %134 = arith.divf %132, %133 : vector<2x512xf32>
    %135 = vector.extract_strided_slice %134 {offsets = [0, 0], sizes = [2, 128], strides = [1, 1]} : vector<2x512xf32> to vector<2x128xf32>
    %136 = vector.extract_strided_slice %134 {offsets = [0, 128], sizes = [2, 128], strides = [1, 1]} : vector<2x512xf32> to vector<2x128xf32>
    %137 = vector.extract_strided_slice %134 {offsets = [0, 384], sizes = [2, 128], strides = [1, 1]} : vector<2x512xf32> to vector<2x128xf32>
    %138 = vector.extract_strided_slice %129 {offsets = [0, 256], sizes = [2, 128], strides = [1, 1]} : vector<2x512xf32> to vector<2x128xf32>
    %139 = math.tanh %138 : vector<2x128xf32>
    %140 = arith.mulf %136, %104 : vector<2x128xf32>
    %141 = arith.mulf %135, %139 : vector<2x128xf32>
    %142 = arith.addf %140, %141 : vector<2x128xf32>
    %143 = math.tanh %142 : vector<2x128xf32>
    %144 = arith.mulf %137, %143 : vector<2x128xf32>
    %145 = vector.extract_strided_slice %10 {offsets = [6, 0], sizes = [2, 512], strides = [1, 1]} : vector<16x512xf32> to vector<2x512xf32>
    %cst_43 = arith.constant dense<0.000000e+00> : vector<2x512xf32>
    %146 = tpu.matmul %124, %11, %cst_43 {dimension_numbers = #tpu.dot_dimension_numbers<[1], [0], [0], [1], [0, 0, 1, 1], [], []>} : vector<2x128xf32>, vector<128x512xf32>, vector<2x512xf32> -> vector<2x512xf32>
    %147 = arith.addf %145, %146 : vector<2x512xf32>
    %148 = arith.negf %147 : vector<2x512xf32>
    %149 = math.exp %148 : vector<2x512xf32>
    %cst_44 = arith.constant 1.000000e+00 : f32
    %150 = vector.broadcast %cst_44 : f32 to vector<2x512xf32>
    %151 = arith.addf %150, %149 : vector<2x512xf32>
    %152 = arith.divf %150, %151 : vector<2x512xf32>
    %153 = vector.extract_strided_slice %152 {offsets = [0, 0], sizes = [2, 128], strides = [1, 1]} : vector<2x512xf32> to vector<2x128xf32>
    %154 = vector.extract_strided_slice %152 {offsets = [0, 128], sizes = [2, 128], strides = [1, 1]} : vector<2x512xf32> to vector<2x128xf32>
    %155 = vector.extract_strided_slice %152 {offsets = [0, 384], sizes = [2, 128], strides = [1, 1]} : vector<2x512xf32> to vector<2x128xf32>
    %156 = vector.extract_strided_slice %147 {offsets = [0, 256], sizes = [2, 128], strides = [1, 1]} : vector<2x512xf32> to vector<2x128xf32>
    %157 = math.tanh %156 : vector<2x128xf32>
    %158 = arith.mulf %154, %122 : vector<2x128xf32>
    %159 = arith.mulf %153, %157 : vector<2x128xf32>
    %160 = arith.addf %158, %159 : vector<2x128xf32>
    %161 = math.tanh %160 : vector<2x128xf32>
    %162 = arith.mulf %155, %161 : vector<2x128xf32>
    %cst_45 = arith.constant dense<0.000000e+00> : vector<2x512xf32>
    %163 = tpu.matmul %162, %13, %cst_45 {dimension_numbers = #tpu.dot_dimension_numbers<[1], [0], [0], [1], [0, 0, 1, 1], [], []>} : vector<2x128xf32>, vector<128x512xf32>, vector<2x512xf32> -> vector<2x512xf32>
    %cst_46 = arith.constant dense<0.000000e+00> : vector<2x512xf32>
    %164 = tpu.matmul %144, %15, %cst_46 {dimension_numbers = #tpu.dot_dimension_numbers<[1], [0], [0], [1], [0, 0, 1, 1], [], []>} : vector<2x128xf32>, vector<128x512xf32>, vector<2x512xf32> -> vector<2x512xf32>
    %165 = arith.addf %163, %164 : vector<2x512xf32>
    %166 = vector.broadcast %17 : vector<1x512xf32> to vector<2x512xf32>
    %167 = arith.addf %165, %166 : vector<2x512xf32>
    %168 = arith.negf %167 : vector<2x512xf32>
    %169 = math.exp %168 : vector<2x512xf32>
    %cst_47 = arith.constant 1.000000e+00 : f32
    %170 = vector.broadcast %cst_47 : f32 to vector<2x512xf32>
    %171 = arith.addf %170, %169 : vector<2x512xf32>
    %172 = arith.divf %170, %171 : vector<2x512xf32>
    %173 = vector.extract_strided_slice %172 {offsets = [0, 0], sizes = [2, 128], strides = [1, 1]} : vector<2x512xf32> to vector<2x128xf32>
    %174 = vector.extract_strided_slice %172 {offsets = [0, 128], sizes = [2, 128], strides = [1, 1]} : vector<2x512xf32> to vector<2x128xf32>
    %175 = vector.extract_strided_slice %172 {offsets = [0, 384], sizes = [2, 128], strides = [1, 1]} : vector<2x512xf32> to vector<2x128xf32>
    %176 = vector.extract_strided_slice %167 {offsets = [0, 256], sizes = [2, 128], strides = [1, 1]} : vector<2x512xf32> to vector<2x128xf32>
    %177 = math.tanh %176 : vector<2x128xf32>
    %178 = arith.mulf %174, %142 : vector<2x128xf32>
    %179 = arith.mulf %173, %177 : vector<2x128xf32>
    %180 = arith.addf %178, %179 : vector<2x128xf32>
    %181 = math.tanh %180 : vector<2x128xf32>
    %182 = arith.mulf %175, %181 : vector<2x128xf32>
    %183 = vector.extract_strided_slice %10 {offsets = [8, 0], sizes = [2, 512], strides = [1, 1]} : vector<16x512xf32> to vector<2x512xf32>
    %cst_48 = arith.constant dense<0.000000e+00> : vector<2x512xf32>
    %184 = tpu.matmul %162, %11, %cst_48 {dimension_numbers = #tpu.dot_dimension_numbers<[1], [0], [0], [1], [0, 0, 1, 1], [], []>} : vector<2x128xf32>, vector<128x512xf32>, vector<2x512xf32> -> vector<2x512xf32>
    %185 = arith.addf %183, %184 : vector<2x512xf32>
    %186 = arith.negf %185 : vector<2x512xf32>
    %187 = math.exp %186 : vector<2x512xf32>
    %cst_49 = arith.constant 1.000000e+00 : f32
    %188 = vector.broadcast %cst_49 : f32 to vector<2x512xf32>
    %189 = arith.addf %188, %187 : vector<2x512xf32>
    %190 = arith.divf %188, %189 : vector<2x512xf32>
    %191 = vector.extract_strided_slice %190 {offsets = [0, 0], sizes = [2, 128], strides = [1, 1]} : vector<2x512xf32> to vector<2x128xf32>
    %192 = vector.extract_strided_slice %190 {offsets = [0, 128], sizes = [2, 128], strides = [1, 1]} : vector<2x512xf32> to vector<2x128xf32>
    %193 = vector.extract_strided_slice %190 {offsets = [0, 384], sizes = [2, 128], strides = [1, 1]} : vector<2x512xf32> to vector<2x128xf32>
    %194 = vector.extract_strided_slice %185 {offsets = [0, 256], sizes = [2, 128], strides = [1, 1]} : vector<2x512xf32> to vector<2x128xf32>
    %195 = math.tanh %194 : vector<2x128xf32>
    %196 = arith.mulf %192, %160 : vector<2x128xf32>
    %197 = arith.mulf %191, %195 : vector<2x128xf32>
    %198 = arith.addf %196, %197 : vector<2x128xf32>
    %199 = math.tanh %198 : vector<2x128xf32>
    %200 = arith.mulf %193, %199 : vector<2x128xf32>
    %cst_50 = arith.constant dense<0.000000e+00> : vector<2x512xf32>
    %201 = tpu.matmul %200, %13, %cst_50 {dimension_numbers = #tpu.dot_dimension_numbers<[1], [0], [0], [1], [0, 0, 1, 1], [], []>} : vector<2x128xf32>, vector<128x512xf32>, vector<2x512xf32> -> vector<2x512xf32>
    %cst_51 = arith.constant dense<0.000000e+00> : vector<2x512xf32>
    %202 = tpu.matmul %182, %15, %cst_51 {dimension_numbers = #tpu.dot_dimension_numbers<[1], [0], [0], [1], [0, 0, 1, 1], [], []>} : vector<2x128xf32>, vector<128x512xf32>, vector<2x512xf32> -> vector<2x512xf32>
    %203 = arith.addf %201, %202 : vector<2x512xf32>
    %204 = vector.broadcast %17 : vector<1x512xf32> to vector<2x512xf32>
    %205 = arith.addf %203, %204 : vector<2x512xf32>
    %206 = arith.negf %205 : vector<2x512xf32>
    %207 = math.exp %206 : vector<2x512xf32>
    %cst_52 = arith.constant 1.000000e+00 : f32
    %208 = vector.broadcast %cst_52 : f32 to vector<2x512xf32>
    %209 = arith.addf %208, %207 : vector<2x512xf32>
    %210 = arith.divf %208, %209 : vector<2x512xf32>
    %211 = vector.extract_strided_slice %210 {offsets = [0, 0], sizes = [2, 128], strides = [1, 1]} : vector<2x512xf32> to vector<2x128xf32>
    %212 = vector.extract_strided_slice %210 {offsets = [0, 128], sizes = [2, 128], strides = [1, 1]} : vector<2x512xf32> to vector<2x128xf32>
    %213 = vector.extract_strided_slice %210 {offsets = [0, 384], sizes = [2, 128], strides = [1, 1]} : vector<2x512xf32> to vector<2x128xf32>
    %214 = vector.extract_strided_slice %205 {offsets = [0, 256], sizes = [2, 128], strides = [1, 1]} : vector<2x512xf32> to vector<2x128xf32>
    %215 = math.tanh %214 : vector<2x128xf32>
    %216 = arith.mulf %212, %180 : vector<2x128xf32>
    %217 = arith.mulf %211, %215 : vector<2x128xf32>
    %218 = arith.addf %216, %217 : vector<2x128xf32>
    %219 = math.tanh %218 : vector<2x128xf32>
    %220 = arith.mulf %213, %219 : vector<2x128xf32>
    %221 = vector.extract_strided_slice %10 {offsets = [10, 0], sizes = [2, 512], strides = [1, 1]} : vector<16x512xf32> to vector<2x512xf32>
    %cst_53 = arith.constant dense<0.000000e+00> : vector<2x512xf32>
    %222 = tpu.matmul %200, %11, %cst_53 {dimension_numbers = #tpu.dot_dimension_numbers<[1], [0], [0], [1], [0, 0, 1, 1], [], []>} : vector<2x128xf32>, vector<128x512xf32>, vector<2x512xf32> -> vector<2x512xf32>
    %223 = arith.addf %221, %222 : vector<2x512xf32>
    %224 = arith.negf %223 : vector<2x512xf32>
    %225 = math.exp %224 : vector<2x512xf32>
    %cst_54 = arith.constant 1.000000e+00 : f32
    %226 = vector.broadcast %cst_54 : f32 to vector<2x512xf32>
    %227 = arith.addf %226, %225 : vector<2x512xf32>
    %228 = arith.divf %226, %227 : vector<2x512xf32>
    %229 = vector.extract_strided_slice %228 {offsets = [0, 0], sizes = [2, 128], strides = [1, 1]} : vector<2x512xf32> to vector<2x128xf32>
    %230 = vector.extract_strided_slice %228 {offsets = [0, 128], sizes = [2, 128], strides = [1, 1]} : vector<2x512xf32> to vector<2x128xf32>
    %231 = vector.extract_strided_slice %228 {offsets = [0, 384], sizes = [2, 128], strides = [1, 1]} : vector<2x512xf32> to vector<2x128xf32>
    %232 = vector.extract_strided_slice %223 {offsets = [0, 256], sizes = [2, 128], strides = [1, 1]} : vector<2x512xf32> to vector<2x128xf32>
    %233 = math.tanh %232 : vector<2x128xf32>
    %234 = arith.mulf %230, %198 : vector<2x128xf32>
    %235 = arith.mulf %229, %233 : vector<2x128xf32>
    %236 = arith.addf %234, %235 : vector<2x128xf32>
    %237 = math.tanh %236 : vector<2x128xf32>
    %238 = arith.mulf %231, %237 : vector<2x128xf32>
    %cst_55 = arith.constant dense<0.000000e+00> : vector<2x512xf32>
    %239 = tpu.matmul %238, %13, %cst_55 {dimension_numbers = #tpu.dot_dimension_numbers<[1], [0], [0], [1], [0, 0, 1, 1], [], []>} : vector<2x128xf32>, vector<128x512xf32>, vector<2x512xf32> -> vector<2x512xf32>
    %cst_56 = arith.constant dense<0.000000e+00> : vector<2x512xf32>
    %240 = tpu.matmul %220, %15, %cst_56 {dimension_numbers = #tpu.dot_dimension_numbers<[1], [0], [0], [1], [0, 0, 1, 1], [], []>} : vector<2x128xf32>, vector<128x512xf32>, vector<2x512xf32> -> vector<2x512xf32>
    %241 = arith.addf %239, %240 : vector<2x512xf32>
    %242 = vector.broadcast %17 : vector<1x512xf32> to vector<2x512xf32>
    %243 = arith.addf %241, %242 : vector<2x512xf32>
    %244 = arith.negf %243 : vector<2x512xf32>
    %245 = math.exp %244 : vector<2x512xf32>
    %cst_57 = arith.constant 1.000000e+00 : f32
    %246 = vector.broadcast %cst_57 : f32 to vector<2x512xf32>
    %247 = arith.addf %246, %245 : vector<2x512xf32>
    %248 = arith.divf %246, %247 : vector<2x512xf32>
    %249 = vector.extract_strided_slice %248 {offsets = [0, 0], sizes = [2, 128], strides = [1, 1]} : vector<2x512xf32> to vector<2x128xf32>
    %250 = vector.extract_strided_slice %248 {offsets = [0, 128], sizes = [2, 128], strides = [1, 1]} : vector<2x512xf32> to vector<2x128xf32>
    %251 = vector.extract_strided_slice %248 {offsets = [0, 384], sizes = [2, 128], strides = [1, 1]} : vector<2x512xf32> to vector<2x128xf32>
    %252 = vector.extract_strided_slice %243 {offsets = [0, 256], sizes = [2, 128], strides = [1, 1]} : vector<2x512xf32> to vector<2x128xf32>
    %253 = math.tanh %252 : vector<2x128xf32>
    %254 = arith.mulf %250, %218 : vector<2x128xf32>
    %255 = arith.mulf %249, %253 : vector<2x128xf32>
    %256 = arith.addf %254, %255 : vector<2x128xf32>
    %257 = math.tanh %256 : vector<2x128xf32>
    %258 = arith.mulf %251, %257 : vector<2x128xf32>
    %259 = vector.extract_strided_slice %10 {offsets = [12, 0], sizes = [2, 512], strides = [1, 1]} : vector<16x512xf32> to vector<2x512xf32>
    %cst_58 = arith.constant dense<0.000000e+00> : vector<2x512xf32>
    %260 = tpu.matmul %238, %11, %cst_58 {dimension_numbers = #tpu.dot_dimension_numbers<[1], [0], [0], [1], [0, 0, 1, 1], [], []>} : vector<2x128xf32>, vector<128x512xf32>, vector<2x512xf32> -> vector<2x512xf32>
    %261 = arith.addf %259, %260 : vector<2x512xf32>
    %262 = arith.negf %261 : vector<2x512xf32>
    %263 = math.exp %262 : vector<2x512xf32>
    %cst_59 = arith.constant 1.000000e+00 : f32
    %264 = vector.broadcast %cst_59 : f32 to vector<2x512xf32>
    %265 = arith.addf %264, %263 : vector<2x512xf32>
    %266 = arith.divf %264, %265 : vector<2x512xf32>
    %267 = vector.extract_strided_slice %266 {offsets = [0, 0], sizes = [2, 128], strides = [1, 1]} : vector<2x512xf32> to vector<2x128xf32>
    %268 = vector.extract_strided_slice %266 {offsets = [0, 128], sizes = [2, 128], strides = [1, 1]} : vector<2x512xf32> to vector<2x128xf32>
    %269 = vector.extract_strided_slice %266 {offsets = [0, 384], sizes = [2, 128], strides = [1, 1]} : vector<2x512xf32> to vector<2x128xf32>
    %270 = vector.extract_strided_slice %261 {offsets = [0, 256], sizes = [2, 128], strides = [1, 1]} : vector<2x512xf32> to vector<2x128xf32>
    %271 = math.tanh %270 : vector<2x128xf32>
    %272 = arith.mulf %268, %236 : vector<2x128xf32>
    %273 = arith.mulf %267, %271 : vector<2x128xf32>
    %274 = arith.addf %272, %273 : vector<2x128xf32>
    %275 = math.tanh %274 : vector<2x128xf32>
    %276 = arith.mulf %269, %275 : vector<2x128xf32>
    %cst_60 = arith.constant dense<0.000000e+00> : vector<2x512xf32>
    %277 = tpu.matmul %276, %13, %cst_60 {dimension_numbers = #tpu.dot_dimension_numbers<[1], [0], [0], [1], [0, 0, 1, 1], [], []>} : vector<2x128xf32>, vector<128x512xf32>, vector<2x512xf32> -> vector<2x512xf32>
    %cst_61 = arith.constant dense<0.000000e+00> : vector<2x512xf32>
    %278 = tpu.matmul %258, %15, %cst_61 {dimension_numbers = #tpu.dot_dimension_numbers<[1], [0], [0], [1], [0, 0, 1, 1], [], []>} : vector<2x128xf32>, vector<128x512xf32>, vector<2x512xf32> -> vector<2x512xf32>
    %279 = arith.addf %277, %278 : vector<2x512xf32>
    %280 = vector.broadcast %17 : vector<1x512xf32> to vector<2x512xf32>
    %281 = arith.addf %279, %280 : vector<2x512xf32>
    %282 = arith.negf %281 : vector<2x512xf32>
    %283 = math.exp %282 : vector<2x512xf32>
    %cst_62 = arith.constant 1.000000e+00 : f32
    %284 = vector.broadcast %cst_62 : f32 to vector<2x512xf32>
    %285 = arith.addf %284, %283 : vector<2x512xf32>
    %286 = arith.divf %284, %285 : vector<2x512xf32>
    %287 = vector.extract_strided_slice %286 {offsets = [0, 0], sizes = [2, 128], strides = [1, 1]} : vector<2x512xf32> to vector<2x128xf32>
    %288 = vector.extract_strided_slice %286 {offsets = [0, 128], sizes = [2, 128], strides = [1, 1]} : vector<2x512xf32> to vector<2x128xf32>
    %289 = vector.extract_strided_slice %286 {offsets = [0, 384], sizes = [2, 128], strides = [1, 1]} : vector<2x512xf32> to vector<2x128xf32>
    %290 = vector.extract_strided_slice %281 {offsets = [0, 256], sizes = [2, 128], strides = [1, 1]} : vector<2x512xf32> to vector<2x128xf32>
    %291 = math.tanh %290 : vector<2x128xf32>
    %292 = arith.mulf %288, %256 : vector<2x128xf32>
    %293 = arith.mulf %287, %291 : vector<2x128xf32>
    %294 = arith.addf %292, %293 : vector<2x128xf32>
    %295 = math.tanh %294 : vector<2x128xf32>
    %296 = arith.mulf %289, %295 : vector<2x128xf32>
    %297 = vector.extract_strided_slice %10 {offsets = [14, 0], sizes = [2, 512], strides = [1, 1]} : vector<16x512xf32> to vector<2x512xf32>
    %cst_63 = arith.constant dense<0.000000e+00> : vector<2x512xf32>
    %298 = tpu.matmul %276, %11, %cst_63 {dimension_numbers = #tpu.dot_dimension_numbers<[1], [0], [0], [1], [0, 0, 1, 1], [], []>} : vector<2x128xf32>, vector<128x512xf32>, vector<2x512xf32> -> vector<2x512xf32>
    %299 = arith.addf %297, %298 : vector<2x512xf32>
    %300 = arith.negf %299 : vector<2x512xf32>
    %301 = math.exp %300 : vector<2x512xf32>
    %cst_64 = arith.constant 1.000000e+00 : f32
    %302 = vector.broadcast %cst_64 : f32 to vector<2x512xf32>
    %303 = arith.addf %302, %301 : vector<2x512xf32>
    %304 = arith.divf %302, %303 : vector<2x512xf32>
    %305 = vector.extract_strided_slice %304 {offsets = [0, 0], sizes = [2, 128], strides = [1, 1]} : vector<2x512xf32> to vector<2x128xf32>
    %306 = vector.extract_strided_slice %304 {offsets = [0, 128], sizes = [2, 128], strides = [1, 1]} : vector<2x512xf32> to vector<2x128xf32>
    %307 = vector.extract_strided_slice %304 {offsets = [0, 384], sizes = [2, 128], strides = [1, 1]} : vector<2x512xf32> to vector<2x128xf32>
    %308 = vector.extract_strided_slice %299 {offsets = [0, 256], sizes = [2, 128], strides = [1, 1]} : vector<2x512xf32> to vector<2x128xf32>
    %309 = math.tanh %308 : vector<2x128xf32>
    %310 = arith.mulf %306, %274 : vector<2x128xf32>
    %311 = arith.mulf %305, %309 : vector<2x128xf32>
    %312 = arith.addf %310, %311 : vector<2x128xf32>
    %313 = math.tanh %312 : vector<2x128xf32>
    %314 = arith.mulf %307, %313 : vector<2x128xf32>
    %cst_65 = arith.constant dense<0.000000e+00> : vector<2x512xf32>
    %315 = tpu.matmul %314, %13, %cst_65 {dimension_numbers = #tpu.dot_dimension_numbers<[1], [0], [0], [1], [0, 0, 1, 1], [], []>} : vector<2x128xf32>, vector<128x512xf32>, vector<2x512xf32> -> vector<2x512xf32>
    %cst_66 = arith.constant dense<0.000000e+00> : vector<2x512xf32>
    %316 = tpu.matmul %296, %15, %cst_66 {dimension_numbers = #tpu.dot_dimension_numbers<[1], [0], [0], [1], [0, 0, 1, 1], [], []>} : vector<2x128xf32>, vector<128x512xf32>, vector<2x512xf32> -> vector<2x512xf32>
    %317 = arith.addf %315, %316 : vector<2x512xf32>
    %318 = vector.broadcast %17 : vector<1x512xf32> to vector<2x512xf32>
    %319 = arith.addf %317, %318 : vector<2x512xf32>
    %320 = arith.negf %319 : vector<2x512xf32>
    %321 = math.exp %320 : vector<2x512xf32>
    %cst_67 = arith.constant 1.000000e+00 : f32
    %322 = vector.broadcast %cst_67 : f32 to vector<2x512xf32>
    %323 = arith.addf %322, %321 : vector<2x512xf32>
    %324 = arith.divf %322, %323 : vector<2x512xf32>
    %325 = vector.extract_strided_slice %324 {offsets = [0, 0], sizes = [2, 128], strides = [1, 1]} : vector<2x512xf32> to vector<2x128xf32>
    %326 = vector.extract_strided_slice %324 {offsets = [0, 128], sizes = [2, 128], strides = [1, 1]} : vector<2x512xf32> to vector<2x128xf32>
    %327 = vector.extract_strided_slice %324 {offsets = [0, 384], sizes = [2, 128], strides = [1, 1]} : vector<2x512xf32> to vector<2x128xf32>
    %328 = vector.extract_strided_slice %319 {offsets = [0, 256], sizes = [2, 128], strides = [1, 1]} : vector<2x512xf32> to vector<2x128xf32>
    %329 = math.tanh %328 : vector<2x128xf32>
    %330 = arith.mulf %326, %294 : vector<2x128xf32>
    %331 = arith.mulf %325, %329 : vector<2x128xf32>
    %332 = arith.addf %330, %331 : vector<2x128xf32>
    %333 = math.tanh %332 : vector<2x128xf32>
    %334 = arith.mulf %327, %333 : vector<2x128xf32>
    %335 = tpu.concatenate %68, %106, %144, %182, %220, %258, %296, %334 in 0 : vector<2x128xf32>, vector<2x128xf32>, vector<2x128xf32>, vector<2x128xf32>, vector<2x128xf32>, vector<2x128xf32>, vector<2x128xf32>, vector<2x128xf32> -> vector<16x128xf32>
    %c0_68 = arith.constant 0 : index
    %c0_69 = arith.constant 0 : index
    %336 = vector.load %arg9[%c0_68, %c0_69] : memref<128x24xf32, #tpu.memory_space<vmem>>, vector<128x24xf32>
    %cst_70 = arith.constant dense<0.000000e+00> : vector<16x24xf32>
    %337 = tpu.matmul %335, %336, %cst_70 {dimension_numbers = #tpu.dot_dimension_numbers<[1], [0], [0], [1], [0, 0, 1, 1], [], []>} : vector<16x128xf32>, vector<128x24xf32>, vector<16x24xf32> -> vector<16x24xf32>
    %c0_71 = arith.constant 0 : index
    %c0_72 = arith.constant 0 : index
    %338 = vector.load %arg10[%c0_71, %c0_72] : memref<1x24xf32, #tpu.memory_space<vmem>>, vector<1x24xf32>
    %339 = vector.broadcast %338 : vector<1x24xf32> to vector<16x24xf32>
    %340 = arith.addf %337, %339 : vector<16x24xf32>
    %c0_73 = arith.constant 0 : index
    %c0_74 = arith.constant 0 : index
    %341 = vector.load %arg11[%c0_73, %c0_74] : memref<16x24xf32, #tpu.memory_space<vmem>>, vector<16x24xf32>
    tpu.vector_store %arg11[%c0_73, %c0_74], %340 {strides = array<i32>} : memref<16x24xf32, #tpu.memory_space<vmem>>, vector<16x24xf32>,
    %342 = vector.extract_strided_slice %314 {offsets = [0, 0], sizes = [2, 32], strides = [1, 1]} : vector<2x128xf32> to vector<2x32xf32>
    %c0_75 = arith.constant 0 : index
    %c0_76 = arith.constant 0 : index
    %c0_77 = arith.constant 0 : index
    %343 = vector.load %arg12[%c0_75, %c0_76, %c0_77] : memref<2x2x32xf32, #tpu.memory_space<vmem>>, vector<1x2x32xf32>
    %344 = vector.shape_cast %343 : vector<1x2x32xf32> to vector<2x32xf32>
    %345 = vector.shape_cast %342 : vector<2x32xf32> to vector<1x2x32xf32>
    tpu.vector_store %arg12[%c0_75, %c0_76, %c0_77], %345 {strides = array<i32>} : memref<2x2x32xf32, #tpu.memory_space<vmem>>, vector<1x2x32xf32>,
    %346 = vector.extract_strided_slice %312 {offsets = [0, 0], sizes = [2, 32], strides = [1, 1]} : vector<2x128xf32> to vector<2x32xf32>
    %c0_78 = arith.constant 0 : index
    %c0_79 = arith.constant 0 : index
    %c0_80 = arith.constant 0 : index
    %347 = vector.load %arg13[%c0_78, %c0_79, %c0_80] : memref<2x2x32xf32, #tpu.memory_space<vmem>>, vector<1x2x32xf32>
    %348 = vector.shape_cast %347 : vector<1x2x32xf32> to vector<2x32xf32>
    %349 = vector.shape_cast %346 : vector<2x32xf32> to vector<1x2x32xf32>
    tpu.vector_store %arg13[%c0_78, %c0_79, %c0_80], %349 {strides = array<i32>} : memref<2x2x32xf32, #tpu.memory_space<vmem>>, vector<1x2x32xf32>,
    %350 = vector.extract_strided_slice %334 {offsets = [0, 0], sizes = [2, 32], strides = [1, 1]} : vector<2x128xf32> to vector<2x32xf32>
    %c1_81 = arith.constant 1 : index
    %c0_82 = arith.constant 0 : index
    %c0_83 = arith.constant 0 : index
    %351 = vector.load %arg12[%c1_81, %c0_82, %c0_83] : memref<2x2x32xf32, #tpu.memory_space<vmem>>, vector<1x2x32xf32>
    %352 = vector.shape_cast %351 : vector<1x2x32xf32> to vector<2x32xf32>
    %353 = vector.shape_cast %350 : vector<2x32xf32> to vector<1x2x32xf32>
    tpu.vector_store %arg12[%c1_81, %c0_82, %c0_83], %353 {strides = array<i32>} : memref<2x2x32xf32, #tpu.memory_space<vmem>>, vector<1x2x32xf32>,
    %354 = vector.extract_strided_slice %332 {offsets = [0, 0], sizes = [2, 32], strides = [1, 1]} : vector<2x128xf32> to vector<2x32xf32>
    %c1_84 = arith.constant 1 : index
    %c0_85 = arith.constant 0 : index
    %c0_86 = arith.constant 0 : index
    %355 = vector.load %arg13[%c1_84, %c0_85, %c0_86] : memref<2x2x32xf32, #tpu.memory_space<vmem>>, vector<1x2x32xf32>
    %356 = vector.shape_cast %355 : vector<1x2x32xf32> to vector<2x32xf32>
    %357 = vector.shape_cast %354 : vector<2x32xf32> to vector<1x2x32xf32>
    tpu.vector_store %arg13[%c1_84, %c0_85, %c0_86], %357 {strides = array<i32>} : memref<2x2x32xf32, #tpu.memory_space<vmem>>, vector<1x2x32xf32>,
    return
  }
}

</mosaic_0001>

<bundles_post_ra>
// kernel: tpu_custom_call.1
= control target key start
LH: loop header
LB: loop body
LE: loop exit
PB: predicated region body
PF: predicated region fallthrough
CT: control target
= control target key end

     0   :  { %19 = vsyncpa [#allocation3], 0  ;;  %s8349_s0 = inlined_call_operand.vmem [shape: s32[16,1], index: 0, kind: input, shape index: {}]   ;;  %s8350_s1 = inlined_call_operand.vmem [shape: f32[2,2,32], index: 1, kind: input, shape index: {}]   ;;  %s8351_s2 = inlined_call_operand.vmem [shape: f32[2,2,32], index: 2, kind: input, shape index: {}]   ;;  %s8352_s3 = inlined_call_operand.vmem [shape: f32[20,512], index: 3, kind: input, shape index: {}]   ;;  %s8353_s4 = inlined_call_operand.hbm [shape: f32[128,512], index: 4, kind: input, shape index: {}]   ;;  %s8354_s5 = inlined_call_operand.vmem [shape: f32[1,512], index: 5, kind: input, shape index: {}]   ;;  %s8355_s6 = inlined_call_operand.hbm [shape: f32[1,128,512], index: 6, kind: input, shape index: {}]   ;;  %s8356_s7 = inlined_call_operand.hbm [shape: f32[1,128,512], index: 7, kind: input, shape index: {}]   ;;  %s8357_s8 = inlined_call_operand.vmem [shape: f32[1,1,512], index: 8, kind: input, shape index: {}]   ;;  %s8358_s9 = inlined_call_operand.vmem [shape: f32[128,24], index: 9, kind: input, shape index: {}]   ;;  %s8359_s10 = inlined_call_operand.vmem [shape: f32[1,24], index: 10, kind: input, shape index: {}]   ;;  %s8360_s11 = inlined_call_operand.hbm [shape: f32[16,24], index: 11, kind: output, shape index: {0}]   ;;  %s8361_s12 = inlined_call_operand.hbm [shape: f32[2,2,32], index: 12, kind: output, shape index: {1}]   ;;  %s8362_s13 = inlined_call_operand.hbm [shape: f32[2,2,32], index: 13, kind: output, shape index: {2}]  }
   0x1   :  { %20 = vsyncpa [#allocation6], 0 }
   0x2   :  { %21 = vsyncpa [#allocation4], 0 }
   0x3   :  { %22 = vsyncpa [#allocation10], 0  ;;  %s6820_s25 = smov [#allocation5]   ;;  %s6821_s27 = smov [#allocation2]  }
   0x4   :  { %s50_s26 = sshll.u32 %s6820_s25, 4  ;;  %s36_s28 = sshll.u32 %s6821_s27, 4  ;;  %s51_s26 = int_to_ptr.vmem [resolvable:$true] %s50_s26  ;;  %s6903_s28 = int_to_ptr.vmem [resolvable:$true] %s36_s28 }
   0x5   :  { %s6680_s14 = scalar_lea.hbm %s8355_s6, 8192 }
   0x6   :  { %p6681_p0 = scmp.ne.s32.totalorder %s8355_s6, %s6680_s14  ;;  %p6684_p1 = scmp.lt.u32.totalorder %s6680_s14, %s8355_s6 }
   0x8   :  { %p6686_p2 = pnand %p6684_p1, %p6681_p0 }
   0xa   :  { %6689 = shalt.err (!%p6686_p2)
}
   0xb   :  { %s6690_s19 = scalar_lea.vmem %s51_s26, 8192  ;;  %p6695_p4 = scmp.lt.s32.totalorder %s51_s26, %s51_s26 }
   0xc   :  { %p6691_p3 = scmp.ne.s32.totalorder %s51_s26, %s6690_s19  ;;  %p6696_p5 = scmp.lt.s32.totalorder %s6690_s19, %s6690_s19 }
   0xe   :  { %p6697_p6 = por %p6696_p5, %p6695_p4 }
  0x10   :  { %p6698_p7 = pnand %p6697_p6, %p6691_p3 }
  0x12   :  { %6701 = shalt.err (!%p6698_p7)
}
  0x13   :  { %s6822_s20 = smov 512   ;;  %s6823_s21 = smov 32  }
  0x14   :  { %56 = dma.hbm_to_vmem [thread:$0]  %s8355_s6, 8192, %s51_s26, [#allocation6], %s6822_s20, %s6822_s20, %s6823_s21  }
  0x15   :  { %s6702_s27 = scalar_lea.hbm %s8353_s4, 8192 }
  0x16   :  { %p6703_p8 = scmp.ne.s32.totalorder %s8353_s4, %s6702_s27  ;;  %p6706_p9 = scmp.lt.u32.totalorder %s6702_s27, %s8353_s4 }
  0x18   :  { %p6708_p10 = pnand %p6706_p9, %p6703_p8 }
  0x1a   :  { %6711 = shalt.err (!%p6708_p10)
}
  0x1b   :  { %s6712_s16 = scalar_lea.vmem %s6903_s28, 8192  ;;  %p6717_p12 = scmp.lt.s32.totalorder %s6903_s28, %s6903_s28 }
  0x1c   :  { %p6713_p11 = scmp.ne.s32.totalorder %s6903_s28, %s6712_s16  ;;  %p6718_p13 = scmp.lt.s32.totalorder %s6712_s16, %s6712_s16 }
  0x1e   :  { %p6719_p0 = por %p6718_p13, %p6717_p12 }
  0x20   :  { %p6720_p1 = pnand %p6719_p0, %p6713_p11 }
  0x22   :  { %6723 = shalt.err (!%p6720_p1)
}
  0x23   :  { %42 = dma.hbm_to_vmem [thread:$0]  %s8353_s4, 8192, %s6903_s28, [#allocation3], %s6822_s20, %s6822_s20, %s6823_s21  }
  0x24   :  { %s6824_s17 = smov [#allocation7]   ;;  %s6724_s23 = scalar_lea.hbm %s8356_s7, 8192 }
  0x25   :  { %s62_s18 = sshll.u32 %s6824_s17, 4  ;;  %p6725_p2 = scmp.ne.s32.totalorder %s8356_s7, %s6724_s23  ;;  %s63_s18 = int_to_ptr.vmem [resolvable:$true] %s62_s18 }
  0x26   :  { %p6728_p3 = scmp.lt.u32.totalorder %s6724_s23, %s8356_s7 }
  0x28   :  { %p6730_p4 = pnand %p6728_p3, %p6725_p2 }
  0x2a   :  { %6733 = shalt.err (!%p6730_p4)
}
  0x2b   :  { %s6734_s30 = scalar_lea.vmem %s63_s18, 8192  ;;  %p6739_p6 = scmp.lt.s32.totalorder %s63_s18, %s63_s18 }
  0x2c   :  { %p6735_p5 = scmp.ne.s32.totalorder %s63_s18, %s6734_s30  ;;  %p6740_p7 = scmp.lt.s32.totalorder %s6734_s30, %s6734_s30 }
  0x2e   :  { %p6741_p8 = por %p6740_p7, %p6739_p6 }
  0x30   :  { %p6742_p9 = pnand %p6741_p8, %p6735_p5 }
  0x32   :  { %6745 = shalt.err (!%p6742_p9)
}
  0x33   :  { %68 = dma.hbm_to_vmem [thread:$0]  %s8356_s7, 8192, %s63_s18, [#allocation6], %s6822_s20, %s6822_s20, %s6823_s21  }
  0x34   :  { %6812 = dma.done.wait [#allocation3], 8192  }
  0x35   :  { %6813 = vsyncadd [#allocation3], 4294959104 }
  0x36   :  { %6814 = dma.done.wait [#allocation6], 16384  }
  0x37   :  { %6815 = vsyncadd [#allocation6], 4294950912  ;;  %v6825_v0 = vmov 0   ;;  %v8364_v1 = vmov 0.0   ;;  %v84_v2 = vld [vmem:[%s8349_s0] sm:$0xff]  ;;  %v85_v3 = vld [vmem:[%s8349_s0 + $0x8] sm:$0xff] }
  0x38   :  { %6423 = vset.pattern.permute.xlu0 %v6825_v0  ;;  %218 = vmatprep.mubr.f32.mxu1 %v8364_v1  ;;  %v309_v4 = vld [vmem:[#allocation2 + $0x8] sm:$0xff]  ;;  %v308_v6 = vld [vmem:[#allocation2] sm:$0xff]  ;;  %v101_v23 = vld [vmem:[%s8352_s3 + $0x8] sm:$0xff]  ;;  %vm141_vm0 = vcmask 1043456   ;;  %vm502_vm1 = vcmask 261120   ;;  %v8363_v0 = vlaneseq  ;;  %vm134_vm2 = vcmask 162816  }
  0x39   :  { %576 = vmatprep.mubr.f32.mxu0 %v8364_v1  ;;  %89 = vperm.xlu0 %6423, %v84_v2   ;;  %v313_v5 = vld [vmem:[#allocation2 + $0x28] sm:$0xff]  ;;  %v312_v7 = vld [vmem:[#allocation2 + $0x20] sm:$0xff]  ;;  %v105_v25 = vld [vmem:[%s8352_s3 + $0x28] sm:$0xff]  ;;  %vm4518_vm5 = vcmask 1041408   ;;  %vm4521_vm6 = vcmask 1045504   ;;  %vm4627_vm7 = vcmask 261126  }
  0x3a   :  { %v6963_v8 = vpack.c.bf16 %v313_v5, %v309_v4  ;;  %v6965_v9 = vpack.c.bf16 %v312_v7, %v308_v6  ;;  %v317_v10 = vld [vmem:[#allocation2 + $0x48] sm:$0xff]  ;;  %v316_v12 = vld [vmem:[#allocation2 + $0x40] sm:$0xff]  ;;  %v4802_v31 = vpack.c.bf16 %v105_v25, %v101_v23  ;;  %v109_v35 = vld [vmem:[%s8352_s3 + $0x48] sm:$0xf]  ;;  %v87_v2 = vand.u32 127, %v8363_v0 }
  0x3b   :  { %v321_v11 = vld [vmem:[#allocation2 + $0x68] sm:$0xff]  ;;  %v320_v14 = vld [vmem:[#allocation2 + $0x60] sm:$0xff]  ;;  %v106_v4 = vld [vmem:[%s8352_s3 + $0x30] sm:$0xff]  ;;  %vm4631_vm8 = vcmask 254976  }
  0x3c   :  { %8564 = vst [vmem:[#allocation16_spill] sm:$0xff] %v6963_v8  ;;  %v6967_v13 = vpack.c.bf16 %v321_v11, %v317_v10  ;;  %v325_v15 = vld [vmem:[#allocation2 + $0x88] sm:$0xff]  ;;  %4811 = vmatprep.subr.bf16.mxu0 %v6963_v8  ;;  %v6971_v17 = vpack.c.bf16 %v320_v14, %v316_v12  ;;  %v324_v19 = vld [vmem:[#allocation2 + $0x80] sm:$0xff]  ;;  %4803 = vmatprep.subr.bf16.mxu1 %v4802_v31  ;;  %v311_v11 = vld [vmem:[#allocation2 + $0x18] sm:$0xff] }
  0x3d   :  { %v329_v16 = vld [vmem:[#allocation2 + $0xa8] sm:$0xff]  ;;  %92 = vperm.xlu0 %6423, %v85_v3   ;;  %4813 = vmatpush1.bf16.msra.mxu0 %v6965_v9  ;;  %v328_v20 = vld [vmem:[#allocation2 + $0xa0] sm:$0xff]  ;;  %v102_v3 = vld [vmem:[%s8352_s3 + $0x10] sm:$0xff] }
  0x3e   :  { %4815 = vmatprep.subr.bf16.mxu0 %v6967_v13  ;;  %v6974_v18 = vpack.c.bf16 %v329_v16, %v325_v15  ;;  %v333_v21 = vld [vmem:[#allocation2 + $0xc8] sm:$0xff]  ;;  %v6980_v24 = vpack.c.bf16 %v328_v20, %v324_v19  ;;  %v332_v29 = vld [vmem:[#allocation2 + $0xc0] sm:$0xff]  ;;  %v4808_v6 = vpack.c.bf16 %v106_v4, %v102_v3  ;;  %v315_v12 = vld [vmem:[#allocation2 + $0x38] sm:$0xff] }
  0x3f   :  { %v337_v22 = vld [vmem:[#allocation2 + $0xe8] sm:$0xff]  ;;  %v336_v30 = vld [vmem:[#allocation2 + $0xe0] sm:$0xff]  ;;  %v110_v15 = vld [vmem:[%s8352_s3 + $0x50] sm:$0xf]  ;;  %v7062_v16 = vpack.c.bf16 %v315_v12, %v311_v11 }
  0x40   :  { %8565 = vst [vmem:[#allocation17_spill] sm:$0xff] %v6974_v18  ;;  %8566 = vst [vmem:[#allocation18_spill] sm:$0xff] %v6980_v24  ;;  %v100_v26 = vld [vmem:[%s8352_s3] sm:$0xff]  ;;  %v6992_v28 = vpack.c.bf16 %v337_v22, %v333_v21  ;;  %v103_v36 = vld [vmem:[%s8352_s3 + $0x18] sm:$0xff]  ;;  %v7001_v37 = vpack.c.bf16 %v336_v30, %v332_v29 }
  0x41   :  { %4817 = vmatpush1.bf16.msra.mxu0 %v6971_v17  ;;  %v104_v27 = vld [vmem:[%s8352_s3 + $0x20] sm:$0xff]  ;;  %v107_v38 = vld [vmem:[%s8352_s3 + $0x38] sm:$0xff]  ;;  %8577 = vst [vmem:[#allocation29_spill] sm:$0xff] %v7062_v16  ;;  %v310_v19 = vld [vmem:[#allocation2 + $0x10] sm:$0xff] }
  0x42   :  { %4819 = vmatprep.subr.bf16.mxu0 %v6974_v18  ;;  %8567 = vst [vmem:[#allocation19_spill] sm:$0xff] %v6992_v28  ;;  %v4804_v32 = vpack.c.bf16 %v104_v27, %v100_v26  ;;  %v341_v33 = vld [vmem:[#allocation2 + $0x108] sm:$0xff]  ;;  %8568 = vst [vmem:[#allocation20_spill] sm:$0xff] %v7001_v37  ;;  %v340_v40 = vld [vmem:[#allocation2 + $0x100] sm:$0xff]  ;;  %v4806_v43 = vpack.c.bf16 %v107_v38, %v103_v36 }
  0x43   :  { %v345_v34 = vld [vmem:[#allocation2 + $0x128] sm:$0xff]  ;;  %v344_v41 = vld [vmem:[#allocation2 + $0x120] sm:$0xff]  ;;  %v314_v20 = vld [vmem:[#allocation2 + $0x30] sm:$0xff] }
  0x44   :  { %4805 = vmatpush1.bf16.msra.mxu1 %v4804_v32  ;;  %v7007_v39 = vpack.c.bf16 %v345_v34, %v341_v33  ;;  %v108_v42 = vld [vmem:[%s8352_s3 + $0x40] sm:$0xf]  ;;  %v7014_v46 = vpack.c.bf16 %v344_v41, %v340_v40  ;;  %v348_v48 = vld [vmem:[#allocation2 + $0x140] sm:$0xff]  ;;  %v319_v22 = vld [vmem:[#allocation2 + $0x58] sm:$0xff]  ;;  %v7068_v25 = vpack.c.bf16 %v314_v20, %v310_v19 }
  0x45   :  { %4821 = vmatpush1.bf16.msra.mxu0 %v6980_v24  ;;  %4686 = vmatprep.subr.msk.mxu1 %vm141_vm0, %v109_v35  ;;  %v349_v44 = vld [vmem:[#allocation2 + $0x148] sm:$0xff]  ;;  %v352_v49 = vld [vmem:[#allocation2 + $0x160] sm:$0xff]  ;;  %v323_v23 = vld [vmem:[#allocation2 + $0x78] sm:$0xff] }
  0x46   :  { %4823 = vmatprep.subr.bf16.mxu0 %v6992_v28  ;;  %8569 = vst [vmem:[#allocation21_spill] sm:$0xff] %v7007_v39  ;;  %v353_v45 = vld [vmem:[#allocation2 + $0x168] sm:$0xff]  ;;  %8570 = vst [vmem:[#allocation22_spill] sm:$0xff] %v7014_v46  ;;  %v7021_v52 = vpack.c.bf16 %v352_v49, %v348_v48  ;;  %v356_v54 = vld [vmem:[#allocation2 + $0x180] sm:$0xff]  ;;  %v7071_v26 = vpack.c.bf16 %v323_v23, %v319_v22 }
  0x47   :  { %v7018_v47 = vpack.c.bf16 %v353_v45, %v349_v44  ;;  %v357_v50 = vld [vmem:[#allocation2 + $0x188] sm:$0xff]  ;;  %v360_v55 = vld [vmem:[#allocation2 + $0x1a0] sm:$0xff]  ;;  %v318_v27 = vld [vmem:[#allocation2 + $0x50] sm:$0xff] }
  0x48   :  { %4687 = vmatpush1.msk.msra.mxu1 %vm141_vm0, %v108_v42  ;;  %v361_v51 = vld [vmem:[#allocation2 + $0x1a8] sm:$0xff]  ;;  %8572 = vst [vmem:[#allocation24_spill] sm:$0xff] %v7021_v52  ;;  %v7027_v58 = vpack.c.bf16 %v360_v55, %v356_v54  ;;  %v364_v60 = vld [vmem:[#allocation2 + $0x1c0] sm:$0xff]  ;;  %v322_v29 = vld [vmem:[#allocation2 + $0x70] sm:$0xff] }
  0x49   :  { %4825 = vmatpush1.bf16.msra.mxu0 %v7001_v37  ;;  %8571 = vst [vmem:[#allocation23_spill] sm:$0xff] %v7018_v47  ;;  %4807 = vmatprep.subr.bf16.mxu1 %v4806_v43  ;;  %v7024_v53 = vpack.c.bf16 %v361_v51, %v357_v50  ;;  %v365_v56 = vld [vmem:[#allocation2 + $0x1c8] sm:$0xff]  ;;  %v368_v61 = vld [vmem:[#allocation2 + $0x1e0] sm:$0xff]  ;;  %v327_v30 = vld [vmem:[#allocation2 + $0x98] sm:$0xff]  ;;  %v7076_v32 = vpack.c.bf16 %v322_v29, %v318_v27 }
  0x4a   :  { %4827 = vmatprep.subr.bf16.mxu0 %v7007_v39  ;;  %v369_v57 = vld [vmem:[#allocation2 + $0x1e8] sm:$0xff]  ;;  %8574 = vst [vmem:[#allocation26_spill] sm:$0xff] %v7027_v58  ;;  %v7033_v62 = vpack.c.bf16 %v368_v61, %v364_v60  ;;  %v111_v10 = vld [vmem:[%s8352_s3 + $0x58] sm:$0xf]  ;;  %v331_v31 = vld [vmem:[#allocation2 + $0xb8] sm:$0xff] }
  0x4b   :  { %8573 = vst [vmem:[#allocation25_spill] sm:$0xff] %v7024_v53  ;;  %v7030_v59 = vpack.c.bf16 %v369_v57, %v365_v56  ;;  %v7040_v63 = vld [vmem:[%s8350_s1] sm:$0x3]  ;;  %v7079_v33 = vpack.c.bf16 %v331_v31, %v327_v30  ;;  %v326_v34 = vld [vmem:[#allocation2 + $0x90] sm:$0xff]  ;;  %v335_v36 = vld [vmem:[#allocation2 + $0xd8] sm:$0xff] }
  0x4c   :  { %8576 = vst [vmem:[#allocation28_spill] sm:$0xff] %v7033_v62  ;;  %v330_v35 = vld [vmem:[#allocation2 + $0xb0] sm:$0xff]  ;;  %v339_v38 = vld [vmem:[#allocation2 + $0xf8] sm:$0xff]  ;;  %v441_v22 = vld [vmem:[#allocation7 + $0x28] sm:$0xff] }
  0x4d   :  { %4829 = vmatpush1.bf16.msra.mxu0 %v7014_v46  ;;  %8575 = vst [vmem:[#allocation27_spill] sm:$0xff] %v7030_v59  ;;  %8578 = vst [vmem:[#allocation30_spill] sm:$0xff] %v7079_v33  ;;  %v7083_v40 = vpack.c.bf16 %v330_v35, %v326_v34  ;;  %v7087_v41 = vpack.c.bf16 %v339_v38, %v335_v36  ;;  %v334_v42 = vld [vmem:[#allocation2 + $0xd0] sm:$0xff]  ;;  %v343_v44 = vld [vmem:[#allocation2 + $0x118] sm:$0xff] }
  0x4e   :  { %4831 = vmatprep.subr.bf16.mxu0 %v7018_v47  ;;  %v338_v43 = vld [vmem:[#allocation2 + $0xf0] sm:$0xff]  ;;  %v347_v45 = vld [vmem:[#allocation2 + $0x138] sm:$0xff]  ;;  %v436_v30 = vld [vmem:[#allocation7] sm:$0xff] }
  0x4f   :  { %8579 = vst [vmem:[#allocation31_spill] sm:$0xff] %v7083_v40  ;;  %8580 = vst [vmem:[#allocation32_spill] sm:$0xff] %v7087_v41  ;;  %v7090_v48 = vpack.c.bf16 %v338_v43, %v334_v42  ;;  %v7093_v49 = vpack.c.bf16 %v347_v45, %v343_v44  ;;  %v342_v50 = vld [vmem:[#allocation2 + $0x110] sm:$0xff]  ;;  %v351_v54 = vld [vmem:[#allocation2 + $0x158] sm:$0xff] }
  0x50   :  { %v346_v51 = vld [vmem:[#allocation2 + $0x130] sm:$0xff]  ;;  %v355_v55 = vld [vmem:[#allocation2 + $0x178] sm:$0xff]  ;;  %v440_v31 = vld [vmem:[#allocation7 + $0x20] sm:$0xff] }
  0x51   :  { %4833 = vmatpush1.bf16.msra.mxu0 %v7021_v52  ;;  %8581 = vst [vmem:[#allocation33_spill] sm:$0xff] %v7090_v48  ;;  %8582 = vst [vmem:[#allocation34_spill] sm:$0xff] %v7093_v49  ;;  %v7096_v56 = vpack.c.bf16 %v346_v51, %v342_v50  ;;  %v7099_v57 = vpack.c.bf16 %v355_v55, %v351_v54  ;;  %v350_v60 = vld [vmem:[#allocation2 + $0x150] sm:$0xff]  ;;  %v363_v3 = vld [vmem:[#allocation2 + $0x1b8] sm:$0xff]  ;;  %v7125_v35 = vpack.c.bf16 %v440_v31, %v436_v30 }
  0x52   :  { %4835 = vmatprep.subr.bf16.mxu0 %v7024_v53  ;;  %v354_v61 = vld [vmem:[#allocation2 + $0x170] sm:$0xff]  ;;  %v371_v11 = vld [vmem:[#allocation2 + $0x1f8] sm:$0xff]  ;;  %v449_v43 = vld [vmem:[#allocation7 + $0x68] sm:$0xff] }
  0x53   :  { %8583 = vst [vmem:[#allocation35_spill] sm:$0xff] %v7096_v56  ;;  %8584 = vst [vmem:[#allocation36_spill] sm:$0xff] %v7099_v57  ;;  %v7102_v4 = vpack.c.bf16 %v354_v61, %v350_v60  ;;  %v370_v19 = vld [vmem:[#allocation2 + $0x1f0] sm:$0xff]  ;;  %v439_v23 = vld [vmem:[#allocation7 + $0x18] sm:$0xff] }
  0x54   :  { %v443_v29 = vld [vmem:[#allocation7 + $0x38] sm:$0xff]  ;;  %8592 = vst [vmem:[#allocation44_spill] sm:$0xff] %v7125_v35  ;;  %v438_v36 = vld [vmem:[#allocation7 + $0x10] sm:$0xff]  ;;  %v444_v51 = vld [vmem:[#allocation7 + $0x40] sm:$0xff] }
  0x55   :  { %4837 = vmatpush1.bf16.msra.mxu0 %v7027_v58  ;;  %8585 = vst [vmem:[#allocation37_spill] sm:$0xff] %v7102_v4  ;;  %v7123_v34 = vpack.c.bf16 %v443_v29, %v439_v23  ;;  %v442_v38 = vld [vmem:[#allocation7 + $0x30] sm:$0xff]  ;;  %v447_v44 = vld [vmem:[#allocation7 + $0x58] sm:$0xff]  ;;  %v448_v54 = vld [vmem:[#allocation7 + $0x60] sm:$0xff] }
  0x56   :  { %4839 = vmatprep.subr.bf16.mxu0 %v7030_v59  ;;  %v7128_v42 = vpack.c.bf16 %v442_v38, %v438_v36  ;;  %v451_v50 = vld [vmem:[#allocation7 + $0x78] sm:$0xff]  ;;  %v7137_v60 = vpack.c.bf16 %v448_v54, %v444_v51  ;;  %v446_v61 = vld [vmem:[#allocation7 + $0x50] sm:$0xff]  ;;  %v461_v36 = vld [vmem:[#allocation7 + $0xc8] sm:$0xff] }
  0x57   :  { %8591 = vst [vmem:[#allocation43_spill] sm:$0xff] %v7123_v34  ;;  %v7135_v55 = vpack.c.bf16 %v451_v50, %v447_v44  ;;  %v454_v29 = vld [vmem:[#allocation7 + $0x90] sm:$0xff]  ;;  %v465_v38 = vld [vmem:[#allocation7 + $0xe8] sm:$0xff]  ;;  %v467_v44 = vld [vmem:[#allocation7 + $0xf8] sm:$0xff] }
  0x58   :  { %8593 = vst [vmem:[#allocation45_spill] sm:$0xff] %v7128_v42  ;;  %8596 = vst [vmem:[#allocation48_spill] sm:$0xff] %v7137_v60  ;;  %v458_v30 = vld [vmem:[#allocation7 + $0xb0] sm:$0xff]  ;;  %v460_v50 = vld [vmem:[#allocation7 + $0xc0] sm:$0xff] }
  0x59   :  { %4841 = vmatpush1.bf16.msra.mxu0 %v7033_v62  ;;  %8595 = vst [vmem:[#allocation47_spill] sm:$0xff] %v7135_v55  ;;  %v7152_v31 = vpack.c.bf16 %v458_v30, %v454_v29  ;;  %v464_v51 = vld [vmem:[#allocation7 + $0xe0] sm:$0xff]  ;;  %v475_v29 = vld [vmem:[#allocation7 + $0x138] sm:$0xff] }
  0x5a   :  { %v468_v30 = vld [vmem:[#allocation7 + $0x100] sm:$0xff] }
  0x5b   :  { %8601 = vst [vmem:[#allocation53_spill] sm:$0xff] %v7152_v31  ;;  %v480_v0 = vld [vmem:[#allocation7 + $0x160] sm:$0xff] }
  0x5c   :  { %4696 = vmatmul.mubr.msk.f32.vlgmr.msra.gmra.mrb[0].mxu0 %vm502_vm1, %v7040_v63 }
  0x5d   :  { %746 = vmatprep.mubr.f32.mxu0 %v8364_v1 }
  0xb8   :  { %v90_v5 = vpop.permute.xlu0 %89 }
  0xb9   :  { %vm94_vm3 = vcmp.eq.s32.totalorder %v90_v5, %v87_v2 }
  0xba   :  { %v4684_v7 = vsel %vm94_vm3, 1.0, %v8364_v1 }
  0xbb   :  { %4688 = vmatmul.mubr.msk.f32.vlgmr.msra.gmra.mrb[0].mxu1 %vm134_vm2, %v4684_v7 }
  0xbc   :  { %4809 = vmatpush1.bf16.msra.mxu1 %v4808_v6  ;;  %v93_v14 = vpop.permute.xlu0 %92  ;;  %224 = vmatprep.mubr.f32.mxu1 %v8364_v1  ;;  %v358_v6 = vld [vmem:[#allocation2 + $0x190] sm:$0xff] }
  0xbd   :  { %vm95_vm4 = vcmp.eq.s32.totalorder %v93_v14, %v87_v2  ;;  %4690 = vmatprep.subr.msk.mxu1 %vm141_vm0, %v111_v10  ;;  %v359_v2 = vld [vmem:[#allocation2 + $0x198] sm:$0xff] }
  0xbe   :  { %v4685_v21 = vsel %vm95_vm4, 1.0, %v8364_v1  ;;  %v7105_v5 = vpack.c.bf16 %v363_v3, %v359_v2  ;;  %v367_v10 = vld [vmem:[#allocation2 + $0x1d8] sm:$0xff]  ;;  %v450_v2 = vld [vmem:[#allocation7 + $0x70] sm:$0xff] }
  0xbf   :  { %4689 = vmatmul.mubr.msk.f32.gmra.mrb[2].mxu1 %vm134_vm2, %v4685_v21  ;;  %v7111_v14 = vpack.c.bf16 %v371_v11, %v367_v10  ;;  %v7140_v3 = vpack.c.bf16 %v450_v2, %v446_v61  ;;  %v455_v10 = vld [vmem:[#allocation7 + $0x98] sm:$0xff]  ;;  %v7161_v61 = vpack.c.bf16 %v464_v51, %v460_v50  ;;  %v462_v2 = vld [vmem:[#allocation7 + $0xd0] sm:$0xff] }
  0xc0   :  { %4691 = vmatpush1.msk.msra.mxu1 %vm141_vm0, %v110_v15  ;;  %295 = vmatprep.mubr.f32.mxu1 %v8364_v1  ;;  %8586 = vst [vmem:[#allocation38_spill] sm:$0xff] %v7105_v5  ;;  %v366_v15 = vld [vmem:[#allocation2 + $0x1d0] sm:$0xff] }
  0xc1   :  { %4843 = vmatprep.subr.bf16.mxu1 %v7062_v16  ;;  %8588 = vst [vmem:[#allocation40_spill] sm:$0xff] %v7111_v14  ;;  %v7114_v20 = vpack.c.bf16 %v370_v19, %v366_v15  ;;  %8597 = vst [vmem:[#allocation49_spill] sm:$0xff] %v7140_v3  ;;  %v459_v15 = vld [vmem:[#allocation7 + $0xb8] sm:$0xff]  ;;  %v452_v19 = vld [vmem:[#allocation7 + $0x80] sm:$0xff] }
  0xc2   :  { %8604 = vst [vmem:[#allocation56_spill] sm:$0xff] %v7161_v61 }
  0xc3   :  { %4692 = vmatmul.mubr.msk.f32.vlgmr.msra.gmra.mrb[4].mxu1 %vm134_vm2, %v4684_v7  ;;  %v362_v7 = vld [vmem:[#allocation2 + $0x1b0] sm:$0xff]  ;;  %8589 = vst [vmem:[#allocation41_spill] sm:$0xff] %v7114_v20 }
  0xc4   :  { %4845 = vmatpush1.bf16.msra.mxu1 %v7068_v25  ;;  %301 = vmatprep.mubr.f32.mxu1 %v8364_v1  ;;  %v7108_v12 = vpack.c.bf16 %v362_v7, %v358_v6  ;;  %v453_v6 = vld [vmem:[#allocation7 + $0x88] sm:$0xff] }
  0xc5   :  { %4847 = vmatprep.subr.bf16.mxu1 %v7071_v26  ;;  %v457_v7 = vld [vmem:[#allocation7 + $0xa8] sm:$0xff] }
  0xc6   :  { %8587 = vst [vmem:[#allocation39_spill] sm:$0xff] %v7108_v12  ;;  %v7145_v11 = vpack.c.bf16 %v457_v7, %v453_v6  ;;  %v466_v6 = vld [vmem:[#allocation7 + $0xf0] sm:$0xff] }
  0xc7   :  { %4693 = vmatmul.mubr.msk.f32.gmra.mrb[6].mxu1 %vm134_vm2, %v4685_v21  ;;  %v437_v21 = vld [vmem:[#allocation7 + $0x8] sm:$0xff]  ;;  %v7164_v7 = vpack.c.bf16 %v466_v6, %v462_v2 }
  0xc8   :  { %4849 = vmatpush1.bf16.msra.mxu1 %v7076_v32  ;;  %647 = vmatprep.mubr.f32.mxu1 %v8364_v1  ;;  %v7121_v27 = vpack.c.bf16 %v441_v22, %v437_v21  ;;  %8598 = vst [vmem:[#allocation50_spill] sm:$0xff] %v7145_v11  ;;  %v456_v21 = vld [vmem:[#allocation7 + $0xa0] sm:$0xff]  ;;  %v7147_v22 = vpack.c.bf16 %v459_v15, %v455_v10  ;;  %v469_v10 = vld [vmem:[#allocation7 + $0x108] sm:$0xff] }
  0xc9   :  { %4851 = vmatprep.subr.bf16.mxu1 %v7079_v33  ;;  %v7149_v23 = vpack.c.bf16 %v456_v21, %v452_v19  ;;  %8605 = vst [vmem:[#allocation57_spill] sm:$0xff] %v7164_v7  ;;  %v473_v15 = vld [vmem:[#allocation7 + $0x128] sm:$0xff]  ;;  %v471_v21 = vld [vmem:[#allocation7 + $0x118] sm:$0xff] }
  0xca   :  { %8590 = vst [vmem:[#allocation42_spill] sm:$0xff] %v7121_v27  ;;  %4875 = vmatprep.subr.bf16.mxu0 %v7121_v27  ;;  %8599 = vst [vmem:[#allocation51_spill] sm:$0xff] %v7147_v22  ;;  %v7169_v19 = vpack.c.bf16 %v473_v15, %v469_v10  ;;  %v477_v2 = vld [vmem:[#allocation7 + $0x148] sm:$0xff]  ;;  %v479_v10 = vld [vmem:[#allocation7 + $0x158] sm:$0xff] }
  0xcb   :  { %4877 = vmatpush1.bf16.msra.mxu0 %v7125_v35  ;;  %8600 = vst [vmem:[#allocation52_spill] sm:$0xff] %v7149_v23  ;;  %v481_v6 = vld [vmem:[#allocation7 + $0x168] sm:$0xff] }
  0xcc   :  { %4853 = vmatpush1.bf16.msra.mxu1 %v7083_v40  ;;  %8606 = vst [vmem:[#allocation58_spill] sm:$0xff] %v7169_v19  ;;  %v7181_v15 = vpack.c.bf16 %v481_v6, %v477_v2  ;;  %v491_v6 = vld [vmem:[#allocation7 + $0x1b8] sm:$0xff] }
  0xcd   :  { %4855 = vmatprep.subr.bf16.mxu1 %v7087_v41 }
  0xce   :  { %8610 = vst [vmem:[#allocation62_spill] sm:$0xff] %v7181_v15 }
  0xd0   :  { %4857 = vmatpush1.bf16.msra.mxu1 %v7090_v48 }
  0xd1   :  { %4859 = vmatprep.subr.bf16.mxu1 %v7093_v49 }
  0xd4   :  { %4861 = vmatpush1.bf16.msra.mxu1 %v7096_v56 }
  0xd5   :  { %4863 = vmatprep.subr.bf16.mxu1 %v7099_v57 }
  0xd8   :  { %4865 = vmatpush1.bf16.msra.mxu1 %v7102_v4 }
  0xd9   :  { %4867 = vmatprep.subr.bf16.mxu1 %v7105_v5 }
  0xdc   :  { %4869 = vmatpush1.bf16.msra.mxu1 %v7108_v12 }
  0xdd   :  { %4871 = vmatprep.subr.bf16.mxu1 %v7111_v14 }
  0xe0   :  { %4873 = vmatpush1.bf16.msra.mxu1 %v7114_v20 }
  0xe1   :  { %4907 = vmatprep.subr.bf16.mxu1 %v7123_v34 }
  0xe3   :  { %4697 = vmatmul.mubr.msk.f32.vlgmr.msra.gmra.mrb[8].mxu1 %vm502_vm1, %v7040_v63  ;;  %v445_v63 = vld [vmem:[#allocation7 + $0x48] sm:$0xff] }
  0xe4   :  { %817 = vmatprep.mubr.f32.mxu1 %v8364_v1  ;;  %4909 = vmatpush1.bf16.msra.mxu1 %v7128_v42  ;;  %v7133_v45 = vpack.c.bf16 %v449_v43, %v445_v63  ;;  %v463_v63 = vld [vmem:[#allocation7 + $0xd8] sm:$0xff]  ;;  %v7157_v43 = vpack.c.bf16 %v465_v38, %v461_v36  ;;  %v7171_v36 = vpack.c.bf16 %v475_v29, %v471_v21  ;;  %v472_v38 = vld [vmem:[#allocation7 + $0x120] sm:$0xff] }
  0xe5   :  { %4911 = vmatprep.subr.bf16.mxu1 %v7135_v55  ;;  %v7159_v54 = vpack.c.bf16 %v467_v44, %v463_v63  ;;  %v470_v63 = vld [vmem:[#allocation7 + $0x110] sm:$0xff]  ;;  %v7174_v50 = vpack.c.bf16 %v472_v38, %v468_v30  ;;  %v483_v21 = vld [vmem:[#allocation7 + $0x178] sm:$0xff]  ;;  %v476_v29 = vld [vmem:[#allocation7 + $0x140] sm:$0xff] }
  0xe6   :  { %8594 = vst [vmem:[#allocation46_spill] sm:$0xff] %v7133_v45  ;;  %4879 = vmatprep.subr.bf16.mxu0 %v7133_v45  ;;  %8602 = vst [vmem:[#allocation54_spill] sm:$0xff] %v7157_v43  ;;  %v474_v44 = vld [vmem:[#allocation7 + $0x130] sm:$0xff]  ;;  %v7183_v1 = vpack.c.bf16 %v483_v21, %v479_v10  ;;  %v7185_v30 = vpack.c.bf16 %v480_v0, %v476_v29  ;;  %v484_v0 = vld [vmem:[#allocation7 + $0x180] sm:$0xff] }
  0xe7   :  { %4881 = vmatpush1.bf16.msra.mxu0 %v7137_v60  ;;  %8603 = vst [vmem:[#allocation55_spill] sm:$0xff] %v7159_v54  ;;  %8607 = vst [vmem:[#allocation59_spill] sm:$0xff] %v7171_v36  ;;  %v7176_v51 = vpack.c.bf16 %v474_v44, %v470_v63  ;;  %v478_v38 = vld [vmem:[#allocation7 + $0x150] sm:$0xff]  ;;  %v488_v10 = vld [vmem:[#allocation7 + $0x1a0] sm:$0xff] }
  0xe8   :  { %4913 = vmatpush1.bf16.msra.mxu1 %v7140_v3  ;;  %4883 = vmatprep.subr.bf16.mxu0 %v7145_v11  ;;  %8608 = vst [vmem:[#allocation60_spill] sm:$0xff] %v7174_v50  ;;  %8611 = vst [vmem:[#allocation63_spill] sm:$0xff] %v7183_v1  ;;  %v482_v63 = vld [vmem:[#allocation7 + $0x170] sm:$0xff]  ;;  %v7197_v29 = vpack.c.bf16 %v488_v10, %v484_v0  ;;  %v496_v0 = vld [vmem:[#allocation7 + $0x1e0] sm:$0xff] }
  0xe9   :  { %4915 = vmatprep.subr.bf16.mxu1 %v7147_v22  ;;  %8609 = vst [vmem:[#allocation61_spill] sm:$0xff] %v7176_v51  ;;  %8612 = vst [vmem:[#allocation64_spill] sm:$0xff] %v7185_v30  ;;  %v7188_v44 = vpack.c.bf16 %v482_v63, %v478_v38  ;;  %v486_v38 = vld [vmem:[#allocation7 + $0x190] sm:$0xff] }
  0xea   :  { %8616 = vst [vmem:[#allocation68_spill] sm:$0xff] %v7197_v29  ;;  %v490_v63 = vld [vmem:[#allocation7 + $0x1b0] sm:$0xff] }
  0xeb   :  { %4885 = vmatpush1.bf16.msra.mxu0 %v7149_v23  ;;  %8613 = vst [vmem:[#allocation65_spill] sm:$0xff] %v7188_v44 }
  0xec   :  { %4917 = vmatpush1.bf16.msra.mxu1 %v7152_v31  ;;  %4887 = vmatprep.subr.bf16.mxu0 %v7157_v43  ;;  %v424_v43 = vld [vmem:[#allocation5 + $0x1a0] sm:$0xff] }
  0xed   :  { %4919 = vmatprep.subr.bf16.mxu1 %v7159_v54  ;;  %v425_v54 = vld [vmem:[#allocation5 + $0x1a8] sm:$0xff] }
  0xef   :  { %4889 = vmatpush1.bf16.msra.mxu0 %v7161_v61 }
  0xf0   :  { %4921 = vmatpush1.bf16.msra.mxu1 %v7164_v7  ;;  %4891 = vmatprep.subr.bf16.mxu0 %v7169_v19  ;;  %v373_v19 = vld [vmem:[#allocation5 + $0x8] sm:$0xff] }
  0xf1   :  { %4923 = vmatprep.subr.bf16.mxu1 %v7171_v36  ;;  %v489_v36 = vld [vmem:[#allocation7 + $0x1a8] sm:$0xff] }
  0xf3   :  { %4893 = vmatpush1.bf16.msra.mxu0 %v7174_v50  ;;  %v485_v50 = vld [vmem:[#allocation7 + $0x188] sm:$0xff] }
  0xf4   :  { %4925 = vmatpush1.bf16.msra.mxu1 %v7176_v51  ;;  %4895 = vmatprep.subr.bf16.mxu0 %v7181_v15  ;;  %v487_v51 = vld [vmem:[#allocation7 + $0x198] sm:$0xff]  ;;  %v7193_v2 = vpack.c.bf16 %v489_v36, %v485_v50  ;;  %v497_v15 = vld [vmem:[#allocation7 + $0x1e8] sm:$0xff] }
  0xf5   :  { %4927 = vmatprep.subr.bf16.mxu1 %v7183_v1  ;;  %v7195_v21 = vpack.c.bf16 %v491_v6, %v487_v51  ;;  %v7200_v1 = vpack.c.bf16 %v490_v63, %v486_v38  ;;  %v499_v51 = vld [vmem:[#allocation7 + $0x1f8] sm:$0xff]  ;;  %v492_v6 = vld [vmem:[#allocation7 + $0x1c0] sm:$0xff] }
  0xf6   :  { %8614 = vst [vmem:[#allocation66_spill] sm:$0xff] %v7193_v2  ;;  %v7213_v63 = vpack.c.bf16 %v496_v0, %v492_v6  ;;  %v374_v6 = vld [vmem:[#allocation5 + $0x10] sm:$0xff]  ;;  %v385_v0 = vld [vmem:[#allocation5 + $0x68] sm:$0xff] }
  0xf7   :  { %4897 = vmatpush1.bf16.msra.mxu0 %v7185_v30  ;;  %8615 = vst [vmem:[#allocation67_spill] sm:$0xff] %v7195_v21  ;;  %8617 = vst [vmem:[#allocation69_spill] sm:$0xff] %v7200_v1  ;;  %v493_v30 = vld [vmem:[#allocation7 + $0x1c8] sm:$0xff] }
  0xf8   :  { %4929 = vmatpush1.bf16.msra.mxu1 %v7188_v44  ;;  %4899 = vmatprep.subr.bf16.mxu0 %v7193_v2  ;;  %v495_v44 = vld [vmem:[#allocation7 + $0x1d8] sm:$0xff]  ;;  %v7207_v50 = vpack.c.bf16 %v497_v15, %v493_v30  ;;  %8620 = vst [vmem:[#allocation72_spill] sm:$0xff] %v7213_v63  ;;  %v498_v2 = vld [vmem:[#allocation7 + $0x1f0] sm:$0xff] }
  0xf9   :  { %4931 = vmatprep.subr.bf16.mxu1 %v7195_v21  ;;  %v7211_v38 = vpack.c.bf16 %v499_v51, %v495_v44  ;;  %v494_v21 = vld [vmem:[#allocation7 + $0x1d0] sm:$0xff]  ;;  %v379_v15 = vld [vmem:[#allocation5 + $0x38] sm:$0xff]  ;;  %v372_v44 = vld [vmem:[#allocation5] sm:$0xff] }
  0xfa   :  { %8618 = vst [vmem:[#allocation70_spill] sm:$0xff] %v7207_v50  ;;  %v7216_v7 = vpack.c.bf16 %v498_v2, %v494_v21  ;;  %v376_v51 = vld [vmem:[#allocation5 + $0x20] sm:$0xff]  ;;  %v378_v21 = vld [vmem:[#allocation5 + $0x30] sm:$0xff] }
  0xfb   :  { %4901 = vmatpush1.bf16.msra.mxu0 %v7197_v29  ;;  %8619 = vst [vmem:[#allocation71_spill] sm:$0xff] %v7211_v38  ;;  %v377_v29 = vld [vmem:[#allocation5 + $0x28] sm:$0xff]  ;;  %v7227_v2 = vpack.c.bf16 %v376_v51, %v372_v44  ;;  %v387_v51 = vld [vmem:[#allocation5 + $0x78] sm:$0xff] }
  0xfc   :  { %4933 = vmatpush1.bf16.msra.mxu1 %v7200_v1  ;;  %4903 = vmatprep.subr.bf16.mxu0 %v7207_v50  ;;  %8621 = vst [vmem:[#allocation73_spill] sm:$0xff] %v7216_v7  ;;  %v375_v1 = vld [vmem:[#allocation5 + $0x18] sm:$0xff]  ;;  %v7219_v30 = vpack.c.bf16 %v377_v29, %v373_v19  ;;  %v4694_v19 = vld [vmem:[%s8350_s1 + $0x2] sm:$0x3] }
  0xfd   :  { %4935 = vmatprep.subr.bf16.mxu1 %v7211_v38  ;;  %v7221_v61 = vpack.c.bf16 %v379_v15, %v375_v1  ;;  %8624 = vst [vmem:[#allocation76_spill] sm:$0xff] %v7227_v2  ;;  %v7232_v1 = vpack.c.bf16 %v378_v21, %v374_v6  ;;  %v381_v29 = vld [vmem:[#allocation5 + $0x48] sm:$0xff]  ;;  %v383_v15 = vld [vmem:[#allocation5 + $0x58] sm:$0xff]  ;;  %v382_v21 = vld [vmem:[#allocation5 + $0x50] sm:$0xff]  ;;  %v8629_v38 = vmov 0.0  }
  0xfe   :  { %8622 = vst [vmem:[#allocation74_spill] sm:$0xff] %v7219_v30  ;;  %v7238_v44 = vpack.c.bf16 %v385_v0, %v381_v29  ;;  %v389_v29 = vld [vmem:[#allocation5 + $0x88] sm:$0xff] }
  0xff   :  { %8623 = vst [vmem:[#allocation75_spill] sm:$0xff] %v7221_v61  ;;  %4905 = vmatpush1.bf16.msra.mxu0 %v7213_v63  ;;  %8625 = vst [vmem:[#allocation77_spill] sm:$0xff] %v7232_v1  ;;  %v386_v63 = vld [vmem:[#allocation5 + $0x70] sm:$0xff]  ;;  %v393_v0 = vld [vmem:[#allocation5 + $0xa8] sm:$0xff] }
 0x100   :  { %4937 = vmatpush1.bf16.msra.mxu1 %v7216_v7  ;;  %4939 = vmatprep.subr.bf16.mxu0 %v7219_v30  ;;  %8626 = vst [vmem:[#allocation78_spill] sm:$0xff] %v7238_v44  ;;  %v384_v30 = vld [vmem:[#allocation5 + $0x60] sm:$0xff]  ;;  %v7240_v7 = vpack.c.bf16 %v387_v51, %v383_v15 }
 0x101   :  { %4971 = vmatprep.subr.bf16.mxu1 %v7221_v61  ;;  %v380_v61 = vld [vmem:[#allocation5 + $0x40] sm:$0xff] }
 0x102   :  { %4701 = vmatmul.mubr.msk.f32.vlgmr.msra.gmra.mrb[2].mxu0 %vm502_vm1, %v4694_v19  ;;  %8627 = vst [vmem:[#allocation79_spill] sm:$0xff] %v7240_v7  ;;  %v7242_v6 = vpack.c.bf16 %v384_v30, %v380_v61  ;;  %v7252_v61 = vpack.c.bf16 %v393_v0, %v389_v29  ;;  %v395_v30 = vld [vmem:[#allocation5 + $0xb8] sm:$0xff]  ;;  %v388_v15 = vld [vmem:[#allocation5 + $0x80] sm:$0xff] }
 0x103   :  { %4702 = vmatmul.mubr.msk.f32.vlgmr.msra.gmra.mrb[10].mxu1 %vm502_vm1, %v4694_v19  ;;  %4941 = vmatpush1.bf16.msra.mxu0 %v7227_v2  ;;  %v7247_v19 = vpack.c.bf16 %v386_v63, %v382_v21  ;;  %v392_v51 = vld [vmem:[#allocation5 + $0xa0] sm:$0xff]  ;;  %v390_v63 = vld [vmem:[#allocation5 + $0x90] sm:$0xff] }
 0x104   :  { %4973 = vmatpush1.bf16.msra.mxu1 %v7232_v1  ;;  %8628 = vst [vmem:[#allocation80_spill] sm:$0xff] %v7242_v6  ;;  %888 = vmatprep.mubr.f32.mxu0 %v8629_v38  ;;  %v391_v1 = vld [vmem:[#allocation5 + $0x98] sm:$0xff]  ;;  %8631 = vst [vmem:[#allocation82_spill] sm:$0xff] %v7252_v61  ;;  %v7256_v50 = vpack.c.bf16 %v392_v51, %v388_v15  ;;  %v394_v21 = vld [vmem:[#allocation5 + $0xb0] sm:$0xff] }
 0x105   :  { %959 = vmatprep.mubr.f32.mxu1 %v8629_v38  ;;  %4943 = vmatprep.subr.bf16.mxu0 %v7238_v44  ;;  %8630 = vst [vmem:[#allocation81_spill] sm:$0xff] %v7247_v19  ;;  %v7254_v2 = vpack.c.bf16 %v395_v30, %v391_v1  ;;  %v401_v44 = vld [vmem:[#allocation5 + $0xe8] sm:$0xff]  ;;  %v403_v1 = vld [vmem:[#allocation5 + $0xf8] sm:$0xff]  ;;  %v396_v0 = vld [vmem:[#allocation5 + $0xc0] sm:$0xff] }
 0x106   :  { %4975 = vmatprep.subr.bf16.mxu1 %v7240_v7  ;;  %8633 = vst [vmem:[#allocation84_spill] sm:$0xff] %v7256_v50  ;;  %v7259_v7 = vpack.c.bf16 %v394_v21, %v390_v63  ;;  %v400_v30 = vld [vmem:[#allocation5 + $0xe0] sm:$0xff]  ;;  %v398_v63 = vld [vmem:[#allocation5 + $0xd0] sm:$0xff] }
 0x107   :  { %4945 = vmatpush1.bf16.msra.mxu0 %v7242_v6  ;;  %8632 = vst [vmem:[#allocation83_spill] sm:$0xff] %v7254_v2  ;;  %v397_v6 = vld [vmem:[#allocation5 + $0xc8] sm:$0xff]  ;;  %v7268_v51 = vpack.c.bf16 %v400_v30, %v396_v0  ;;  %v402_v21 = vld [vmem:[#allocation5 + $0xf0] sm:$0xff] }
 0x108   :  { %4977 = vmatpush1.bf16.msra.mxu1 %v7247_v19  ;;  %4947 = vmatprep.subr.bf16.mxu0 %v7252_v61  ;;  %8634 = vst [vmem:[#allocation85_spill] sm:$0xff] %v7259_v7  ;;  %v399_v19 = vld [vmem:[#allocation5 + $0xd8] sm:$0xff]  ;;  %v7264_v29 = vpack.c.bf16 %v401_v44, %v397_v6  ;;  %v409_v61 = vld [vmem:[#allocation5 + $0x128] sm:$0xff] }
 0x109   :  { %4979 = vmatprep.subr.bf16.mxu1 %v7254_v2  ;;  %v7266_v15 = vpack.c.bf16 %v403_v1, %v399_v19  ;;  %8637 = vst [vmem:[#allocation88_spill] sm:$0xff] %v7268_v51  ;;  %v7271_v2 = vpack.c.bf16 %v402_v21, %v398_v63  ;;  %v411_v6 = vld [vmem:[#allocation5 + $0x138] sm:$0xff]  ;;  %v404_v19 = vld [vmem:[#allocation5 + $0x100] sm:$0xff]  ;;  %v406_v63 = vld [vmem:[#allocation5 + $0x110] sm:$0xff] }
 0x10a   :  { %8635 = vst [vmem:[#allocation86_spill] sm:$0xff] %v7264_v29  ;;  %v408_v1 = vld [vmem:[#allocation5 + $0x120] sm:$0xff]  ;;  %v410_v21 = vld [vmem:[#allocation5 + $0x130] sm:$0xff] }
 0x10b   :  { %4949 = vmatpush1.bf16.msra.mxu0 %v7256_v50  ;;  %8636 = vst [vmem:[#allocation87_spill] sm:$0xff] %v7266_v15  ;;  %8638 = vst [vmem:[#allocation89_spill] sm:$0xff] %v7271_v2  ;;  %v405_v50 = vld [vmem:[#allocation5 + $0x108] sm:$0xff]  ;;  %v7280_v30 = vpack.c.bf16 %v408_v1, %v404_v19 }
 0x10c   :  { %4981 = vmatpush1.bf16.msra.mxu1 %v7259_v7  ;;  %4951 = vmatprep.subr.bf16.mxu0 %v7264_v29  ;;  %v407_v7 = vld [vmem:[#allocation5 + $0x118] sm:$0xff]  ;;  %v7276_v44 = vpack.c.bf16 %v409_v61, %v405_v50  ;;  %v417_v29 = vld [vmem:[#allocation5 + $0x168] sm:$0xff]  ;;  %v412_v61 = vld [vmem:[#allocation5 + $0x140] sm:$0xff] }
 0x10d   :  { %4983 = vmatprep.subr.bf16.mxu1 %v7266_v15  ;;  %v7278_v0 = vpack.c.bf16 %v411_v6, %v407_v7  ;;  %8641 = vst [vmem:[#allocation92_spill] sm:$0xff] %v7280_v30  ;;  %v7283_v15 = vpack.c.bf16 %v410_v21, %v406_v63  ;;  %v419_v7 = vld [vmem:[#allocation5 + $0x178] sm:$0xff]  ;;  %v416_v6 = vld [vmem:[#allocation5 + $0x160] sm:$0xff]  ;;  %v414_v63 = vld [vmem:[#allocation5 + $0x150] sm:$0xff] }
 0x10e   :  { %8639 = vst [vmem:[#allocation90_spill] sm:$0xff] %v7276_v44  ;;  %v7292_v1 = vpack.c.bf16 %v416_v6, %v412_v61  ;;  %v418_v21 = vld [vmem:[#allocation5 + $0x170] sm:$0xff] }
 0x10f   :  { %4953 = vmatpush1.bf16.msra.mxu0 %v7268_v51  ;;  %8640 = vst [vmem:[#allocation91_spill] sm:$0xff] %v7278_v0  ;;  %8642 = vst [vmem:[#allocation93_spill] sm:$0xff] %v7283_v15  ;;  %v413_v51 = vld [vmem:[#allocation5 + $0x148] sm:$0xff]  ;;  %v422_v61 = vld [vmem:[#allocation5 + $0x190] sm:$0xff] }
 0x110   :  { %4985 = vmatpush1.bf16.msra.mxu1 %v7271_v2  ;;  %4955 = vmatprep.subr.bf16.mxu0 %v7276_v44  ;;  %v415_v2 = vld [vmem:[#allocation5 + $0x158] sm:$0xff]  ;;  %v7288_v50 = vpack.c.bf16 %v417_v29, %v413_v51  ;;  %8645 = vst [vmem:[#allocation96_spill] sm:$0xff] %v7292_v1  ;;  %v421_v44 = vld [vmem:[#allocation5 + $0x188] sm:$0xff]  ;;  %v426_v6 = vld [vmem:[#allocation5 + $0x1b0] sm:$0xff] }
 0x111   :  { %4987 = vmatprep.subr.bf16.mxu1 %v7278_v0  ;;  %v7290_v19 = vpack.c.bf16 %v419_v7, %v415_v2  ;;  %v7295_v0 = vpack.c.bf16 %v418_v21, %v414_v63  ;;  %v7298_v29 = vpack.c.bf16 %v425_v54, %v421_v44  ;;  %v427_v51 = vld [vmem:[#allocation5 + $0x1b8] sm:$0xff]  ;;  %v429_v63 = vld [vmem:[#allocation5 + $0x1c8] sm:$0xff]  ;;  %v7307_v21 = vpack.c.bf16 %v426_v6, %v422_v61 }
 0x112   :  { %8643 = vst [vmem:[#allocation94_spill] sm:$0xff] %v7288_v50  ;;  %v433_v54 = vld [vmem:[#allocation5 + $0x1e8] sm:$0xff]  ;;  %v431_v44 = vld [vmem:[#allocation5 + $0x1d8] sm:$0xff] }
 0x113   :  { %4957 = vmatpush1.bf16.msra.mxu0 %v7280_v30  ;;  %8644 = vst [vmem:[#allocation95_spill] sm:$0xff] %v7290_v19  ;;  %8646 = vst [vmem:[#allocation97_spill] sm:$0xff] %v7295_v0  ;;  %v423_v30 = vld [vmem:[#allocation5 + $0x198] sm:$0xff] }
 0x114   :  { %4989 = vmatpush1.bf16.msra.mxu1 %v7283_v15  ;;  %4959 = vmatprep.subr.bf16.mxu0 %v7288_v50  ;;  %8647 = vst [vmem:[#allocation98_spill] sm:$0xff] %v7298_v29  ;;  %v420_v15 = vld [vmem:[#allocation5 + $0x180] sm:$0xff]  ;;  %v7302_v2 = vpack.c.bf16 %v427_v51, %v423_v30  ;;  %8650 = vst [vmem:[#allocation101_spill] sm:$0xff] %v7307_v21  ;;  %v7310_v50 = vpack.c.bf16 %v433_v54, %v429_v63  ;;  %v112_v54 = vld [vmem:[%s8354_s5] sm:$0xf] }
 0x115   :  { %4991 = vmatprep.subr.bf16.mxu1 %v7290_v19  ;;  %v7304_v7 = vpack.c.bf16 %v424_v43, %v420_v15  ;;  %v435_v19 = vld [vmem:[#allocation5 + $0x1f8] sm:$0xff]  ;;  %v428_v30 = vld [vmem:[#allocation5 + $0x1c0] sm:$0xff]  ;;  %v430_v43 = vld [vmem:[#allocation5 + $0x1d0] sm:$0xff] }
 0x116   :  { %8648 = vst [vmem:[#allocation99_spill] sm:$0xff] %v7302_v2  ;;  %8651 = vst [vmem:[#allocation102_spill] sm:$0xff] %v7310_v50  ;;  %v432_v51 = vld [vmem:[#allocation5 + $0x1e0] sm:$0xff]  ;;  %v434_v15 = vld [vmem:[#allocation5 + $0x1f0] sm:$0xff] }
 0x117   :  { %4961 = vmatpush1.bf16.msra.mxu0 %v7292_v1  ;;  %8649 = vst [vmem:[#allocation100_spill] sm:$0xff] %v7304_v7  ;;  %v7312_v1 = vpack.c.bf16 %v435_v19, %v431_v44  ;;  %v7318_v61 = vpack.c.bf16 %v434_v15, %v430_v43  ;;  %v8655_v19 = vlaneseq }
 0x118   :  { %4993 = vmatpush1.bf16.msra.mxu1 %v7295_v0  ;;  %4963 = vmatprep.subr.bf16.mxu0 %v7298_v29  ;;  %v7316_v29 = vpack.c.bf16 %v432_v51, %v428_v30 }
 0x119   :  { %4995 = vmatprep.subr.bf16.mxu1 %v7302_v2  ;;  %8652 = vst [vmem:[#allocation103_spill] sm:$0xff] %v7312_v1  ;;  %8654 = vst [vmem:[#allocation105_spill] sm:$0xff] %v7318_v61  ;;  %v7327_v6 = vshrl.u32 %v8655_v19, 7 }
 0x11a   :  { %8653 = vst [vmem:[#allocation104_spill] sm:$0xff] %v7316_v29 }
 0x11b   :  { %4965 = vmatpush1.bf16.msra.mxu0 %v7304_v7  ;;  %v8464_v63 = vsub.s32 1, %v7327_v6  ;;  %v8477_v30 = vsub.s32 0, %v7327_v6  ;;  %v8481_v15 = vsub.s32 2, %v7327_v6  ;;  %v8482_v19 = vsub.s32 3, %v7327_v6 }
 0x11c   :  { %4997 = vmatpush1.bf16.msra.mxu1 %v7307_v21  ;;  %4967 = vmatprep.subr.bf16.mxu0 %v7310_v50 }
 0x11d   :  { %4999 = vmatprep.subr.bf16.mxu1 %v7312_v1  ;;  %v121_v44 = vrot.slane %v112_v54, %v8464_v63  ;;  %v125_v63 = vrot.slane %v112_v54, %v8481_v15  ;;  %v129_v21 = vrot.slane %v112_v54, %v8482_v19 }
 0x11f   :  { %4969 = vmatpush1.bf16.msra.mxu0 %v7316_v29 }
 0x120   :  { %5001 = vmatpush1.bf16.msra.mxu1 %v7318_v61  ;;  %5003 = vmatprep.subr.bf16.mxu0 %v6963_v8 }
 0x121   :  { %5035 = vmatprep.subr.bf16.mxu1 %v7062_v16  ;;  %v117_v16 = vrot.slane %v112_v54, %v8477_v30 }
 0x12f   :  { %v7203_v36 = vpop.f32.mrb[0].mxu0 }
 0x130   :  { %v7209_v10 = vpop.f32.mrb[1].mxu0 }
 0x18e   :  { %v220_v51 = vpop.f32.mrb[0].mxu1 }
 0x18f   :  { %v222_v43 = vpop.f32.mrb[1].mxu1  ;;  %v7354_v30 = vadd.f32 %v220_v51, %v117_v16 }
 0x190   :  { %v7337_v8 = vadd.f32 %v222_v43, %v121_v44 }
 0x191   :  { %v654_v54 = vadd.f32 %v7203_v36, %v7354_v30  ;;  %v507_v36 = vld [vmem:[%s8351_s2] sm:$0x3] }
 0x192   :  { %v226_v61 = vpop.f32.mrb[2].mxu1 }
 0x193   :  { %v7342_v29 = vadd.f32 %v226_v61, %v117_v16  ;;  %v228_v1 = vpop.f32.mrb[3].mxu1 }
 0x194   :  { %v7346_v50 = vadd.f32 %v228_v1, %v121_v44  ;;  %v655_v1 = vadd.f32 %v7209_v10, %v7337_v8 }
 0x195   :  { %8656 = vst [vmem:[#allocation106_spill] sm:$0xff] %v7342_v29 }
 0x196   :  { %8657 = vst [vmem:[#allocation107_spill] sm:$0xff] %v7346_v50  ;;  %v297_v7 = vpop.f32.mrb[4].mxu1  ;;  %v4699_v44 = vmul.f32 -1.442695, %v655_v1  ;;  %v508_v1 = vsel %vm502_vm1, %v507_v36, 0.0  ;;  %v8662_v36 = vld [vmem:[#allocation54_spill] sm:$0xff] }
 0x197   :  { %v7350_v43 = vadd.f32 %v297_v7, %v125_v63  ;;  %v299_v2 = vpop.f32.mrb[5].mxu1  ;;  %v4698_v7 = vmul.f32 -1.442695, %v654_v54  ;;  %v8676_v50 = vld [vmem:[#allocation68_spill] sm:$0xff] }
 0x198   :  { %v7352_v0 = vadd.f32 %v299_v2, %v129_v21  ;;  %6424 = vpow2.f32 %v4699_v44 }
 0x199   :  { %6426 = vpow2.f32 %v4698_v7 }
 0x19a   :  { %v303_v31 = vpop.f32.mrb[6].mxu1 }
 0x19b   :  { %v7356_v61 = vadd.f32 %v303_v31, %v125_v63  ;;  %v305_v29 = vpop.f32.mrb[7].mxu1 }
 0x19c   :  { %v7358_v23 = vadd.f32 %v305_v29, %v129_v21 }
 0x19d   :  { %8658 = vst [vmem:[#allocation108_spill] sm:$0xff] %v7356_v61  ;;  %v8674_v61 = vld [vmem:[#allocation66_spill] sm:$0xff] }
 0x19e   :  { %8659 = vst [vmem:[#allocation109_spill] sm:$0xff] %v7358_v23  ;;  %v8675_v23 = vld [vmem:[#allocation67_spill] sm:$0xff] }
 0x1a2   :  { %v6425_v2 = vpop.eup %6424 }
 0x1a3   :  { %v6427_v15 = vpop.eup %6426  ;;  %v668_v19 = vadd.f32 1.0, %v6425_v2 }
 0x1a4   :  { %v667_v16 = vadd.f32 1.0, %v6427_v15 }
 0x1a5   :  { %6428 = vrcp.f32 %v668_v19 }
 0x1a6   :  { %6430 = vrcp.f32 %v667_v16 }
 0x1af   :  { %v6429_v63 = vpop.eup %6428 }
 0x1b0   :  { %v6431_v54 = vpop.eup %6430  ;;  %v677_v44 = vmul.f32 %v6429_v63, %v508_v1  ;;  %v8663_v63 = vld [vmem:[#allocation55_spill] sm:$0xff]  ;;  %v8664_v1 = vld [vmem:[#allocation56_spill] sm:$0xff] }
 0x1b6   :  { %v649_v51 = vpop.f32.mrb[8].mxu1 }
 0x1b7   :  { %v656_v31 = vadd.f32 %v649_v51, %v7350_v43  ;;  %v651_v29 = vpop.f32.mrb[9].mxu1 }
 0x1b8   :  { %v657_v21 = vadd.f32 %v651_v29, %v7352_v0 }
 0x1b9   :  { %6432 = vtanh.f32 %v656_v31 }
 0x1ba   :  { %v4700_v10 = vmul.f32 -1.442695, %v657_v21  ;;  %v8660_v21 = vld [vmem:[#allocation52_spill] sm:$0xff] }
 0x1bc   :  { %6434 = vpow2.f32 %v4700_v10  ;;  %v8661_v10 = vld [vmem:[#allocation53_spill] sm:$0xff] }
 0x1c3   :  { %v6433_v15 = vpop.eup %6432 }
 0x1c4   :  { %v678_v19 = vmul.f32 %v6433_v15, %v6431_v54  ;;  %v8665_v54 = vld [vmem:[#allocation57_spill] sm:$0xff]  ;;  %v8666_v15 = vld [vmem:[#allocation58_spill] sm:$0xff] }
 0x1c6   :  { %v6435_v7 = vpop.eup %6434  ;;  %v7370_v2 = vadd.f32 %v678_v19, %v677_v44  ;;  %v8667_v44 = vld [vmem:[#allocation59_spill] sm:$0xff]  ;;  %v8668_v19 = vld [vmem:[#allocation60_spill] sm:$0xff] }
 0x1c7   :  { %v669_v16 = vadd.f32 1.0, %v6435_v7  ;;  %v8669_v7 = vld [vmem:[#allocation61_spill] sm:$0xff] }
 0x1c8   :  { %6436 = vtanh.f32 %v7370_v2 }
 0x1c9   :  { %6438 = vrcp.f32 %v669_v16  ;;  %v8670_v16 = vld [vmem:[#allocation62_spill] sm:$0xff] }
 0x1d2   :  { %v6437_v51 = vpop.eup %6436 }
 0x1d3   :  { %v6439_v31 = vpop.eup %6438 }
 0x1d4   :  { %v681_v29 = vmul.f32 %v6439_v31, %v6437_v51  ;;  %v8671_v51 = vld [vmem:[#allocation63_spill] sm:$0xff]  ;;  %v8672_v31 = vld [vmem:[#allocation64_spill] sm:$0xff] }
 0x1d6   :  { %889 = vmatmul.mubr.f32.vlgmr.msra.gmra.mrb[2].mxu0 %v681_v29  ;;  %960 = vmatmul.mubr.f32.vlgmr.msra.gmra.mrb[10].mxu1 %v681_v29 }
 0x1d7   :  { %5005 = vmatpush1.bf16.msra.mxu0 %v6965_v9  ;;  %5037 = vmatpush1.bf16.msra.mxu1 %v7068_v25 }
 0x1d8   :  { %5007 = vmatprep.subr.bf16.mxu0 %v6967_v13  ;;  %5039 = vmatprep.subr.bf16.mxu1 %v7071_v26 }
 0x1d9   :  { %1079 = vmatprep.mubr.f32.mxu0 %v8629_v38  ;;  %1150 = vmatprep.mubr.f32.mxu1 %v8629_v38 }
 0x1db   :  { %5009 = vmatpush1.bf16.msra.mxu0 %v6971_v17  ;;  %5041 = vmatpush1.bf16.msra.mxu1 %v7076_v32 }
 0x1dc   :  { %5011 = vmatprep.subr.bf16.mxu0 %v6974_v18  ;;  %5043 = vmatprep.subr.bf16.mxu1 %v7079_v33 }
 0x1df   :  { %5013 = vmatpush1.bf16.msra.mxu0 %v6980_v24  ;;  %5045 = vmatpush1.bf16.msra.mxu1 %v7083_v40 }
 0x1e0   :  { %5015 = vmatprep.subr.bf16.mxu0 %v6992_v28  ;;  %5047 = vmatprep.subr.bf16.mxu1 %v7087_v41 }
 0x1e3   :  { %5017 = vmatpush1.bf16.msra.mxu0 %v7001_v37  ;;  %5049 = vmatpush1.bf16.msra.mxu1 %v7090_v48 }
 0x1e4   :  { %5019 = vmatprep.subr.bf16.mxu0 %v7007_v39  ;;  %5051 = vmatprep.subr.bf16.mxu1 %v7093_v49 }
 0x1e7   :  { %5021 = vmatpush1.bf16.msra.mxu0 %v7014_v46  ;;  %5053 = vmatpush1.bf16.msra.mxu1 %v7096_v56 }
 0x1e8   :  { %5023 = vmatprep.subr.bf16.mxu0 %v7018_v47  ;;  %5055 = vmatprep.subr.bf16.mxu1 %v7099_v57 }
 0x1eb   :  { %5025 = vmatpush1.bf16.msra.mxu0 %v7021_v52  ;;  %5057 = vmatpush1.bf16.msra.mxu1 %v7102_v4 }
 0x1ec   :  { %5027 = vmatprep.subr.bf16.mxu0 %v7024_v53  ;;  %5059 = vmatprep.subr.bf16.mxu1 %v7105_v5 }
 0x1ef   :  { %5029 = vmatpush1.bf16.msra.mxu0 %v7027_v58  ;;  %5061 = vmatpush1.bf16.msra.mxu1 %v7108_v12 }
 0x1f0   :  { %5031 = vmatprep.subr.bf16.mxu0 %v7030_v59  ;;  %5063 = vmatprep.subr.bf16.mxu1 %v7111_v14 }
 0x1f3   :  { %5033 = vmatpush1.bf16.msra.mxu0 %v7033_v62  ;;  %5065 = vmatpush1.bf16.msra.mxu1 %v7114_v20 }
 0x1f4   :  { %5067 = vmatprep.subr.bf16.mxu0 %v7121_v27  ;;  %5099 = vmatprep.subr.bf16.mxu1 %v7123_v34 }
 0x1f6   :  { %1080 = vmatmul.mubr.f32.vlgmr.msra.gmra.mrb[4].mxu0 %v681_v29  ;;  %1151 = vmatmul.mubr.f32.vlgmr.msra.gmra.mrb[12].mxu1 %v681_v29  ;;  %v8673_v29 = vld [vmem:[#allocation65_spill] sm:$0xff] }
 0x1f7   :  { %5069 = vmatpush1.bf16.msra.mxu0 %v7125_v35  ;;  %5101 = vmatpush1.bf16.msra.mxu1 %v7128_v42 }
 0x1f8   :  { %5071 = vmatprep.subr.bf16.mxu0 %v7133_v45  ;;  %5103 = vmatprep.subr.bf16.mxu1 %v7135_v55 }
 0x1f9   :  { %1264 = vmatprep.mubr.f32.mxu0 %v8629_v38  ;;  %1335 = vmatprep.mubr.f32.mxu1 %v8629_v38 }
 0x1fb   :  { %5073 = vmatpush1.bf16.msra.mxu0 %v7137_v60  ;;  %5105 = vmatpush1.bf16.msra.mxu1 %v7140_v3 }
 0x1fc   :  { %5075 = vmatprep.subr.bf16.mxu0 %v7145_v11  ;;  %5107 = vmatprep.subr.bf16.mxu1 %v7147_v22 }
 0x1ff   :  { %5077 = vmatpush1.bf16.msra.mxu0 %v8660_v21  ;;  %5109 = vmatpush1.bf16.msra.mxu1 %v8661_v10 }
 0x200   :  { %5079 = vmatprep.subr.bf16.mxu0 %v8662_v36  ;;  %5111 = vmatprep.subr.bf16.mxu1 %v8663_v63 }
 0x203   :  { %5081 = vmatpush1.bf16.msra.mxu0 %v8664_v1  ;;  %5113 = vmatpush1.bf16.msra.mxu1 %v8665_v54  ;;  %v8688_v1 = vsub.s32 3, %v7327_v6 }
 0x204   :  { %5083 = vmatprep.subr.bf16.mxu0 %v8666_v15  ;;  %5115 = vmatprep.subr.bf16.mxu1 %v8667_v44  ;;  %v8677_v15 = vld [vmem:[#allocation69_spill] sm:$0xff]  ;;  %v8678_v44 = vld [vmem:[#allocation70_spill] sm:$0xff] }
 0x207   :  { %5085 = vmatpush1.bf16.msra.mxu0 %v8668_v19  ;;  %5117 = vmatpush1.bf16.msra.mxu1 %v8669_v7  ;;  %v8679_v19 = vld [vmem:[#allocation71_spill] sm:$0xff]  ;;  %v8680_v7 = vld [vmem:[#allocation72_spill] sm:$0xff] }
 0x208   :  { %5087 = vmatprep.subr.bf16.mxu0 %v8670_v16  ;;  %5119 = vmatprep.subr.bf16.mxu1 %v8671_v51  ;;  %v8681_v16 = vld [vmem:[#allocation73_spill] sm:$0xff]  ;;  %v8682_v51 = vld [vmem:[#allocation74_spill] sm:$0xff] }
 0x20b   :  { %5089 = vmatpush1.bf16.msra.mxu0 %v8672_v31  ;;  %5121 = vmatpush1.bf16.msra.mxu1 %v8673_v29  ;;  %v8683_v31 = vld [vmem:[#allocation75_spill] sm:$0xff] }
 0x20c   :  { %5091 = vmatprep.subr.bf16.mxu0 %v8674_v61  ;;  %5123 = vmatprep.subr.bf16.mxu1 %v8675_v23  ;;  %v500_v23 = vld [vmem:[%s8357_s8] sm:$0xf] }
 0x20d   :  { %v7456_v63 = vrot.slane %v500_v23, %v8688_v1 }
 0x20f   :  { %5093 = vmatpush1.bf16.msra.mxu0 %v8676_v50  ;;  %5125 = vmatpush1.bf16.msra.mxu1 %v8677_v15  ;;  %v8684_v50 = vsub.s32 0, %v7327_v6  ;;  %8689 = vst [vmem:[#allocation112_spill] sm:$0xff] %v7456_v63 }
 0x210   :  { %5095 = vmatprep.subr.bf16.mxu0 %v8678_v44  ;;  %5127 = vmatprep.subr.bf16.mxu1 %v8679_v19  ;;  %v8686_v44 = vsub.s32 1, %v7327_v6 }
 0x211   :  { %v7446_v61 = vrot.slane %v500_v23, %v8684_v50 }
 0x212   :  { %v7450_v15 = vrot.slane %v500_v23, %v8686_v44  ;;  %v8690_v44 = vsub.s32 2, %v7327_v6 }
 0x213   :  { %5097 = vmatpush1.bf16.msra.mxu0 %v8680_v7  ;;  %5129 = vmatpush1.bf16.msra.mxu1 %v8681_v16  ;;  %8685 = vst [vmem:[#allocation110_spill] sm:$0xff] %v7446_v61 }
 0x214   :  { %5131 = vmatprep.subr.bf16.mxu0 %v8682_v51  ;;  %5163 = vmatprep.subr.bf16.mxu1 %v8683_v31  ;;  %8687 = vst [vmem:[#allocation111_spill] sm:$0xff] %v7450_v15  ;;  %v7461_v10 = vrot.slane %v500_v23, %v8690_v44 }
 0x216   :  { %8691 = vst [vmem:[#allocation113_spill] sm:$0xff] %v7461_v10 }
 0x2a9   :  { %v890_v19 = vpop.f32.mrb[2].mxu0  ;;  %v961_v7 = vpop.f32.mrb[10].mxu1 }
 0x2aa   :  { %v987_v16 = vadd.f32 %v7446_v61, %v890_v19  ;;  %v892_v29 = vpop.f32.mrb[3].mxu0  ;;  %v963_v51 = vpop.f32.mrb[11].mxu1  ;;  %v989_v19 = vadd.f32 %v7461_v10, %v961_v7 }
 0x2ab   :  { %v988_v31 = vadd.f32 %v7450_v15, %v892_v29  ;;  %v990_v50 = vadd.f32 %v7456_v63, %v963_v51 }
 0x2ac   :  { %v4703_v54 = vmul.f32 -1.442695, %v987_v16 }
 0x2ad   :  { %v4704_v36 = vmul.f32 -1.442695, %v988_v31  ;;  %v4705_v21 = vmul.f32 -1.442695, %v990_v50 }
 0x2ae   :  { %6440 = vpow2.f32 %v4703_v54 }
 0x2af   :  { %6442 = vpow2.f32 %v4704_v36  ;;  %v4695_v36 = vld [vmem:[%s8351_s2 + $0x2] sm:$0x3] }
 0x2b0   :  { %6444 = vpow2.f32 %v4705_v21  ;;  %v511_v23 = vsel %vm502_vm1, %v4695_v36, 0.0 }
 0x2b1   :  { %6446 = vtanh.f32 %v989_v19 }
 0x2b8   :  { %v6441_v61 = vpop.eup %6440 }
 0x2b9   :  { %v6443_v22 = vpop.eup %6442  ;;  %v1000_v29 = vadd.f32 1.0, %v6441_v61 }
 0x2ba   :  { %v1001_v16 = vadd.f32 1.0, %v6443_v22  ;;  %v6445_v1 = vpop.eup %6444 }
 0x2bb   :  { %6448 = vrcp.f32 %v1000_v29  ;;  %v6447_v54 = vpop.eup %6446  ;;  %v1002_v7 = vadd.f32 1.0, %v6445_v1 }
 0x2bc   :  { %6450 = vrcp.f32 %v1001_v16 }
 0x2bd   :  { %6452 = vrcp.f32 %v1002_v7 }
 0x2c5   :  { %v6449_v6 = vpop.eup %6448 }
 0x2c6   :  { %v6451_v51 = vpop.eup %6450  ;;  %v1011_v31 = vmul.f32 %v6449_v6, %v6447_v54 }
 0x2c7   :  { %v1010_v50 = vmul.f32 %v6451_v51, %v511_v23  ;;  %v6453_v23 = vpop.eup %6452 }
 0x2c9   :  { %v7468_v44 = vadd.f32 %v1011_v31, %v1010_v50  ;;  %v1081_v61 = vpop.f32.mrb[4].mxu0  ;;  %v1152_v21 = vpop.f32.mrb[12].mxu1 }
 0x2ca   :  { %v1161_v22 = vrot.slane %v1081_v61, 6  ;;  %v1083_v19 = vpop.f32.mrb[5].mxu0  ;;  %v1154_v29 = vpop.f32.mrb[13].mxu1  ;;  %v1163_v6 = vrot.slane %v1152_v21, 6  ;;  %v8693_v61 = vld [vmem:[#allocation76_spill] sm:$0xff] }
 0x2cb   :  { %v1162_v16 = vrot.slane %v1083_v19, 6  ;;  %6454 = vtanh.f32 %v7468_v44  ;;  %v1164_v54 = vrot.slane %v1154_v29, 6 }
 0x2cc   :  { %v1169_v10 = vadd.f32 %v1161_v22, %v7354_v30  ;;  %v1171_v50 = vadd.f32 %v1163_v6, %v7350_v43  ;;  %v8696_v22 = vld [vmem:[#allocation79_spill] sm:$0xff]  ;;  %v8702_v6 = vld [vmem:[#allocation85_spill] sm:$0xff] }
 0x2cd   :  { %v1170_v36 = vadd.f32 %v1162_v16, %v7337_v8  ;;  %v1172_v1 = vadd.f32 %v1164_v54, %v7352_v0  ;;  %v8697_v16 = vld [vmem:[#allocation80_spill] sm:$0xff]  ;;  %v8699_v54 = vld [vmem:[#allocation82_spill] sm:$0xff] }
 0x2ce   :  { %v4706_v63 = vmul.f32 -1.442695, %v1169_v10  ;;  %v8694_v10 = vld [vmem:[#allocation77_spill] sm:$0xff] }
 0x2cf   :  { %v4707_v15 = vmul.f32 -1.442695, %v1170_v36  ;;  %v4708_v7 = vmul.f32 -1.442695, %v1172_v1  ;;  %v8698_v36 = vld [vmem:[#allocation81_spill] sm:$0xff]  ;;  %v8700_v1 = vld [vmem:[#allocation83_spill] sm:$0xff] }
 0x2d0   :  { %6456 = vpow2.f32 %v4706_v63 }
 0x2d1   :  { %6458 = vpow2.f32 %v4707_v15  ;;  %v8695_v15 = vld [vmem:[#allocation78_spill] sm:$0xff] }
 0x2d2   :  { %6460 = vpow2.f32 %v4708_v7  ;;  %v8704_v7 = vld [vmem:[#allocation87_spill] sm:$0xff] }
 0x2d3   :  { %6462 = vtanh.f32 %v1171_v50 }
 0x2d5   :  { %v6455_v51 = vpop.eup %6454 }
 0x2d6   :  { %v7474_v31 = vmul.f32 %v6455_v51, %v6453_v23  ;;  %v8701_v23 = vld [vmem:[#allocation84_spill] sm:$0xff]  ;;  %v8703_v51 = vld [vmem:[#allocation86_spill] sm:$0xff] }
 0x2d8   :  { %8692 = vst [vmem:[#allocation114_spill] sm:$0xff] %v7474_v31  ;;  %1265 = vmatmul.mubr.f32.vlgmr.msra.gmra.mrb[6].mxu0 %v7474_v31  ;;  %1336 = vmatmul.mubr.f32.vlgmr.msra.gmra.mrb[14].mxu1 %v7474_v31  ;;  %v8707_v31 = vld [vmem:[#allocation90_spill] sm:$0xff] }
 0x2d9   :  { %5133 = vmatpush1.bf16.msra.mxu0 %v8693_v61  ;;  %5165 = vmatpush1.bf16.msra.mxu1 %v8694_v10 }
 0x2da   :  { %v6457_v63 = vpop.eup %6456  ;;  %5135 = vmatprep.subr.bf16.mxu0 %v8695_v15  ;;  %5167 = vmatprep.subr.bf16.mxu1 %v8696_v22  ;;  %v8711_v22 = vld [vmem:[#allocation94_spill] sm:$0xff] }
 0x2db   :  { %v6459_v21 = vpop.eup %6458  ;;  %v1182_v19 = vadd.f32 1.0, %v6457_v63  ;;  %1409 = vmatprep.mubr.f32.mxu0 %v8629_v38  ;;  %1480 = vmatprep.mubr.f32.mxu1 %v8629_v38  ;;  %v8705_v63 = vld [vmem:[#allocation88_spill] sm:$0xff] }
 0x2dc   :  { %v1183_v29 = vadd.f32 1.0, %v6459_v21  ;;  %v6461_v50 = vpop.eup %6460  ;;  %v8706_v21 = vld [vmem:[#allocation89_spill] sm:$0xff] }
 0x2dd   :  { %6464 = vrcp.f32 %v1182_v19  ;;  %5137 = vmatpush1.bf16.msra.mxu0 %v8697_v16  ;;  %5169 = vmatpush1.bf16.msra.mxu1 %v8698_v36  ;;  %v6463_v19 = vpop.eup %6462 }
 0x2de   :  { %6466 = vrcp.f32 %v1183_v29  ;;  %5139 = vmatprep.subr.bf16.mxu0 %v8699_v54  ;;  %5171 = vmatprep.subr.bf16.mxu1 %v8700_v1  ;;  %v8708_v29 = vld [vmem:[#allocation91_spill] sm:$0xff]  ;;  %v1193_v1 = vrot.slane %v7370_v2, 6  ;;  %v8715_v2 = vld [vmem:[#allocation98_spill] sm:$0xff] }
 0x2e1   :  { %5141 = vmatpush1.bf16.msra.mxu0 %v8701_v23  ;;  %5173 = vmatpush1.bf16.msra.mxu1 %v8702_v6  ;;  %v1184_v6 = vadd.f32 1.0, %v6461_v50  ;;  %v8719_v50 = vld [vmem:[#allocation102_spill] sm:$0xff] }
 0x2e2   :  { %5143 = vmatprep.subr.bf16.mxu0 %v8703_v51  ;;  %5175 = vmatprep.subr.bf16.mxu1 %v8704_v7  ;;  %v8709_v51 = vld [vmem:[#allocation92_spill] sm:$0xff]  ;;  %v8710_v7 = vld [vmem:[#allocation93_spill] sm:$0xff] }
 0x2e3   :  { %6468 = vrcp.f32 %v1184_v6 }
 0x2e5   :  { %5145 = vmatpush1.bf16.msra.mxu0 %v8705_v63  ;;  %5177 = vmatpush1.bf16.msra.mxu1 %v8706_v21  ;;  %v8712_v63 = vld [vmem:[#allocation95_spill] sm:$0xff] }
 0x2e6   :  { %5147 = vmatprep.subr.bf16.mxu0 %v8707_v31  ;;  %5179 = vmatprep.subr.bf16.mxu1 %v8708_v29  ;;  %v8713_v31 = vld [vmem:[#allocation96_spill] sm:$0xff]  ;;  %v8714_v29 = vld [vmem:[#allocation97_spill] sm:$0xff] }
 0x2e7   :  { %v6465_v54 = vpop.eup %6464 }
 0x2e8   :  { %v6467_v23 = vpop.eup %6466  ;;  %v1196_v36 = vmul.f32 %v6465_v54, %v6463_v19  ;;  %v8716_v54 = vld [vmem:[#allocation99_spill] sm:$0xff] }
 0x2e9   :  { %v1195_v16 = vmul.f32 %v6467_v23, %v1193_v1  ;;  %5149 = vmatpush1.bf16.msra.mxu0 %v8709_v51  ;;  %5181 = vmatpush1.bf16.msra.mxu1 %v8710_v7  ;;  %v8717_v1 = vld [vmem:[#allocation100_spill] sm:$0xff]  ;;  %v8718_v23 = vld [vmem:[#allocation101_spill] sm:$0xff]  ;;  %v8720_v19 = vld [vmem:[#allocation103_spill] sm:$0xff] }
 0x2ea   :  { %5151 = vmatprep.subr.bf16.mxu0 %v8711_v22  ;;  %5183 = vmatprep.subr.bf16.mxu1 %v8712_v63 }
 0x2eb   :  { %v7502_v21 = vadd.f32 %v1196_v36, %v1195_v16  ;;  %v8721_v16 = vld [vmem:[#allocation104_spill] sm:$0xff]  ;;  %v8722_v36 = vld [vmem:[#allocation105_spill] sm:$0xff] }
 0x2ed   :  { %5153 = vmatpush1.bf16.msra.mxu0 %v8713_v31  ;;  %5185 = vmatpush1.bf16.msra.mxu1 %v8714_v29  ;;  %6470 = vtanh.f32 %v7502_v21  ;;  %v6469_v6 = vpop.eup %6468  ;;  %v8723_v29 = vld [vmem:[#allocation16_spill] sm:$0xff]  ;;  %v8724_v31 = vld [vmem:[#allocation29_spill] sm:$0xff] }
 0x2ee   :  { %5155 = vmatprep.subr.bf16.mxu0 %v8715_v2  ;;  %5187 = vmatprep.subr.bf16.mxu1 %v8716_v54 }
 0x2f1   :  { %5157 = vmatpush1.bf16.msra.mxu0 %v8717_v1  ;;  %5189 = vmatpush1.bf16.msra.mxu1 %v8718_v23 }
 0x2f2   :  { %5159 = vmatprep.subr.bf16.mxu0 %v8719_v50  ;;  %5191 = vmatprep.subr.bf16.mxu1 %v8720_v19 }
 0x2f5   :  { %5161 = vmatpush1.bf16.msra.mxu0 %v8721_v16  ;;  %5193 = vmatpush1.bf16.msra.mxu1 %v8722_v36 }
 0x2f6   :  { %5195 = vmatprep.subr.bf16.mxu0 %v8723_v29  ;;  %5227 = vmatprep.subr.bf16.mxu1 %v8724_v31 }
 0x2f7   :  { %v6471_v2 = vpop.eup %6470 }
 0x2f8   :  { %v1199_v63 = vmul.f32 %v6471_v2, %v6469_v6  ;;  %v8726_v2 = vld [vmem:[#allocation52_spill] sm:$0xff]  ;;  %v8728_v6 = vld [vmem:[#allocation54_spill] sm:$0xff] }
 0x2fa   :  { %v1343_v54 = vrot.slane %v1199_v63, 2  ;;  %v8725_v63 = vld [vmem:[#allocation51_spill] sm:$0xff] }
 0x2fc   :  { %1410 = vmatmul.mubr.f32.vlgmr.msra.gmra.mrb[6].mxu0 %v1343_v54  ;;  %1481 = vmatmul.mubr.f32.vlgmr.msra.gmra.mrb[14].mxu1 %v1343_v54 }
 0x2fd   :  { %5197 = vmatpush1.bf16.msra.mxu0 %v6965_v9  ;;  %5229 = vmatpush1.bf16.msra.mxu1 %v7068_v25 }
 0x2fe   :  { %5199 = vmatprep.subr.bf16.mxu0 %v6967_v13  ;;  %5231 = vmatprep.subr.bf16.mxu1 %v7071_v26 }
 0x2ff   :  { %1579 = vmatprep.mubr.f32.mxu0 %v8629_v38  ;;  %1650 = vmatprep.mubr.f32.mxu1 %v8629_v38 }
 0x301   :  { %5201 = vmatpush1.bf16.msra.mxu0 %v6971_v17  ;;  %5233 = vmatpush1.bf16.msra.mxu1 %v7076_v32 }
 0x302   :  { %5203 = vmatprep.subr.bf16.mxu0 %v6974_v18  ;;  %5235 = vmatprep.subr.bf16.mxu1 %v7079_v33 }
 0x305   :  { %5205 = vmatpush1.bf16.msra.mxu0 %v6980_v24  ;;  %5237 = vmatpush1.bf16.msra.mxu1 %v7083_v40 }
 0x306   :  { %5207 = vmatprep.subr.bf16.mxu0 %v6992_v28  ;;  %5239 = vmatprep.subr.bf16.mxu1 %v7087_v41 }
 0x309   :  { %5209 = vmatpush1.bf16.msra.mxu0 %v7001_v37  ;;  %5241 = vmatpush1.bf16.msra.mxu1 %v7090_v48 }
 0x30a   :  { %5211 = vmatprep.subr.bf16.mxu0 %v7007_v39  ;;  %5243 = vmatprep.subr.bf16.mxu1 %v7093_v49 }
 0x30d   :  { %5213 = vmatpush1.bf16.msra.mxu0 %v7014_v46  ;;  %5245 = vmatpush1.bf16.msra.mxu1 %v7096_v56 }
 0x30e   :  { %5215 = vmatprep.subr.bf16.mxu0 %v7018_v47  ;;  %5247 = vmatprep.subr.bf16.mxu1 %v7099_v57 }
 0x311   :  { %5217 = vmatpush1.bf16.msra.mxu0 %v7021_v52  ;;  %5249 = vmatpush1.bf16.msra.mxu1 %v7102_v4 }
 0x312   :  { %5219 = vmatprep.subr.bf16.mxu0 %v7024_v53  ;;  %5251 = vmatprep.subr.bf16.mxu1 %v7105_v5 }
 0x315   :  { %5221 = vmatpush1.bf16.msra.mxu0 %v7027_v58  ;;  %5253 = vmatpush1.bf16.msra.mxu1 %v7108_v12 }
 0x316   :  { %5223 = vmatprep.subr.bf16.mxu0 %v7030_v59  ;;  %5255 = vmatprep.subr.bf16.mxu1 %v7111_v14 }
 0x319   :  { %5225 = vmatpush1.bf16.msra.mxu0 %v7033_v62  ;;  %5257 = vmatpush1.bf16.msra.mxu1 %v7114_v20  ;;  %v8751_v20 = vld [vmem:[#allocation111_spill] sm:$0xff] }
 0x31a   :  { %5259 = vmatprep.subr.bf16.mxu0 %v7121_v27  ;;  %5291 = vmatprep.subr.bf16.mxu1 %v7123_v34  ;;  %v8750_v34 = vld [vmem:[#allocation110_spill] sm:$0xff] }
 0x31c   :  { %1580 = vmatmul.mubr.f32.vlgmr.msra.gmra.mrb[8].mxu0 %v1343_v54  ;;  %1651 = vmatmul.mubr.f32.vlgmr.msra.gmra.mrb[16].mxu1 %v1343_v54  ;;  %v8727_v54 = vld [vmem:[#allocation53_spill] sm:$0xff] }
 0x31d   :  { %5261 = vmatpush1.bf16.msra.mxu0 %v7125_v35  ;;  %5293 = vmatpush1.bf16.msra.mxu1 %v7128_v42  ;;  %v8731_v42 = vld [vmem:[#allocation57_spill] sm:$0xff]  ;;  %v8732_v35 = vld [vmem:[#allocation58_spill] sm:$0xff] }
 0x31e   :  { %5263 = vmatprep.subr.bf16.mxu0 %v7133_v45  ;;  %5295 = vmatprep.subr.bf16.mxu1 %v7135_v55  ;;  %v8729_v45 = vld [vmem:[#allocation55_spill] sm:$0xff]  ;;  %v8730_v55 = vld [vmem:[#allocation56_spill] sm:$0xff] }
 0x31f   :  { %1764 = vmatprep.mubr.f32.mxu0 %v8629_v38  ;;  %1835 = vmatprep.mubr.f32.mxu1 %v8629_v38 }
 0x321   :  { %5265 = vmatpush1.bf16.msra.mxu0 %v7137_v60  ;;  %5297 = vmatpush1.bf16.msra.mxu1 %v7140_v3  ;;  %v8733_v60 = vld [vmem:[#allocation59_spill] sm:$0xff]  ;;  %v8734_v3 = vld [vmem:[#allocation60_spill] sm:$0xff] }
 0x322   :  { %5267 = vmatprep.subr.bf16.mxu0 %v7145_v11  ;;  %5299 = vmatprep.subr.bf16.mxu1 %v8725_v63  ;;  %v8735_v11 = vld [vmem:[#allocation61_spill] sm:$0xff]  ;;  %v8736_v63 = vld [vmem:[#allocation62_spill] sm:$0xff] }
 0x325   :  { %5269 = vmatpush1.bf16.msra.mxu0 %v8726_v2  ;;  %5301 = vmatpush1.bf16.msra.mxu1 %v8727_v54  ;;  %v8737_v2 = vld [vmem:[#allocation63_spill] sm:$0xff]  ;;  %v8738_v54 = vld [vmem:[#allocation64_spill] sm:$0xff] }
 0x326   :  { %5271 = vmatprep.subr.bf16.mxu0 %v8728_v6  ;;  %5303 = vmatprep.subr.bf16.mxu1 %v8729_v45  ;;  %v8739_v6 = vld [vmem:[#allocation65_spill] sm:$0xff]  ;;  %v8740_v45 = vld [vmem:[#allocation66_spill] sm:$0xff] }
 0x329   :  { %5273 = vmatpush1.bf16.msra.mxu0 %v8730_v55  ;;  %5305 = vmatpush1.bf16.msra.mxu1 %v8731_v42  ;;  %v8741_v55 = vld [vmem:[#allocation67_spill] sm:$0xff]  ;;  %v8742_v42 = vld [vmem:[#allocation68_spill] sm:$0xff] }
 0x32a   :  { %5275 = vmatprep.subr.bf16.mxu0 %v8732_v35  ;;  %5307 = vmatprep.subr.bf16.mxu1 %v8733_v60  ;;  %v8743_v35 = vld [vmem:[#allocation69_spill] sm:$0xff]  ;;  %v8744_v60 = vld [vmem:[#allocation70_spill] sm:$0xff] }
 0x32d   :  { %5277 = vmatpush1.bf16.msra.mxu0 %v8734_v3  ;;  %5309 = vmatpush1.bf16.msra.mxu1 %v8735_v11  ;;  %v8745_v3 = vld [vmem:[#allocation71_spill] sm:$0xff]  ;;  %v8746_v11 = vld [vmem:[#allocation72_spill] sm:$0xff] }
 0x32e   :  { %5279 = vmatprep.subr.bf16.mxu0 %v8736_v63  ;;  %5311 = vmatprep.subr.bf16.mxu1 %v8737_v2  ;;  %v8747_v63 = vld [vmem:[#allocation73_spill] sm:$0xff]  ;;  %v8748_v2 = vld [vmem:[#allocation74_spill] sm:$0xff] }
 0x331   :  { %5281 = vmatpush1.bf16.msra.mxu0 %v8738_v54  ;;  %5313 = vmatpush1.bf16.msra.mxu1 %v8739_v6  ;;  %v8749_v54 = vld [vmem:[#allocation75_spill] sm:$0xff] }
 0x332   :  { %5283 = vmatprep.subr.bf16.mxu0 %v8740_v45  ;;  %5315 = vmatprep.subr.bf16.mxu1 %v8741_v55 }
 0x335   :  { %5285 = vmatpush1.bf16.msra.mxu0 %v8742_v42  ;;  %5317 = vmatpush1.bf16.msra.mxu1 %v8743_v35 }
 0x336   :  { %5287 = vmatprep.subr.bf16.mxu0 %v8744_v60  ;;  %5319 = vmatprep.subr.bf16.mxu1 %v8745_v3  ;;  %v8752_v3 = vld [vmem:[#allocation112_spill] sm:$0xff] }
 0x339   :  { %5289 = vmatpush1.bf16.msra.mxu0 %v8746_v11  ;;  %5321 = vmatpush1.bf16.msra.mxu1 %v8747_v63  ;;  %v8753_v63 = vld [vmem:[#allocation113_spill] sm:$0xff] }
 0x33a   :  { %5323 = vmatprep.subr.bf16.mxu0 %v8748_v2  ;;  %5355 = vmatprep.subr.bf16.mxu1 %v8749_v54 }
 0x3cf   :  { %v1411_v6 = vpop.f32.mrb[6].mxu0  ;;  %v1482_v45 = vpop.f32.mrb[14].mxu1 }
 0x3d0   :  { %v1487_v55 = vadd.f32 %v1411_v6, %v8750_v34  ;;  %v1413_v27 = vpop.f32.mrb[7].mxu0  ;;  %v1484_v42 = vpop.f32.mrb[15].mxu1  ;;  %v1489_v59 = vadd.f32 %v1482_v45, %v8753_v63 }
 0x3d1   :  { %v1488_v35 = vadd.f32 %v1413_v27, %v8751_v20  ;;  %v1490_v11 = vadd.f32 %v1484_v42, %v8752_v3 }
 0x3d2   :  { %v4709_v62 = vmul.f32 -1.442695, %v1487_v55 }
 0x3d3   :  { %v4710_v60 = vmul.f32 -1.442695, %v1488_v35  ;;  %v4711_v14 = vmul.f32 -1.442695, %v1490_v11 }
 0x3d4   :  { %6472 = vpow2.f32 %v4709_v62 }
 0x3d5   :  { %6474 = vpow2.f32 %v4710_v60 }
 0x3d6   :  { %6476 = vpow2.f32 %v4711_v14 }
 0x3d7   :  { %6478 = vtanh.f32 %v1489_v59 }
 0x3de   :  { %v6473_v2 = vpop.eup %6472 }
 0x3df   :  { %v6475_v12 = vpop.eup %6474  ;;  %v1500_v54 = vadd.f32 1.0, %v6473_v2 }
 0x3e0   :  { %v1501_v58 = vadd.f32 1.0, %v6475_v12  ;;  %v6477_v6 = vpop.eup %6476 }
 0x3e1   :  { %6480 = vrcp.f32 %v1500_v54  ;;  %v6479_v34 = vpop.eup %6478  ;;  %v1502_v62 = vadd.f32 1.0, %v6477_v6 }
 0x3e2   :  { %6482 = vrcp.f32 %v1501_v58 }
 0x3e3   :  { %6484 = vrcp.f32 %v1502_v62 }
 0x3eb   :  { %v6481_v27 = vpop.eup %6480 }
 0x3ec   :  { %v6483_v55 = vpop.eup %6482  ;;  %v1511_v35 = vmul.f32 %v6481_v27, %v6479_v34 }
 0x3ed   :  { %v1510_v60 = vmul.f32 %v6483_v55, %v7468_v44  ;;  %v6485_v27 = vpop.eup %6484 }
 0x3ef   :  { %v7590_v42 = vadd.f32 %v1511_v35, %v1510_v60  ;;  %v1581_v11 = vpop.f32.mrb[8].mxu0  ;;  %v1652_v45 = vpop.f32.mrb[16].mxu1 }
 0x3f0   :  { %v1661_v63 = vrot.slane %v1581_v11, 4  ;;  %v1583_v2 = vpop.f32.mrb[9].mxu0  ;;  %v1654_v14 = vpop.f32.mrb[17].mxu1  ;;  %v1663_v55 = vrot.slane %v1652_v45, 4 }
 0x3f1   :  { %v1662_v59 = vrot.slane %v1583_v2, 4  ;;  %6486 = vtanh.f32 %v7590_v42  ;;  %v1664_v6 = vrot.slane %v1654_v14, 4  ;;  %v8754_v2 = vld [vmem:[#allocation79_spill] sm:$0xff] }
 0x3f2   :  { %v1669_v58 = vadd.f32 %v1661_v63, %v7354_v30  ;;  %v1671_v11 = vadd.f32 %v1663_v55, %v7350_v43  ;;  %v8762_v55 = vld [vmem:[#allocation87_spill] sm:$0xff] }
 0x3f3   :  { %v1670_v12 = vadd.f32 %v1662_v59, %v7337_v8  ;;  %v1672_v44 = vadd.f32 %v1664_v6, %v7352_v0  ;;  %v8759_v6 = vld [vmem:[#allocation84_spill] sm:$0xff] }
 0x3f4   :  { %v4712_v54 = vmul.f32 -1.442695, %v1669_v58  ;;  %v8755_v58 = vld [vmem:[#allocation80_spill] sm:$0xff] }
 0x3f5   :  { %v4713_v34 = vmul.f32 -1.442695, %v1670_v12  ;;  %v4714_v60 = vmul.f32 -1.442695, %v1672_v44  ;;  %v8756_v12 = vld [vmem:[#allocation81_spill] sm:$0xff] }
 0x3f6   :  { %6488 = vpow2.f32 %v4712_v54  ;;  %v8757_v54 = vld [vmem:[#allocation82_spill] sm:$0xff]  ;;  %v8760_v44 = vld [vmem:[#allocation85_spill] sm:$0xff] }
 0x3f7   :  { %6490 = vpow2.f32 %v4713_v34  ;;  %v8758_v34 = vld [vmem:[#allocation83_spill] sm:$0xff] }
 0x3f8   :  { %6492 = vpow2.f32 %v4714_v60  ;;  %v8763_v60 = vld [vmem:[#allocation88_spill] sm:$0xff] }
 0x3f9   :  { %6494 = vtanh.f32 %v1671_v11  ;;  %v8764_v11 = vld [vmem:[#allocation89_spill] sm:$0xff] }
 0x3fb   :  { %v6487_v35 = vpop.eup %6486 }
 0x3fc   :  { %v7596_v62 = vmul.f32 %v6487_v35, %v6485_v27  ;;  %v8761_v27 = vld [vmem:[#allocation86_spill] sm:$0xff] }
 0x3fe   :  { %1765 = vmatmul.mubr.f32.vlgmr.msra.gmra.mrb[10].mxu0 %v7596_v62  ;;  %1836 = vmatmul.mubr.f32.vlgmr.msra.gmra.mrb[18].mxu1 %v7596_v62 }
 0x3ff   :  { %5325 = vmatpush1.bf16.msra.mxu0 %v8693_v61  ;;  %5357 = vmatpush1.bf16.msra.mxu1 %v8694_v10 }
 0x400   :  { %v6489_v63 = vpop.eup %6488  ;;  %5327 = vmatprep.subr.bf16.mxu0 %v8695_v15  ;;  %5359 = vmatprep.subr.bf16.mxu1 %v8754_v2 }
 0x401   :  { %v6491_v45 = vpop.eup %6490  ;;  %v1682_v14 = vadd.f32 1.0, %v6489_v63  ;;  %1909 = vmatprep.mubr.f32.mxu0 %v8629_v38  ;;  %1980 = vmatprep.mubr.f32.mxu1 %v8629_v38 }
 0x402   :  { %v1683_v59 = vadd.f32 1.0, %v6491_v45  ;;  %v6493_v35 = vpop.eup %6492  ;;  %v8765_v45 = vld [vmem:[#allocation90_spill] sm:$0xff] }
 0x403   :  { %6496 = vrcp.f32 %v1682_v14  ;;  %5329 = vmatpush1.bf16.msra.mxu0 %v8755_v58  ;;  %5361 = vmatpush1.bf16.msra.mxu1 %v8756_v12  ;;  %v6495_v63 = vpop.eup %6494  ;;  %v8766_v14 = vld [vmem:[#allocation91_spill] sm:$0xff] }
 0x404   :  { %6498 = vrcp.f32 %v1683_v59  ;;  %5331 = vmatprep.subr.bf16.mxu0 %v8757_v54  ;;  %5363 = vmatprep.subr.bf16.mxu1 %v8758_v34  ;;  %v1693_v34 = vrot.slane %v7502_v21, 6  ;;  %v8770_v21 = vld [vmem:[#allocation98_spill] sm:$0xff] }
 0x407   :  { %5333 = vmatpush1.bf16.msra.mxu0 %v8759_v6  ;;  %5365 = vmatpush1.bf16.msra.mxu1 %v8760_v44  ;;  %v1684_v44 = vadd.f32 1.0, %v6493_v35  ;;  %v8772_v35 = vld [vmem:[#allocation26_spill] sm:$0xff] }
 0x408   :  { %5335 = vmatprep.subr.bf16.mxu0 %v8761_v27  ;;  %5367 = vmatprep.subr.bf16.mxu1 %v8762_v55 }
 0x409   :  { %6500 = vrcp.f32 %v1684_v44 }
 0x40b   :  { %5337 = vmatpush1.bf16.msra.mxu0 %v8763_v60  ;;  %5369 = vmatpush1.bf16.msra.mxu1 %v8764_v11  ;;  %v8767_v60 = vld [vmem:[#allocation95_spill] sm:$0xff] }
 0x40c   :  { %5339 = vmatprep.subr.bf16.mxu0 %v8765_v45  ;;  %5371 = vmatprep.subr.bf16.mxu1 %v8766_v14  ;;  %v8768_v45 = vld [vmem:[#allocation96_spill] sm:$0xff]  ;;  %v8769_v14 = vld [vmem:[#allocation97_spill] sm:$0xff] }
 0x40d   :  { %v6497_v59 = vpop.eup %6496 }
 0x40e   :  { %v6499_v6 = vpop.eup %6498  ;;  %v1696_v54 = vmul.f32 %v6497_v59, %v6495_v63  ;;  %v8773_v63 = vld [vmem:[#allocation39_spill] sm:$0xff] }
 0x40f   :  { %v1695_v12 = vmul.f32 %v6499_v6, %v1693_v34  ;;  %5341 = vmatpush1.bf16.msra.mxu0 %v8709_v51  ;;  %5373 = vmatpush1.bf16.msra.mxu1 %v8710_v7  ;;  %v8771_v34 = vld [vmem:[#allocation99_spill] sm:$0xff] }
 0x410   :  { %5343 = vmatprep.subr.bf16.mxu0 %v8711_v22  ;;  %5375 = vmatprep.subr.bf16.mxu1 %v8767_v60  ;;  %v8774_v59 = vld [vmem:[#allocation27_spill] sm:$0xff] }
 0x411   :  { %v7624_v11 = vadd.f32 %v1696_v54, %v1695_v12 }
 0x413   :  { %5345 = vmatpush1.bf16.msra.mxu0 %v8768_v45  ;;  %5377 = vmatpush1.bf16.msra.mxu1 %v8769_v14  ;;  %6502 = vtanh.f32 %v7624_v11  ;;  %v6501_v12 = vpop.eup %6500 }
 0x414   :  { %5347 = vmatprep.subr.bf16.mxu0 %v8770_v21  ;;  %5379 = vmatprep.subr.bf16.mxu1 %v8771_v34 }
 0x417   :  { %5349 = vmatpush1.bf16.msra.mxu0 %v8717_v1  ;;  %5381 = vmatpush1.bf16.msra.mxu1 %v8718_v23 }
 0x418   :  { %5351 = vmatprep.subr.bf16.mxu0 %v8719_v50  ;;  %5383 = vmatprep.subr.bf16.mxu1 %v8720_v19 }
 0x41b   :  { %5353 = vmatpush1.bf16.msra.mxu0 %v8721_v16  ;;  %5385 = vmatpush1.bf16.msra.mxu1 %v8722_v36 }
 0x41c   :  { %5387 = vmatprep.subr.bf16.mxu0 %v8723_v29  ;;  %5419 = vmatprep.subr.bf16.mxu1 %v8724_v31 }
 0x41d   :  { %v6503_v54 = vpop.eup %6502 }
 0x41e   :  { %v1699_v6 = vmul.f32 %v6503_v54, %v6501_v12  ;;  %v8775_v12 = vld [vmem:[#allocation40_spill] sm:$0xff] }
 0x41f   :  { %v8776_v54 = vld [vmem:[#allocation28_spill] sm:$0xff] }
 0x420   :  { %v1843_v44 = vrot.slane %v1699_v6, 4  ;;  %v8777_v6 = vld [vmem:[#allocation41_spill] sm:$0xff] }
 0x422   :  { %1910 = vmatmul.mubr.f32.vlgmr.msra.gmra.mrb[10].mxu0 %v1843_v44  ;;  %1981 = vmatmul.mubr.f32.vlgmr.msra.gmra.mrb[18].mxu1 %v1843_v44 }
 0x423   :  { %5389 = vmatpush1.bf16.msra.mxu0 %v6965_v9  ;;  %5421 = vmatpush1.bf16.msra.mxu1 %v7068_v25 }
 0x424   :  { %5391 = vmatprep.subr.bf16.mxu0 %v6967_v13  ;;  %5423 = vmatprep.subr.bf16.mxu1 %v7071_v26 }
 0x425   :  { %2079 = vmatprep.mubr.f32.mxu0 %v8629_v38  ;;  %2150 = vmatprep.mubr.f32.mxu1 %v8629_v38 }
 0x427   :  { %5393 = vmatpush1.bf16.msra.mxu0 %v6971_v17  ;;  %5425 = vmatpush1.bf16.msra.mxu1 %v7076_v32 }
 0x428   :  { %5395 = vmatprep.subr.bf16.mxu0 %v6974_v18  ;;  %5427 = vmatprep.subr.bf16.mxu1 %v7079_v33 }
 0x42b   :  { %5397 = vmatpush1.bf16.msra.mxu0 %v6980_v24  ;;  %5429 = vmatpush1.bf16.msra.mxu1 %v7083_v40 }
 0x42c   :  { %5399 = vmatprep.subr.bf16.mxu0 %v6992_v28  ;;  %5431 = vmatprep.subr.bf16.mxu1 %v7087_v41 }
 0x42f   :  { %5401 = vmatpush1.bf16.msra.mxu0 %v7001_v37  ;;  %5433 = vmatpush1.bf16.msra.mxu1 %v7090_v48 }
 0x430   :  { %5403 = vmatprep.subr.bf16.mxu0 %v7007_v39  ;;  %5435 = vmatprep.subr.bf16.mxu1 %v7093_v49 }
 0x433   :  { %5405 = vmatpush1.bf16.msra.mxu0 %v7014_v46  ;;  %5437 = vmatpush1.bf16.msra.mxu1 %v7096_v56 }
 0x434   :  { %5407 = vmatprep.subr.bf16.mxu0 %v7018_v47  ;;  %5439 = vmatprep.subr.bf16.mxu1 %v7099_v57  ;;  %v8778_v57 = vld [vmem:[#allocation42_spill] sm:$0xff] }
 0x437   :  { %5409 = vmatpush1.bf16.msra.mxu0 %v7021_v52  ;;  %5441 = vmatpush1.bf16.msra.mxu1 %v7102_v4  ;;  %v8779_v52 = vld [vmem:[#allocation43_spill] sm:$0xff]  ;;  %v8812_v4 = vld [vmem:[#allocation110_spill] sm:$0xff] }
 0x438   :  { %5411 = vmatprep.subr.bf16.mxu0 %v7024_v53  ;;  %5443 = vmatprep.subr.bf16.mxu1 %v7105_v5  ;;  %v8780_v53 = vld [vmem:[#allocation44_spill] sm:$0xff]  ;;  %v8781_v5 = vld [vmem:[#allocation45_spill] sm:$0xff] }
 0x43b   :  { %5413 = vmatpush1.bf16.msra.mxu0 %v8772_v35  ;;  %5445 = vmatpush1.bf16.msra.mxu1 %v8773_v63  ;;  %v8782_v35 = vld [vmem:[#allocation46_spill] sm:$0xff]  ;;  %v8783_v63 = vld [vmem:[#allocation47_spill] sm:$0xff] }
 0x43c   :  { %5415 = vmatprep.subr.bf16.mxu0 %v8774_v59  ;;  %5447 = vmatprep.subr.bf16.mxu1 %v8775_v12  ;;  %v8793_v12 = vld [vmem:[#allocation57_spill] sm:$0xff]  ;;  %v8794_v59 = vld [vmem:[#allocation58_spill] sm:$0xff] }
 0x43f   :  { %5417 = vmatpush1.bf16.msra.mxu0 %v8776_v54  ;;  %5449 = vmatpush1.bf16.msra.mxu1 %v8777_v6  ;;  %v8784_v54 = vld [vmem:[#allocation48_spill] sm:$0xff]  ;;  %v8785_v6 = vld [vmem:[#allocation49_spill] sm:$0xff] }
 0x440   :  { %5451 = vmatprep.subr.bf16.mxu0 %v8778_v57  ;;  %5483 = vmatprep.subr.bf16.mxu1 %v8779_v52  ;;  %v8786_v57 = vld [vmem:[#allocation50_spill] sm:$0xff]  ;;  %v8787_v52 = vld [vmem:[#allocation51_spill] sm:$0xff] }
 0x442   :  { %2080 = vmatmul.mubr.f32.vlgmr.msra.gmra.mrb[12].mxu0 %v1843_v44  ;;  %2151 = vmatmul.mubr.f32.vlgmr.msra.gmra.mrb[20].mxu1 %v1843_v44  ;;  %v8788_v44 = vld [vmem:[#allocation52_spill] sm:$0xff] }
 0x443   :  { %5453 = vmatpush1.bf16.msra.mxu0 %v8780_v53  ;;  %5485 = vmatpush1.bf16.msra.mxu1 %v8781_v5  ;;  %v8789_v53 = vld [vmem:[#allocation53_spill] sm:$0xff]  ;;  %v8790_v5 = vld [vmem:[#allocation54_spill] sm:$0xff] }
 0x444   :  { %5455 = vmatprep.subr.bf16.mxu0 %v8782_v35  ;;  %5487 = vmatprep.subr.bf16.mxu1 %v8783_v63  ;;  %v8791_v35 = vld [vmem:[#allocation55_spill] sm:$0xff]  ;;  %v8792_v63 = vld [vmem:[#allocation56_spill] sm:$0xff] }
 0x445   :  { %2264 = vmatprep.mubr.f32.mxu0 %v8629_v38  ;;  %2335 = vmatprep.mubr.f32.mxu1 %v8629_v38 }
 0x447   :  { %5457 = vmatpush1.bf16.msra.mxu0 %v8784_v54  ;;  %5489 = vmatpush1.bf16.msra.mxu1 %v8785_v6  ;;  %v8795_v54 = vld [vmem:[#allocation59_spill] sm:$0xff]  ;;  %v8796_v6 = vld [vmem:[#allocation60_spill] sm:$0xff] }
 0x448   :  { %5459 = vmatprep.subr.bf16.mxu0 %v8786_v57  ;;  %5491 = vmatprep.subr.bf16.mxu1 %v8787_v52  ;;  %v8797_v57 = vld [vmem:[#allocation61_spill] sm:$0xff]  ;;  %v8798_v52 = vld [vmem:[#allocation62_spill] sm:$0xff] }
 0x44b   :  { %5461 = vmatpush1.bf16.msra.mxu0 %v8788_v44  ;;  %5493 = vmatpush1.bf16.msra.mxu1 %v8789_v53  ;;  %v8799_v44 = vld [vmem:[#allocation63_spill] sm:$0xff]  ;;  %v8800_v53 = vld [vmem:[#allocation64_spill] sm:$0xff] }
 0x44c   :  { %5463 = vmatprep.subr.bf16.mxu0 %v8790_v5  ;;  %5495 = vmatprep.subr.bf16.mxu1 %v8791_v35  ;;  %v8801_v5 = vld [vmem:[#allocation65_spill] sm:$0xff]  ;;  %v8802_v35 = vld [vmem:[#allocation66_spill] sm:$0xff] }
 0x44f   :  { %5465 = vmatpush1.bf16.msra.mxu0 %v8792_v63  ;;  %5497 = vmatpush1.bf16.msra.mxu1 %v8793_v12  ;;  %v8803_v63 = vld [vmem:[#allocation67_spill] sm:$0xff]  ;;  %v8804_v12 = vld [vmem:[#allocation68_spill] sm:$0xff] }
 0x450   :  { %5467 = vmatprep.subr.bf16.mxu0 %v8794_v59  ;;  %5499 = vmatprep.subr.bf16.mxu1 %v8795_v54  ;;  %v8805_v59 = vld [vmem:[#allocation69_spill] sm:$0xff]  ;;  %v8806_v54 = vld [vmem:[#allocation70_spill] sm:$0xff] }
 0x453   :  { %5469 = vmatpush1.bf16.msra.mxu0 %v8796_v6  ;;  %5501 = vmatpush1.bf16.msra.mxu1 %v8797_v57  ;;  %v8807_v6 = vld [vmem:[#allocation71_spill] sm:$0xff]  ;;  %v8808_v57 = vld [vmem:[#allocation72_spill] sm:$0xff] }
 0x454   :  { %5471 = vmatprep.subr.bf16.mxu0 %v8798_v52  ;;  %5503 = vmatprep.subr.bf16.mxu1 %v8799_v44  ;;  %v8809_v52 = vld [vmem:[#allocation73_spill] sm:$0xff]  ;;  %v8810_v44 = vld [vmem:[#allocation74_spill] sm:$0xff] }
 0x457   :  { %5473 = vmatpush1.bf16.msra.mxu0 %v8800_v53  ;;  %5505 = vmatpush1.bf16.msra.mxu1 %v8801_v5  ;;  %v8811_v53 = vld [vmem:[#allocation75_spill] sm:$0xff] }
 0x458   :  { %5475 = vmatprep.subr.bf16.mxu0 %v8802_v35  ;;  %5507 = vmatprep.subr.bf16.mxu1 %v8803_v63 }
 0x45b   :  { %5477 = vmatpush1.bf16.msra.mxu0 %v8804_v12  ;;  %5509 = vmatpush1.bf16.msra.mxu1 %v8805_v59 }
 0x45c   :  { %5479 = vmatprep.subr.bf16.mxu0 %v8806_v54  ;;  %5511 = vmatprep.subr.bf16.mxu1 %v8807_v6 }
 0x45f   :  { %5481 = vmatpush1.bf16.msra.mxu0 %v8808_v57  ;;  %5513 = vmatpush1.bf16.msra.mxu1 %v8809_v52  ;;  %v8813_v52 = vld [vmem:[#allocation113_spill] sm:$0xff] }
 0x460   :  { %5515 = vmatprep.subr.bf16.mxu0 %v8810_v44  ;;  %5547 = vmatprep.subr.bf16.mxu1 %v8811_v53 }
 0x4f5   :  { %v1911_v5 = vpop.f32.mrb[10].mxu0  ;;  %v1982_v35 = vpop.f32.mrb[18].mxu1 }
 0x4f6   :  { %v1987_v63 = vadd.f32 %v1911_v5, %v8812_v4  ;;  %v1913_v47 = vpop.f32.mrb[11].mxu0  ;;  %v1984_v12 = vpop.f32.mrb[19].mxu1  ;;  %v1989_v46 = vadd.f32 %v1982_v35, %v8813_v52 }
 0x4f7   :  { %v1988_v59 = vadd.f32 %v1913_v47, %v8751_v20  ;;  %v1990_v57 = vadd.f32 %v1984_v12, %v8752_v3 }
 0x4f8   :  { %v4715_v56 = vmul.f32 -1.442695, %v1987_v63 }
 0x4f9   :  { %v4716_v54 = vmul.f32 -1.442695, %v1988_v59  ;;  %v4717_v6 = vmul.f32 -1.442695, %v1990_v57 }
 0x4fa   :  { %6504 = vpow2.f32 %v4715_v56 }
 0x4fb   :  { %6506 = vpow2.f32 %v4716_v54 }
 0x4fc   :  { %6508 = vpow2.f32 %v4717_v6 }
 0x4fd   :  { %6510 = vtanh.f32 %v1989_v46 }
 0x504   :  { %v6505_v44 = vpop.eup %6504 }
 0x505   :  { %v6507_v49 = vpop.eup %6506  ;;  %v2000_v53 = vadd.f32 1.0, %v6505_v44 }
 0x506   :  { %v2001_v39 = vadd.f32 1.0, %v6507_v49  ;;  %v6509_v5 = vpop.eup %6508 }
 0x507   :  { %6512 = vrcp.f32 %v2000_v53  ;;  %v6511_v4 = vpop.eup %6510  ;;  %v2002_v56 = vadd.f32 1.0, %v6509_v5 }
 0x508   :  { %6514 = vrcp.f32 %v2001_v39 }
 0x509   :  { %6516 = vrcp.f32 %v2002_v56  ;;  %v4501_v56 = vrot.slane %v7596_v62, 6 }
 0x511   :  { %v6513_v47 = vpop.eup %6512 }
 0x512   :  { %v6515_v63 = vpop.eup %6514  ;;  %v2011_v59 = vmul.f32 %v6513_v47, %v6511_v4 }
 0x513   :  { %v2010_v54 = vmul.f32 %v6515_v63, %v7590_v42  ;;  %v6517_v47 = vpop.eup %6516 }
 0x515   :  { %v7712_v12 = vadd.f32 %v2011_v59, %v2010_v54  ;;  %v2081_v57 = vpop.f32.mrb[12].mxu0  ;;  %v2152_v35 = vpop.f32.mrb[20].mxu1 }
 0x516   :  { %v2161_v52 = vrot.slane %v2081_v57, 2  ;;  %v2083_v44 = vpop.f32.mrb[13].mxu0  ;;  %v2154_v6 = vpop.f32.mrb[21].mxu1  ;;  %v2163_v63 = vrot.slane %v2152_v35, 2 }
 0x517   :  { %v2162_v46 = vrot.slane %v2083_v44, 2  ;;  %6518 = vtanh.f32 %v7712_v12  ;;  %v2164_v5 = vrot.slane %v2154_v6, 2 }
 0x518   :  { %v2169_v39 = vadd.f32 %v2161_v52, %v7354_v30  ;;  %v2171_v44 = vadd.f32 %v2163_v63, %v7350_v43  ;;  %v8814_v52 = vld [vmem:[#allocation114_spill] sm:$0xff] }
 0x519   :  { %v2170_v53 = vadd.f32 %v2162_v46, %v7337_v8  ;;  %v2172_v42 = vadd.f32 %v2164_v5, %v7352_v0  ;;  %v4519_v0 = vsel %vm4518_vm5, %v8814_v52, %v4501_v56  ;;  %v8815_v46 = vld [vmem:[#allocation81_spill] sm:$0xff]  ;;  %v8823_v56 = vld [vmem:[#allocation91_spill] sm:$0xff] }
 0x51a   :  { %v4718_v49 = vmul.f32 -1.442695, %v2169_v39  ;;  %v8816_v39 = vld [vmem:[#allocation82_spill] sm:$0xff] }
 0x51b   :  { %v4719_v4 = vmul.f32 -1.442695, %v2170_v53  ;;  %v4720_v57 = vmul.f32 -1.442695, %v2172_v42  ;;  %v8817_v53 = vld [vmem:[#allocation83_spill] sm:$0xff]  ;;  %v8820_v42 = vld [vmem:[#allocation88_spill] sm:$0xff] }
 0x51c   :  { %6520 = vpow2.f32 %v4718_v49  ;;  %v8818_v49 = vld [vmem:[#allocation84_spill] sm:$0xff] }
 0x51d   :  { %6522 = vpow2.f32 %v4719_v4  ;;  %v8819_v4 = vld [vmem:[#allocation85_spill] sm:$0xff] }
 0x51e   :  { %6524 = vpow2.f32 %v4720_v57  ;;  %v2193_v57 = vrot.slane %v7624_v11, 6 }
 0x51f   :  { %6526 = vtanh.f32 %v2171_v44 }
 0x521   :  { %v6519_v59 = vpop.eup %6518 }
 0x522   :  { %v2014_v54 = vmul.f32 %v6519_v59, %v6517_v47  ;;  %v8821_v47 = vld [vmem:[#allocation89_spill] sm:$0xff]  ;;  %v8822_v59 = vld [vmem:[#allocation90_spill] sm:$0xff] }
 0x524   :  { %2265 = vmatmul.mubr.f32.vlgmr.msra.gmra.mrb[14].mxu0 %v2014_v54  ;;  %2336 = vmatmul.mubr.f32.vlgmr.msra.gmra.mrb[22].mxu1 %v2014_v54  ;;  %v4504_v8 = vrot.slane %v2014_v54, 4 }
 0x525   :  { %5517 = vmatpush1.bf16.msra.mxu0 %v8693_v61  ;;  %5549 = vmatpush1.bf16.msra.mxu1 %v8694_v10 }
 0x526   :  { %v6521_v30 = vpop.eup %6520  ;;  %5519 = vmatprep.subr.bf16.mxu0 %v8695_v15  ;;  %5551 = vmatprep.subr.bf16.mxu1 %v8754_v2  ;;  %v7727_v62 = vsel %vm141_vm0, %v4519_v0, %v4504_v8 }
 0x527   :  { %v6523_v35 = vpop.eup %6522  ;;  %v2182_v43 = vadd.f32 1.0, %v6521_v30  ;;  %2409 = vmatprep.mubr.f32.mxu0 %v8629_v38  ;;  %2480 = vmatprep.mubr.f32.mxu1 %v8629_v38 }
 0x528   :  { %v2183_v6 = vadd.f32 1.0, %v6523_v35  ;;  %v6525_v5 = vpop.eup %6524 }
 0x529   :  { %6528 = vrcp.f32 %v2182_v43  ;;  %5521 = vmatpush1.bf16.msra.mxu0 %v8755_v58  ;;  %5553 = vmatpush1.bf16.msra.mxu1 %v8815_v46  ;;  %v6527_v63 = vpop.eup %6526  ;;  %v2184_v52 = vadd.f32 1.0, %v6525_v5  ;;  %v8824_v5 = vld [vmem:[#allocation21_spill] sm:$0xff] }
 0x52a   :  { %6530 = vrcp.f32 %v2183_v6  ;;  %5523 = vmatprep.subr.bf16.mxu0 %v8816_v39  ;;  %5555 = vmatprep.subr.bf16.mxu1 %v8817_v53 }
 0x52b   :  { %6532 = vrcp.f32 %v2184_v52  ;;  %v8830_v52 = vld [vmem:[#allocation24_spill] sm:$0xff] }
 0x52d   :  { %5525 = vmatpush1.bf16.msra.mxu0 %v8818_v49  ;;  %5557 = vmatpush1.bf16.msra.mxu1 %v8819_v4 }
 0x52e   :  { %5527 = vmatprep.subr.bf16.mxu0 %v8761_v27  ;;  %5559 = vmatprep.subr.bf16.mxu1 %v8762_v55 }
 0x531   :  { %5529 = vmatpush1.bf16.msra.mxu0 %v8820_v42  ;;  %5561 = vmatpush1.bf16.msra.mxu1 %v8821_v47 }
 0x532   :  { %5531 = vmatprep.subr.bf16.mxu0 %v8822_v59  ;;  %5563 = vmatprep.subr.bf16.mxu1 %v8823_v56 }
 0x533   :  { %v6529_v54 = vpop.eup %6528 }
 0x534   :  { %v6531_v44 = vpop.eup %6530  ;;  %v2196_v8 = vmul.f32 %v6529_v54, %v6527_v63  ;;  %v8825_v63 = vld [vmem:[#allocation34_spill] sm:$0xff] }
 0x535   :  { %v2195_v0 = vmul.f32 %v6531_v44, %v2193_v57  ;;  %5533 = vmatpush1.bf16.msra.mxu0 %v8709_v51  ;;  %5565 = vmatpush1.bf16.msra.mxu1 %v8710_v7  ;;  %v6533_v11 = vpop.eup %6532  ;;  %v8826_v54 = vld [vmem:[#allocation22_spill] sm:$0xff]  ;;  %v8827_v57 = vld [vmem:[#allocation35_spill] sm:$0xff] }
 0x536   :  { %5535 = vmatprep.subr.bf16.mxu0 %v8711_v22  ;;  %5567 = vmatprep.subr.bf16.mxu1 %v8767_v60  ;;  %v8828_v44 = vld [vmem:[#allocation23_spill] sm:$0xff] }
 0x537   :  { %v7748_v30 = vadd.f32 %v2196_v8, %v2195_v0  ;;  %v8829_v8 = vld [vmem:[#allocation36_spill] sm:$0xff]  ;;  %v8831_v0 = vld [vmem:[#allocation37_spill] sm:$0xff] }
 0x539   :  { %5537 = vmatpush1.bf16.msra.mxu0 %v8768_v45  ;;  %5569 = vmatpush1.bf16.msra.mxu1 %v8769_v14  ;;  %6534 = vtanh.f32 %v7748_v30 }
 0x53a   :  { %5539 = vmatprep.subr.bf16.mxu0 %v8770_v21  ;;  %5571 = vmatprep.subr.bf16.mxu1 %v8771_v34 }
 0x53d   :  { %5541 = vmatpush1.bf16.msra.mxu0 %v8717_v1  ;;  %5573 = vmatpush1.bf16.msra.mxu1 %v8718_v23 }
 0x53e   :  { %5543 = vmatprep.subr.bf16.mxu0 %v8719_v50  ;;  %5575 = vmatprep.subr.bf16.mxu1 %v8720_v19 }
 0x541   :  { %5545 = vmatpush1.bf16.msra.mxu0 %v8721_v16  ;;  %5577 = vmatpush1.bf16.msra.mxu1 %v8722_v36 }
 0x542   :  { %5579 = vmatprep.subr.bf16.mxu0 %v8723_v29  ;;  %5611 = vmatprep.subr.bf16.mxu1 %v8724_v31 }
 0x543   :  { %v6535_v35 = vpop.eup %6534 }
 0x544   :  { %v2199_v43 = vmul.f32 %v6535_v35, %v6533_v11  ;;  %v8832_v11 = vld [vmem:[#allocation25_spill] sm:$0xff]  ;;  %v8833_v35 = vld [vmem:[#allocation38_spill] sm:$0xff] }
 0x546   :  { %v2343_v6 = vrot.slane %v2199_v43, 6  ;;  %v8834_v43 = vld [vmem:[#allocation26_spill] sm:$0xff] }
 0x548   :  { %2410 = vmatmul.mubr.f32.vlgmr.msra.gmra.mrb[14].mxu0 %v2343_v6  ;;  %2481 = vmatmul.mubr.f32.vlgmr.msra.gmra.mrb[22].mxu1 %v2343_v6 }
 0x549   :  { %5581 = vmatpush1.bf16.msra.mxu0 %v6965_v9  ;;  %5613 = vmatpush1.bf16.msra.mxu1 %v7068_v25 }
 0x54a   :  { %5583 = vmatprep.subr.bf16.mxu0 %v6967_v13  ;;  %5615 = vmatprep.subr.bf16.mxu1 %v7071_v26 }
 0x54b   :  { %2579 = vmatprep.mubr.f32.mxu0 %v8629_v38  ;;  %2650 = vmatprep.mubr.f32.mxu1 %v8629_v38 }
 0x54d   :  { %5585 = vmatpush1.bf16.msra.mxu0 %v6971_v17  ;;  %5617 = vmatpush1.bf16.msra.mxu1 %v7076_v32 }
 0x54e   :  { %5587 = vmatprep.subr.bf16.mxu0 %v6974_v18  ;;  %5619 = vmatprep.subr.bf16.mxu1 %v7079_v33 }
 0x551   :  { %5589 = vmatpush1.bf16.msra.mxu0 %v6980_v24  ;;  %5621 = vmatpush1.bf16.msra.mxu1 %v7083_v40 }
 0x552   :  { %5591 = vmatprep.subr.bf16.mxu0 %v6992_v28  ;;  %5623 = vmatprep.subr.bf16.mxu1 %v7087_v41 }
 0x555   :  { %5593 = vmatpush1.bf16.msra.mxu0 %v7001_v37  ;;  %5625 = vmatpush1.bf16.msra.mxu1 %v7090_v48 }
 0x556   :  { %5595 = vmatprep.subr.bf16.mxu0 %v8824_v5  ;;  %5627 = vmatprep.subr.bf16.mxu1 %v8825_v63  ;;  %v8835_v5 = vld [vmem:[#allocation39_spill] sm:$0xff] }
 0x557   :  { %v8836_v63 = vld [vmem:[#allocation27_spill] sm:$0xff] }
 0x559   :  { %5597 = vmatpush1.bf16.msra.mxu0 %v8826_v54  ;;  %5629 = vmatpush1.bf16.msra.mxu1 %v8827_v57  ;;  %v8837_v54 = vld [vmem:[#allocation40_spill] sm:$0xff] }
 0x55a   :  { %5599 = vmatprep.subr.bf16.mxu0 %v8828_v44  ;;  %5631 = vmatprep.subr.bf16.mxu1 %v8829_v8  ;;  %v8838_v57 = vld [vmem:[#allocation28_spill] sm:$0xff]  ;;  %v8839_v44 = vld [vmem:[#allocation41_spill] sm:$0xff]  ;;  %v8840_v8 = vld [vmem:[#allocation42_spill] sm:$0xff] }
 0x55d   :  { %5601 = vmatpush1.bf16.msra.mxu0 %v8830_v52  ;;  %5633 = vmatpush1.bf16.msra.mxu1 %v8831_v0  ;;  %v8841_v52 = vld [vmem:[#allocation43_spill] sm:$0xff]  ;;  %v8874_v0 = vld [vmem:[#allocation110_spill] sm:$0xff] }
 0x55e   :  { %5603 = vmatprep.subr.bf16.mxu0 %v8832_v11  ;;  %5635 = vmatprep.subr.bf16.mxu1 %v8833_v35  ;;  %v8842_v11 = vld [vmem:[#allocation44_spill] sm:$0xff]  ;;  %v8843_v35 = vld [vmem:[#allocation45_spill] sm:$0xff] }
 0x561   :  { %5605 = vmatpush1.bf16.msra.mxu0 %v8834_v43  ;;  %5637 = vmatpush1.bf16.msra.mxu1 %v8835_v5  ;;  %v8844_v43 = vld [vmem:[#allocation46_spill] sm:$0xff]  ;;  %v8845_v5 = vld [vmem:[#allocation47_spill] sm:$0xff] }
 0x562   :  { %5607 = vmatprep.subr.bf16.mxu0 %v8836_v63  ;;  %5639 = vmatprep.subr.bf16.mxu1 %v8837_v54  ;;  %v8855_v54 = vld [vmem:[#allocation57_spill] sm:$0xff]  ;;  %v8856_v63 = vld [vmem:[#allocation58_spill] sm:$0xff] }
 0x565   :  { %5609 = vmatpush1.bf16.msra.mxu0 %v8838_v57  ;;  %5641 = vmatpush1.bf16.msra.mxu1 %v8839_v44  ;;  %v8846_v57 = vld [vmem:[#allocation48_spill] sm:$0xff]  ;;  %v8847_v44 = vld [vmem:[#allocation49_spill] sm:$0xff] }
 0x566   :  { %5643 = vmatprep.subr.bf16.mxu0 %v8840_v8  ;;  %5675 = vmatprep.subr.bf16.mxu1 %v8841_v52  ;;  %v8848_v8 = vld [vmem:[#allocation50_spill] sm:$0xff]  ;;  %v8849_v52 = vld [vmem:[#allocation51_spill] sm:$0xff] }
 0x568   :  { %2580 = vmatmul.mubr.f32.vlgmr.msra.gmra.mrb[16].mxu0 %v2343_v6  ;;  %2651 = vmatmul.mubr.f32.vlgmr.msra.gmra.mrb[24].mxu1 %v2343_v6  ;;  %v8850_v6 = vld [vmem:[#allocation52_spill] sm:$0xff] }
 0x569   :  { %5645 = vmatpush1.bf16.msra.mxu0 %v8842_v11  ;;  %5677 = vmatpush1.bf16.msra.mxu1 %v8843_v35  ;;  %v8851_v11 = vld [vmem:[#allocation53_spill] sm:$0xff]  ;;  %v8852_v35 = vld [vmem:[#allocation54_spill] sm:$0xff] }
 0x56a   :  { %5647 = vmatprep.subr.bf16.mxu0 %v8844_v43  ;;  %5679 = vmatprep.subr.bf16.mxu1 %v8845_v5  ;;  %v8853_v43 = vld [vmem:[#allocation55_spill] sm:$0xff]  ;;  %v8854_v5 = vld [vmem:[#allocation56_spill] sm:$0xff] }
 0x56b   :  { %2752 = vmatprep.mubr.f32.mxu0 %v8629_v38  ;;  %2823 = vmatprep.mubr.f32.mxu1 %v8629_v38 }
 0x56d   :  { %5649 = vmatpush1.bf16.msra.mxu0 %v8846_v57  ;;  %5681 = vmatpush1.bf16.msra.mxu1 %v8847_v44  ;;  %v8857_v57 = vld [vmem:[#allocation59_spill] sm:$0xff]  ;;  %v8858_v44 = vld [vmem:[#allocation60_spill] sm:$0xff] }
 0x56e   :  { %5651 = vmatprep.subr.bf16.mxu0 %v8848_v8  ;;  %5683 = vmatprep.subr.bf16.mxu1 %v8849_v52  ;;  %v8859_v8 = vld [vmem:[#allocation61_spill] sm:$0xff]  ;;  %v8860_v52 = vld [vmem:[#allocation62_spill] sm:$0xff] }
 0x571   :  { %5653 = vmatpush1.bf16.msra.mxu0 %v8850_v6  ;;  %5685 = vmatpush1.bf16.msra.mxu1 %v8851_v11  ;;  %v8861_v6 = vld [vmem:[#allocation63_spill] sm:$0xff]  ;;  %v8862_v11 = vld [vmem:[#allocation64_spill] sm:$0xff] }
 0x572   :  { %5655 = vmatprep.subr.bf16.mxu0 %v8852_v35  ;;  %5687 = vmatprep.subr.bf16.mxu1 %v8853_v43  ;;  %v8863_v35 = vld [vmem:[#allocation65_spill] sm:$0xff]  ;;  %v8864_v43 = vld [vmem:[#allocation66_spill] sm:$0xff] }
 0x575   :  { %5657 = vmatpush1.bf16.msra.mxu0 %v8854_v5  ;;  %5689 = vmatpush1.bf16.msra.mxu1 %v8855_v54  ;;  %v8865_v5 = vld [vmem:[#allocation67_spill] sm:$0xff]  ;;  %v8866_v54 = vld [vmem:[#allocation68_spill] sm:$0xff] }
 0x576   :  { %5659 = vmatprep.subr.bf16.mxu0 %v8856_v63  ;;  %5691 = vmatprep.subr.bf16.mxu1 %v8857_v57  ;;  %v8867_v63 = vld [vmem:[#allocation69_spill] sm:$0xff]  ;;  %v8868_v57 = vld [vmem:[#allocation70_spill] sm:$0xff] }
 0x579   :  { %5661 = vmatpush1.bf16.msra.mxu0 %v8858_v44  ;;  %5693 = vmatpush1.bf16.msra.mxu1 %v8859_v8  ;;  %v8869_v44 = vld [vmem:[#allocation71_spill] sm:$0xff]  ;;  %v8870_v8 = vld [vmem:[#allocation72_spill] sm:$0xff] }
 0x57a   :  { %5663 = vmatprep.subr.bf16.mxu0 %v8860_v52  ;;  %5695 = vmatprep.subr.bf16.mxu1 %v8861_v6  ;;  %v8871_v52 = vld [vmem:[#allocation73_spill] sm:$0xff]  ;;  %v8872_v6 = vld [vmem:[#allocation74_spill] sm:$0xff] }
 0x57d   :  { %5665 = vmatpush1.bf16.msra.mxu0 %v8862_v11  ;;  %5697 = vmatpush1.bf16.msra.mxu1 %v8863_v35  ;;  %v8873_v11 = vld [vmem:[#allocation75_spill] sm:$0xff] }
 0x57e   :  { %5667 = vmatprep.subr.bf16.mxu0 %v8864_v43  ;;  %5699 = vmatprep.subr.bf16.mxu1 %v8865_v5 }
 0x581   :  { %5669 = vmatpush1.bf16.msra.mxu0 %v8866_v54  ;;  %5701 = vmatpush1.bf16.msra.mxu1 %v8867_v63 }
 0x582   :  { %5671 = vmatprep.subr.bf16.mxu0 %v8868_v57  ;;  %5703 = vmatprep.subr.bf16.mxu1 %v8869_v44 }
 0x585   :  { %5673 = vmatpush1.bf16.msra.mxu0 %v8870_v8  ;;  %5705 = vmatpush1.bf16.msra.mxu1 %v8871_v52  ;;  %v8875_v52 = vld [vmem:[#allocation113_spill] sm:$0xff] }
 0x586   :  { %5707 = vmatprep.subr.bf16.mxu0 %v8872_v6  ;;  %5739 = vmatprep.subr.bf16.mxu1 %v8873_v11 }
 0x61b   :  { %v2411_v35 = vpop.f32.mrb[14].mxu0  ;;  %v2482_v43 = vpop.f32.mrb[22].mxu1 }
 0x61c   :  { %v2487_v5 = vadd.f32 %v2411_v35, %v8874_v0  ;;  %v2413_v48 = vpop.f32.mrb[15].mxu0  ;;  %v2484_v54 = vpop.f32.mrb[23].mxu1  ;;  %v2489_v41 = vadd.f32 %v2482_v43, %v8875_v52  ;;  %v8876_v52 = vld [vmem:[#allocation106_spill] sm:$0xff] }
 0x61d   :  { %v2488_v63 = vadd.f32 %v2413_v48, %v8751_v20  ;;  %v2490_v8 = vadd.f32 %v2484_v54, %v8752_v3 }
 0x61e   :  { %v4721_v37 = vmul.f32 -1.442695, %v2487_v5 }
 0x61f   :  { %v4722_v57 = vmul.f32 -1.442695, %v2488_v63  ;;  %v4723_v44 = vmul.f32 -1.442695, %v2490_v8 }
 0x620   :  { %6536 = vpow2.f32 %v4721_v37 }
 0x621   :  { %6538 = vpow2.f32 %v4722_v57 }
 0x622   :  { %6540 = vpow2.f32 %v4723_v44 }
 0x623   :  { %6542 = vtanh.f32 %v2489_v41 }
 0x62a   :  { %v6537_v6 = vpop.eup %6536 }
 0x62b   :  { %v6539_v28 = vpop.eup %6538  ;;  %v2500_v11 = vadd.f32 1.0, %v6537_v6 }
 0x62c   :  { %v2501_v40 = vadd.f32 1.0, %v6539_v28  ;;  %v6541_v35 = vpop.eup %6540  ;;  %v8877_v28 = vld [vmem:[#allocation107_spill] sm:$0xff] }
 0x62d   :  { %6544 = vrcp.f32 %v2500_v11  ;;  %v6543_v0 = vpop.eup %6542  ;;  %v2502_v37 = vadd.f32 1.0, %v6541_v35 }
 0x62e   :  { %6546 = vrcp.f32 %v2501_v40 }
 0x62f   :  { %6548 = vrcp.f32 %v2502_v37 }
 0x637   :  { %v6545_v48 = vpop.eup %6544 }
 0x638   :  { %v6547_v5 = vpop.eup %6546  ;;  %v2511_v63 = vmul.f32 %v6545_v48, %v6543_v0  ;;  %v8878_v0 = vld [vmem:[#allocation109_spill] sm:$0xff] }
 0x639   :  { %v2510_v57 = vmul.f32 %v6547_v5, %v7712_v12  ;;  %v6549_v12 = vpop.eup %6548 }
 0x63b   :  { %v7836_v54 = vadd.f32 %v2511_v63, %v2510_v57  ;;  %v2581_v8 = vpop.f32.mrb[16].mxu0  ;;  %v2652_v43 = vpop.f32.mrb[24].mxu1  ;;  %v8879_v63 = vld [vmem:[#allocation108_spill] sm:$0xff] }
 0x63c   :  { %v2657_v6 = vadd.f32 %v2581_v8, %v8876_v52  ;;  %v2583_v44 = vpop.f32.mrb[17].mxu0  ;;  %v2654_v41 = vpop.f32.mrb[25].mxu1  ;;  %v2659_v57 = vadd.f32 %v2652_v43, %v8879_v63 }
 0x63d   :  { %v2658_v11 = vadd.f32 %v2583_v44, %v8877_v28  ;;  %6550 = vtanh.f32 %v7836_v54  ;;  %v2660_v35 = vadd.f32 %v2654_v41, %v8878_v0  ;;  %v2681_v41 = vrot.slane %v7748_v30, 6 }
 0x63e   :  { %v4724_v40 = vmul.f32 -1.442695, %v2657_v6 }
 0x63f   :  { %v4725_v3 = vmul.f32 -1.442695, %v2658_v11  ;;  %v4726_v5 = vmul.f32 -1.442695, %v2660_v35 }
 0x640   :  { %6552 = vpow2.f32 %v4724_v40 }
 0x641   :  { %6554 = vpow2.f32 %v4725_v3 }
 0x642   :  { %6556 = vpow2.f32 %v4726_v5 }
 0x643   :  { %6558 = vtanh.f32 %v2659_v57  ;;  %v8881_v57 = vld [vmem:[#allocation31_spill] sm:$0xff] }
 0x647   :  { %v6551_v48 = vpop.eup %6550 }
 0x648   :  { %v2514_v37 = vmul.f32 %v6551_v48, %v6549_v12 }
 0x64a   :  { %v6553_v8 = vpop.eup %6552  ;;  %2753 = vmatmul.mubr.f32.vlgmr.msra.gmra.mrb[18].mxu0 %v2514_v37  ;;  %2824 = vmatmul.mubr.f32.vlgmr.msra.gmra.mrb[26].mxu1 %v2514_v37  ;;  %v4507_v52 = vrot.slane %v2514_v37, 2  ;;  %v8882_v37 = vld [vmem:[#allocation19_spill] sm:$0xff] }
 0x64b   :  { %v6555_v44 = vpop.eup %6554  ;;  %v2670_v28 = vadd.f32 1.0, %v6553_v8  ;;  %5709 = vmatpush1.bf16.msra.mxu0 %v8693_v61  ;;  %5741 = vmatpush1.bf16.msra.mxu1 %v8694_v10  ;;  %v8883_v8 = vld [vmem:[#allocation32_spill] sm:$0xff] }
 0x64c   :  { %v2671_v3 = vadd.f32 1.0, %v6555_v44  ;;  %5711 = vmatprep.subr.bf16.mxu0 %v8695_v15  ;;  %5743 = vmatprep.subr.bf16.mxu1 %v8754_v2  ;;  %v7849_v43 = vsel %vm4521_vm6, %v7727_v62, %v4507_v52  ;;  %v6557_v62 = vpop.eup %6556  ;;  %v8884_v44 = vld [vmem:[#allocation20_spill] sm:$0xff] }
 0x64d   :  { %8880 = vst [vmem:[#allocation76_spill] sm:$0xff] %v7849_v43  ;;  %6560 = vrcp.f32 %v2670_v28  ;;  %2894 = vmatprep.mubr.f32.mxu0 %v8629_v38  ;;  %2965 = vmatprep.mubr.f32.mxu1 %v8629_v38  ;;  %v6559_v52 = vpop.eup %6558  ;;  %v2672_v40 = vadd.f32 1.0, %v6557_v62  ;;  %v8886_v62 = vld [vmem:[#allocation21_spill] sm:$0xff]  ;;  %v8896_v43 = vld [vmem:[#allocation26_spill] sm:$0xff] }
 0x64e   :  { %6562 = vrcp.f32 %v2671_v3  ;;  %v8885_v3 = vld [vmem:[#allocation33_spill] sm:$0xff] }
 0x64f   :  { %5713 = vmatpush1.bf16.msra.mxu0 %v8755_v58  ;;  %5745 = vmatpush1.bf16.msra.mxu1 %v8815_v46  ;;  %6564 = vrcp.f32 %v2672_v40  ;;  %v8892_v40 = vld [vmem:[#allocation24_spill] sm:$0xff] }
 0x650   :  { %5715 = vmatprep.subr.bf16.mxu0 %v8816_v39  ;;  %5747 = vmatprep.subr.bf16.mxu1 %v8817_v53 }
 0x653   :  { %5717 = vmatpush1.bf16.msra.mxu0 %v8818_v49  ;;  %5749 = vmatpush1.bf16.msra.mxu1 %v8819_v4 }
 0x654   :  { %5719 = vmatprep.subr.bf16.mxu0 %v8761_v27  ;;  %5751 = vmatprep.subr.bf16.mxu1 %v8762_v55 }
 0x657   :  { %v6561_v6 = vpop.eup %6560  ;;  %5721 = vmatpush1.bf16.msra.mxu0 %v8820_v42  ;;  %5753 = vmatpush1.bf16.msra.mxu1 %v8821_v47 }
 0x658   :  { %v6563_v28 = vpop.eup %6562  ;;  %v2684_v11 = vmul.f32 %v6561_v6, %v6559_v52  ;;  %5723 = vmatprep.subr.bf16.mxu0 %v8822_v59  ;;  %5755 = vmatprep.subr.bf16.mxu1 %v8823_v56  ;;  %v8887_v52 = vld [vmem:[#allocation34_spill] sm:$0xff] }
 0x659   :  { %v2683_v35 = vmul.f32 %v6563_v28, %v2681_v41  ;;  %v6565_v30 = vpop.eup %6564  ;;  %v8888_v6 = vld [vmem:[#allocation22_spill] sm:$0xff]  ;;  %v8889_v41 = vld [vmem:[#allocation35_spill] sm:$0xff] }
 0x65a   :  { %v8890_v28 = vld [vmem:[#allocation23_spill] sm:$0xff] }
 0x65b   :  { %v7866_v12 = vadd.f32 %v2684_v11, %v2683_v35  ;;  %5725 = vmatpush1.bf16.msra.mxu0 %v8709_v51  ;;  %5757 = vmatpush1.bf16.msra.mxu1 %v8710_v7  ;;  %v8891_v11 = vld [vmem:[#allocation36_spill] sm:$0xff]  ;;  %v8893_v35 = vld [vmem:[#allocation37_spill] sm:$0xff] }
 0x65c   :  { %5727 = vmatprep.subr.bf16.mxu0 %v8711_v22  ;;  %5759 = vmatprep.subr.bf16.mxu1 %v8767_v60 }
 0x65d   :  { %6566 = vtanh.f32 %v7866_v12 }
 0x65f   :  { %5729 = vmatpush1.bf16.msra.mxu0 %v8768_v45  ;;  %5761 = vmatpush1.bf16.msra.mxu1 %v8769_v14 }
 0x660   :  { %5731 = vmatprep.subr.bf16.mxu0 %v8770_v21  ;;  %5763 = vmatprep.subr.bf16.mxu1 %v8771_v34 }
 0x663   :  { %5733 = vmatpush1.bf16.msra.mxu0 %v8717_v1  ;;  %5765 = vmatpush1.bf16.msra.mxu1 %v8718_v23 }
 0x664   :  { %5735 = vmatprep.subr.bf16.mxu0 %v8719_v50  ;;  %5767 = vmatprep.subr.bf16.mxu1 %v8720_v19 }
 0x667   :  { %v6567_v48 = vpop.eup %6566  ;;  %5737 = vmatpush1.bf16.msra.mxu0 %v8721_v16  ;;  %5769 = vmatpush1.bf16.msra.mxu1 %v8722_v36 }
 0x668   :  { %v2687_v5 = vmul.f32 %v6567_v48, %v6565_v30  ;;  %5771 = vmatprep.subr.bf16.mxu0 %v8723_v29  ;;  %5803 = vmatprep.subr.bf16.mxu1 %v8724_v31  ;;  %v8894_v30 = vld [vmem:[#allocation25_spill] sm:$0xff]  ;;  %v8895_v48 = vld [vmem:[#allocation38_spill] sm:$0xff] }
 0x66a   :  { %2895 = vmatmul.mubr.f32.vlgmr.msra.gmra.mrb[18].mxu0 %v2687_v5  ;;  %2966 = vmatmul.mubr.f32.vlgmr.msra.gmra.mrb[26].mxu1 %v2687_v5 }
 0x66b   :  { %5773 = vmatpush1.bf16.msra.mxu0 %v6965_v9  ;;  %5805 = vmatpush1.bf16.msra.mxu1 %v7068_v25 }
 0x66c   :  { %5775 = vmatprep.subr.bf16.mxu0 %v6967_v13  ;;  %5807 = vmatprep.subr.bf16.mxu1 %v7071_v26 }
 0x66d   :  { %3064 = vmatprep.mubr.f32.mxu0 %v8629_v38  ;;  %3135 = vmatprep.mubr.f32.mxu1 %v8629_v38 }
 0x66f   :  { %5777 = vmatpush1.bf16.msra.mxu0 %v6971_v17  ;;  %5809 = vmatpush1.bf16.msra.mxu1 %v7076_v32 }
 0x670   :  { %5779 = vmatprep.subr.bf16.mxu0 %v6974_v18  ;;  %5811 = vmatprep.subr.bf16.mxu1 %v7079_v33 }
 0x673   :  { %5781 = vmatpush1.bf16.msra.mxu0 %v6980_v24  ;;  %5813 = vmatpush1.bf16.msra.mxu1 %v8881_v57 }
 0x674   :  { %5783 = vmatprep.subr.bf16.mxu0 %v8882_v37  ;;  %5815 = vmatprep.subr.bf16.mxu1 %v8883_v8 }
 0x677   :  { %5785 = vmatpush1.bf16.msra.mxu0 %v8884_v44  ;;  %5817 = vmatpush1.bf16.msra.mxu1 %v8885_v3 }
 0x678   :  { %5787 = vmatprep.subr.bf16.mxu0 %v8886_v62  ;;  %5819 = vmatprep.subr.bf16.mxu1 %v8887_v52  ;;  %v8897_v62 = vld [vmem:[#allocation39_spill] sm:$0xff] }
 0x679   :  { %v8898_v52 = vld [vmem:[#allocation27_spill] sm:$0xff] }
 0x67b   :  { %5789 = vmatpush1.bf16.msra.mxu0 %v8888_v6  ;;  %5821 = vmatpush1.bf16.msra.mxu1 %v8889_v41  ;;  %v8899_v6 = vld [vmem:[#allocation40_spill] sm:$0xff] }
 0x67c   :  { %5791 = vmatprep.subr.bf16.mxu0 %v8890_v28  ;;  %5823 = vmatprep.subr.bf16.mxu1 %v8891_v11  ;;  %v8900_v41 = vld [vmem:[#allocation28_spill] sm:$0xff]  ;;  %v8901_v28 = vld [vmem:[#allocation41_spill] sm:$0xff]  ;;  %v8902_v11 = vld [vmem:[#allocation42_spill] sm:$0xff] }
 0x67f   :  { %5793 = vmatpush1.bf16.msra.mxu0 %v8892_v40  ;;  %5825 = vmatpush1.bf16.msra.mxu1 %v8893_v35  ;;  %v8903_v40 = vld [vmem:[#allocation43_spill] sm:$0xff]  ;;  %v8936_v35 = vld [vmem:[#allocation110_spill] sm:$0xff] }
 0x680   :  { %5795 = vmatprep.subr.bf16.mxu0 %v8894_v30  ;;  %5827 = vmatprep.subr.bf16.mxu1 %v8895_v48  ;;  %v8904_v30 = vld [vmem:[#allocation44_spill] sm:$0xff]  ;;  %v8905_v48 = vld [vmem:[#allocation45_spill] sm:$0xff] }
 0x683   :  { %5797 = vmatpush1.bf16.msra.mxu0 %v8896_v43  ;;  %5829 = vmatpush1.bf16.msra.mxu1 %v8897_v62  ;;  %v8906_v43 = vld [vmem:[#allocation46_spill] sm:$0xff]  ;;  %v8907_v62 = vld [vmem:[#allocation47_spill] sm:$0xff] }
 0x684   :  { %5799 = vmatprep.subr.bf16.mxu0 %v8898_v52  ;;  %5831 = vmatprep.subr.bf16.mxu1 %v8899_v6  ;;  %v8917_v6 = vld [vmem:[#allocation57_spill] sm:$0xff]  ;;  %v8918_v52 = vld [vmem:[#allocation58_spill] sm:$0xff] }
 0x687   :  { %5801 = vmatpush1.bf16.msra.mxu0 %v8900_v41  ;;  %5833 = vmatpush1.bf16.msra.mxu1 %v8901_v28  ;;  %v8908_v41 = vld [vmem:[#allocation48_spill] sm:$0xff]  ;;  %v8909_v28 = vld [vmem:[#allocation49_spill] sm:$0xff] }
 0x688   :  { %5835 = vmatprep.subr.bf16.mxu0 %v8902_v11  ;;  %5867 = vmatprep.subr.bf16.mxu1 %v8903_v40  ;;  %v8910_v11 = vld [vmem:[#allocation50_spill] sm:$0xff]  ;;  %v8911_v40 = vld [vmem:[#allocation51_spill] sm:$0xff] }
 0x68a   :  { %3065 = vmatmul.mubr.f32.vlgmr.msra.gmra.mrb[20].mxu0 %v2687_v5  ;;  %3136 = vmatmul.mubr.f32.vlgmr.msra.gmra.mrb[28].mxu1 %v2687_v5  ;;  %v8912_v5 = vld [vmem:[#allocation52_spill] sm:$0xff] }
 0x68b   :  { %5837 = vmatpush1.bf16.msra.mxu0 %v8904_v30  ;;  %5869 = vmatpush1.bf16.msra.mxu1 %v8905_v48  ;;  %v8913_v30 = vld [vmem:[#allocation53_spill] sm:$0xff]  ;;  %v8914_v48 = vld [vmem:[#allocation54_spill] sm:$0xff] }
 0x68c   :  { %5839 = vmatprep.subr.bf16.mxu0 %v8906_v43  ;;  %5871 = vmatprep.subr.bf16.mxu1 %v8907_v62  ;;  %v8915_v43 = vld [vmem:[#allocation55_spill] sm:$0xff]  ;;  %v8916_v62 = vld [vmem:[#allocation56_spill] sm:$0xff] }
 0x68d   :  { %3249 = vmatprep.mubr.f32.mxu0 %v8629_v38  ;;  %3320 = vmatprep.mubr.f32.mxu1 %v8629_v38 }
 0x68f   :  { %5841 = vmatpush1.bf16.msra.mxu0 %v8908_v41  ;;  %5873 = vmatpush1.bf16.msra.mxu1 %v8909_v28  ;;  %v8919_v41 = vld [vmem:[#allocation59_spill] sm:$0xff]  ;;  %v8920_v28 = vld [vmem:[#allocation60_spill] sm:$0xff] }
 0x690   :  { %5843 = vmatprep.subr.bf16.mxu0 %v8910_v11  ;;  %5875 = vmatprep.subr.bf16.mxu1 %v8911_v40  ;;  %v8921_v11 = vld [vmem:[#allocation61_spill] sm:$0xff]  ;;  %v8922_v40 = vld [vmem:[#allocation62_spill] sm:$0xff] }
 0x693   :  { %5845 = vmatpush1.bf16.msra.mxu0 %v8912_v5  ;;  %5877 = vmatpush1.bf16.msra.mxu1 %v8913_v30  ;;  %v8923_v5 = vld [vmem:[#allocation63_spill] sm:$0xff]  ;;  %v8924_v30 = vld [vmem:[#allocation64_spill] sm:$0xff] }
 0x694   :  { %5847 = vmatprep.subr.bf16.mxu0 %v8914_v48  ;;  %5879 = vmatprep.subr.bf16.mxu1 %v8915_v43  ;;  %v8925_v48 = vld [vmem:[#allocation65_spill] sm:$0xff]  ;;  %v8926_v43 = vld [vmem:[#allocation66_spill] sm:$0xff] }
 0x697   :  { %5849 = vmatpush1.bf16.msra.mxu0 %v8916_v62  ;;  %5881 = vmatpush1.bf16.msra.mxu1 %v8917_v6  ;;  %v8927_v62 = vld [vmem:[#allocation67_spill] sm:$0xff]  ;;  %v8928_v6 = vld [vmem:[#allocation68_spill] sm:$0xff] }
 0x698   :  { %5851 = vmatprep.subr.bf16.mxu0 %v8918_v52  ;;  %5883 = vmatprep.subr.bf16.mxu1 %v8919_v41  ;;  %v8929_v52 = vld [vmem:[#allocation69_spill] sm:$0xff]  ;;  %v8930_v41 = vld [vmem:[#allocation70_spill] sm:$0xff] }
 0x69b   :  { %5853 = vmatpush1.bf16.msra.mxu0 %v8920_v28  ;;  %5885 = vmatpush1.bf16.msra.mxu1 %v8921_v11  ;;  %v8931_v28 = vld [vmem:[#allocation71_spill] sm:$0xff]  ;;  %v8932_v11 = vld [vmem:[#allocation72_spill] sm:$0xff] }
 0x69c   :  { %5855 = vmatprep.subr.bf16.mxu0 %v8922_v40  ;;  %5887 = vmatprep.subr.bf16.mxu1 %v8923_v5  ;;  %v8933_v40 = vld [vmem:[#allocation73_spill] sm:$0xff]  ;;  %v8934_v5 = vld [vmem:[#allocation74_spill] sm:$0xff] }
 0x69f   :  { %5857 = vmatpush1.bf16.msra.mxu0 %v8924_v30  ;;  %5889 = vmatpush1.bf16.msra.mxu1 %v8925_v48  ;;  %v8935_v30 = vld [vmem:[#allocation75_spill] sm:$0xff] }
 0x6a0   :  { %5859 = vmatprep.subr.bf16.mxu0 %v8926_v43  ;;  %5891 = vmatprep.subr.bf16.mxu1 %v8927_v62 }
 0x6a3   :  { %5861 = vmatpush1.bf16.msra.mxu0 %v8928_v6  ;;  %5893 = vmatpush1.bf16.msra.mxu1 %v8929_v52 }
 0x6a4   :  { %5863 = vmatprep.subr.bf16.mxu0 %v8930_v41  ;;  %5895 = vmatprep.subr.bf16.mxu1 %v8931_v28  ;;  %v8937_v28 = vld [vmem:[#allocation112_spill] sm:$0xff] }
 0x6a7   :  { %5865 = vmatpush1.bf16.msra.mxu0 %v8932_v11  ;;  %5897 = vmatpush1.bf16.msra.mxu1 %v8933_v40  ;;  %v8938_v40 = vld [vmem:[#allocation113_spill] sm:$0xff] }
 0x6a8   :  { %5899 = vmatprep.subr.bf16.mxu0 %v8934_v5  ;;  %5931 = vmatprep.subr.bf16.mxu1 %v8935_v30 }
 0x73d   :  { %v2896_v48 = vpop.f32.mrb[18].mxu0  ;;  %v2967_v43 = vpop.f32.mrb[26].mxu1 }
 0x73e   :  { %v2972_v62 = vadd.f32 %v2896_v48, %v8936_v35  ;;  %v2898_v3 = vpop.f32.mrb[19].mxu0  ;;  %v2969_v6 = vpop.f32.mrb[27].mxu1  ;;  %v2974_v37 = vadd.f32 %v2967_v43, %v8938_v40 }
 0x73f   :  { %v2973_v52 = vadd.f32 %v2898_v3, %v8751_v20  ;;  %v2975_v11 = vadd.f32 %v2969_v6, %v8937_v28 }
 0x740   :  { %v4727_v44 = vmul.f32 -1.442695, %v2972_v62 }
 0x741   :  { %v4728_v41 = vmul.f32 -1.442695, %v2973_v52  ;;  %v4729_v8 = vmul.f32 -1.442695, %v2975_v11 }
 0x742   :  { %6568 = vpow2.f32 %v4727_v44 }
 0x743   :  { %6570 = vpow2.f32 %v4728_v41 }
 0x744   :  { %6572 = vpow2.f32 %v4729_v8 }
 0x745   :  { %6574 = vtanh.f32 %v2974_v37 }
 0x74c   :  { %v6569_v5 = vpop.eup %6568 }
 0x74d   :  { %v6571_v57 = vpop.eup %6570  ;;  %v2985_v30 = vadd.f32 1.0, %v6569_v5 }
 0x74e   :  { %v2986_v24 = vadd.f32 1.0, %v6571_v57  ;;  %v6573_v48 = vpop.eup %6572 }
 0x74f   :  { %6576 = vrcp.f32 %v2985_v30  ;;  %v6575_v35 = vpop.eup %6574  ;;  %v2987_v44 = vadd.f32 1.0, %v6573_v48  ;;  %v8940_v30 = vld [vmem:[#allocation107_spill] sm:$0xff] }
 0x750   :  { %6578 = vrcp.f32 %v2986_v24  ;;  %v8939_v24 = vld [vmem:[#allocation106_spill] sm:$0xff] }
 0x751   :  { %6580 = vrcp.f32 %v2987_v44 }
 0x759   :  { %v6577_v3 = vpop.eup %6576 }
 0x75a   :  { %v6579_v62 = vpop.eup %6578  ;;  %v2996_v52 = vmul.f32 %v6577_v3, %v6575_v35 }
 0x75b   :  { %v2995_v41 = vmul.f32 %v6579_v62, %v7836_v54  ;;  %v6581_v3 = vpop.eup %6580 }
 0x75d   :  { %v7958_v6 = vadd.f32 %v2996_v52, %v2995_v41  ;;  %v3066_v11 = vpop.f32.mrb[20].mxu0  ;;  %v3137_v43 = vpop.f32.mrb[28].mxu1 }
 0x75e   :  { %v3146_v40 = vrot.slane %v3066_v11, 6  ;;  %v3068_v5 = vpop.f32.mrb[21].mxu0  ;;  %v3139_v8 = vpop.f32.mrb[29].mxu1  ;;  %v3148_v62 = vrot.slane %v3137_v43, 6 }
 0x75f   :  { %v3147_v37 = vrot.slane %v3068_v5, 6  ;;  %6582 = vtanh.f32 %v7958_v6  ;;  %v3149_v48 = vrot.slane %v3139_v8, 6 }
 0x760   :  { %v3154_v57 = vadd.f32 %v3146_v40, %v8939_v24  ;;  %v3156_v11 = vadd.f32 %v3148_v62, %v8879_v63 }
 0x761   :  { %v3155_v28 = vadd.f32 %v3147_v37, %v8940_v30  ;;  %v3157_v54 = vadd.f32 %v3149_v48, %v8878_v0 }
 0x762   :  { %v4730_v20 = vmul.f32 -1.442695, %v3154_v57  ;;  %v3178_v57 = vrot.slane %v7866_v12, 6 }
 0x763   :  { %v4731_v35 = vmul.f32 -1.442695, %v3155_v28  ;;  %v4732_v41 = vmul.f32 -1.442695, %v3157_v54 }
 0x764   :  { %6584 = vpow2.f32 %v4730_v20 }
 0x765   :  { %6586 = vpow2.f32 %v4731_v35 }
 0x766   :  { %6588 = vpow2.f32 %v4732_v41 }
 0x767   :  { %6590 = vtanh.f32 %v3156_v11 }
 0x769   :  { %v6583_v52 = vpop.eup %6582 }
 0x76a   :  { %v7964_v44 = vmul.f32 %v6583_v52, %v6581_v3 }
 0x76c   :  { %8941 = vst [vmem:[#allocation77_spill] sm:$0xff] %v7964_v44  ;;  %3250 = vmatmul.mubr.f32.vlgmr.msra.gmra.mrb[22].mxu0 %v7964_v44  ;;  %3321 = vmatmul.mubr.f32.vlgmr.msra.gmra.mrb[30].mxu1 %v7964_v44  ;;  %v8957_v44 = vld [vmem:[#allocation38_spill] sm:$0xff] }
 0x76d   :  { %5901 = vmatpush1.bf16.msra.mxu0 %v8693_v61  ;;  %5933 = vmatpush1.bf16.msra.mxu1 %v8694_v10 }
 0x76e   :  { %v6585_v20 = vpop.eup %6584  ;;  %5903 = vmatprep.subr.bf16.mxu0 %v8695_v15  ;;  %5935 = vmatprep.subr.bf16.mxu1 %v8754_v2 }
 0x76f   :  { %v6587_v28 = vpop.eup %6586  ;;  %v3167_v40 = vadd.f32 1.0, %v6585_v20  ;;  %3394 = vmatprep.mubr.f32.mxu0 %v8629_v38  ;;  %3465 = vmatprep.mubr.f32.mxu1 %v8629_v38  ;;  %v8942_v20 = vld [vmem:[#allocation18_spill] sm:$0xff] }
 0x770   :  { %v3168_v43 = vadd.f32 1.0, %v6587_v28  ;;  %v6589_v5 = vpop.eup %6588  ;;  %v8943_v28 = vld [vmem:[#allocation31_spill] sm:$0xff] }
 0x771   :  { %6592 = vrcp.f32 %v3167_v40  ;;  %5905 = vmatpush1.bf16.msra.mxu0 %v8755_v58  ;;  %5937 = vmatpush1.bf16.msra.mxu1 %v8815_v46  ;;  %v6591_v8 = vpop.eup %6590  ;;  %v3169_v54 = vadd.f32 1.0, %v6589_v5  ;;  %v8944_v40 = vld [vmem:[#allocation19_spill] sm:$0xff]  ;;  %v8946_v5 = vld [vmem:[#allocation20_spill] sm:$0xff] }
 0x772   :  { %6594 = vrcp.f32 %v3168_v43  ;;  %5907 = vmatprep.subr.bf16.mxu0 %v8816_v39  ;;  %5939 = vmatprep.subr.bf16.mxu1 %v8817_v53  ;;  %v8945_v43 = vld [vmem:[#allocation32_spill] sm:$0xff] }
 0x773   :  { %6596 = vrcp.f32 %v3169_v54  ;;  %v8952_v54 = vld [vmem:[#allocation23_spill] sm:$0xff] }
 0x775   :  { %5909 = vmatpush1.bf16.msra.mxu0 %v8818_v49  ;;  %5941 = vmatpush1.bf16.msra.mxu1 %v8819_v4 }
 0x776   :  { %5911 = vmatprep.subr.bf16.mxu0 %v8761_v27  ;;  %5943 = vmatprep.subr.bf16.mxu1 %v8762_v55 }
 0x779   :  { %5913 = vmatpush1.bf16.msra.mxu0 %v8820_v42  ;;  %5945 = vmatpush1.bf16.msra.mxu1 %v8821_v47 }
 0x77a   :  { %5915 = vmatprep.subr.bf16.mxu0 %v8822_v59  ;;  %5947 = vmatprep.subr.bf16.mxu1 %v8823_v56 }
 0x77b   :  { %v6593_v37 = vpop.eup %6592 }
 0x77c   :  { %v6595_v35 = vpop.eup %6594  ;;  %v3181_v48 = vmul.f32 %v6593_v37, %v6591_v8  ;;  %v8947_v8 = vld [vmem:[#allocation33_spill] sm:$0xff] }
 0x77d   :  { %v3180_v3 = vmul.f32 %v6595_v35, %v3178_v57  ;;  %5917 = vmatpush1.bf16.msra.mxu0 %v8709_v51  ;;  %5949 = vmatpush1.bf16.msra.mxu1 %v8710_v7  ;;  %v6597_v12 = vpop.eup %6596  ;;  %v8948_v37 = vld [vmem:[#allocation21_spill] sm:$0xff]  ;;  %v8949_v57 = vld [vmem:[#allocation34_spill] sm:$0xff] }
 0x77e   :  { %5919 = vmatprep.subr.bf16.mxu0 %v8711_v22  ;;  %5951 = vmatprep.subr.bf16.mxu1 %v8767_v60  ;;  %v8950_v35 = vld [vmem:[#allocation22_spill] sm:$0xff] }
 0x77f   :  { %v7992_v62 = vadd.f32 %v3181_v48, %v3180_v3  ;;  %v8951_v48 = vld [vmem:[#allocation35_spill] sm:$0xff]  ;;  %v8953_v3 = vld [vmem:[#allocation36_spill] sm:$0xff] }
 0x781   :  { %5921 = vmatpush1.bf16.msra.mxu0 %v8768_v45  ;;  %5953 = vmatpush1.bf16.msra.mxu1 %v8769_v14  ;;  %6598 = vtanh.f32 %v7992_v62 }
 0x782   :  { %5923 = vmatprep.subr.bf16.mxu0 %v8770_v21  ;;  %5955 = vmatprep.subr.bf16.mxu1 %v8771_v34 }
 0x785   :  { %5925 = vmatpush1.bf16.msra.mxu0 %v8717_v1  ;;  %5957 = vmatpush1.bf16.msra.mxu1 %v8718_v23 }
 0x786   :  { %5927 = vmatprep.subr.bf16.mxu0 %v8719_v50  ;;  %5959 = vmatprep.subr.bf16.mxu1 %v8720_v19 }
 0x789   :  { %5929 = vmatpush1.bf16.msra.mxu0 %v8721_v16  ;;  %5961 = vmatpush1.bf16.msra.mxu1 %v8722_v36 }
 0x78a   :  { %5963 = vmatprep.subr.bf16.mxu0 %v8723_v29  ;;  %5995 = vmatprep.subr.bf16.mxu1 %v8724_v31 }
 0x78b   :  { %v6599_v52 = vpop.eup %6598 }
 0x78c   :  { %v3184_v41 = vmul.f32 %v6599_v52, %v6597_v12  ;;  %v8954_v12 = vld [vmem:[#allocation24_spill] sm:$0xff]  ;;  %v8955_v52 = vld [vmem:[#allocation37_spill] sm:$0xff] }
 0x78e   :  { %v3328_v11 = vrot.slane %v3184_v41, 2  ;;  %v8956_v41 = vld [vmem:[#allocation25_spill] sm:$0xff] }
 0x790   :  { %3395 = vmatmul.mubr.f32.vlgmr.msra.gmra.mrb[22].mxu0 %v3328_v11  ;;  %3466 = vmatmul.mubr.f32.vlgmr.msra.gmra.mrb[30].mxu1 %v3328_v11 }
 0x791   :  { %5965 = vmatpush1.bf16.msra.mxu0 %v6965_v9  ;;  %5997 = vmatpush1.bf16.msra.mxu1 %v7068_v25 }
 0x792   :  { %5967 = vmatprep.subr.bf16.mxu0 %v6967_v13  ;;  %5999 = vmatprep.subr.bf16.mxu1 %v7071_v26 }
 0x793   :  { %3564 = vmatprep.mubr.f32.mxu0 %v8629_v38  ;;  %3635 = vmatprep.mubr.f32.mxu1 %v8629_v38 }
 0x795   :  { %5969 = vmatpush1.bf16.msra.mxu0 %v6971_v17  ;;  %6001 = vmatpush1.bf16.msra.mxu1 %v7076_v32 }
 0x796   :  { %5971 = vmatprep.subr.bf16.mxu0 %v6974_v18  ;;  %6003 = vmatprep.subr.bf16.mxu1 %v7079_v33 }
 0x799   :  { %5973 = vmatpush1.bf16.msra.mxu0 %v8942_v20  ;;  %6005 = vmatpush1.bf16.msra.mxu1 %v8943_v28 }
 0x79a   :  { %5975 = vmatprep.subr.bf16.mxu0 %v8944_v40  ;;  %6007 = vmatprep.subr.bf16.mxu1 %v8945_v43  ;;  %v8999_v43 = vld [vmem:[#allocation111_spill] sm:$0xff] }
 0x79d   :  { %5977 = vmatpush1.bf16.msra.mxu0 %v8946_v5  ;;  %6009 = vmatpush1.bf16.msra.mxu1 %v8947_v8  ;;  %v8958_v8 = vld [vmem:[#allocation26_spill] sm:$0xff] }
 0x79e   :  { %5979 = vmatprep.subr.bf16.mxu0 %v8948_v37  ;;  %6011 = vmatprep.subr.bf16.mxu1 %v8949_v57  ;;  %v8959_v37 = vld [vmem:[#allocation39_spill] sm:$0xff] }
 0x79f   :  { %v8960_v57 = vld [vmem:[#allocation27_spill] sm:$0xff] }
 0x7a1   :  { %5981 = vmatpush1.bf16.msra.mxu0 %v8950_v35  ;;  %6013 = vmatpush1.bf16.msra.mxu1 %v8951_v48  ;;  %v8961_v35 = vld [vmem:[#allocation40_spill] sm:$0xff] }
 0x7a2   :  { %5983 = vmatprep.subr.bf16.mxu0 %v8952_v54  ;;  %6015 = vmatprep.subr.bf16.mxu1 %v8953_v3  ;;  %v8962_v48 = vld [vmem:[#allocation28_spill] sm:$0xff]  ;;  %v8963_v54 = vld [vmem:[#allocation41_spill] sm:$0xff]  ;;  %v8964_v3 = vld [vmem:[#allocation42_spill] sm:$0xff] }
 0x7a5   :  { %5985 = vmatpush1.bf16.msra.mxu0 %v8954_v12  ;;  %6017 = vmatpush1.bf16.msra.mxu1 %v8955_v52  ;;  %v8965_v12 = vld [vmem:[#allocation43_spill] sm:$0xff]  ;;  %v8998_v52 = vld [vmem:[#allocation110_spill] sm:$0xff] }
 0x7a6   :  { %5987 = vmatprep.subr.bf16.mxu0 %v8956_v41  ;;  %6019 = vmatprep.subr.bf16.mxu1 %v8957_v44  ;;  %v8966_v41 = vld [vmem:[#allocation44_spill] sm:$0xff]  ;;  %v8967_v44 = vld [vmem:[#allocation45_spill] sm:$0xff] }
 0x7a9   :  { %5989 = vmatpush1.bf16.msra.mxu0 %v8958_v8  ;;  %6021 = vmatpush1.bf16.msra.mxu1 %v8959_v37  ;;  %v8968_v8 = vld [vmem:[#allocation46_spill] sm:$0xff]  ;;  %v8969_v37 = vld [vmem:[#allocation47_spill] sm:$0xff] }
 0x7aa   :  { %5991 = vmatprep.subr.bf16.mxu0 %v8960_v57  ;;  %6023 = vmatprep.subr.bf16.mxu1 %v8961_v35  ;;  %v8979_v35 = vld [vmem:[#allocation57_spill] sm:$0xff]  ;;  %v8980_v57 = vld [vmem:[#allocation58_spill] sm:$0xff] }
 0x7ad   :  { %5993 = vmatpush1.bf16.msra.mxu0 %v8962_v48  ;;  %6025 = vmatpush1.bf16.msra.mxu1 %v8963_v54  ;;  %v8970_v48 = vld [vmem:[#allocation48_spill] sm:$0xff]  ;;  %v8971_v54 = vld [vmem:[#allocation49_spill] sm:$0xff] }
 0x7ae   :  { %6027 = vmatprep.subr.bf16.mxu0 %v8964_v3  ;;  %6059 = vmatprep.subr.bf16.mxu1 %v8965_v12  ;;  %v8972_v3 = vld [vmem:[#allocation50_spill] sm:$0xff]  ;;  %v8973_v12 = vld [vmem:[#allocation51_spill] sm:$0xff] }
 0x7b0   :  { %3565 = vmatmul.mubr.f32.vlgmr.msra.gmra.mrb[24].mxu0 %v3328_v11  ;;  %3636 = vmatmul.mubr.f32.vlgmr.msra.gmra.mrb[32].mxu1 %v3328_v11  ;;  %v8974_v11 = vld [vmem:[#allocation52_spill] sm:$0xff] }
 0x7b1   :  { %6029 = vmatpush1.bf16.msra.mxu0 %v8966_v41  ;;  %6061 = vmatpush1.bf16.msra.mxu1 %v8967_v44  ;;  %v8975_v41 = vld [vmem:[#allocation53_spill] sm:$0xff]  ;;  %v8976_v44 = vld [vmem:[#allocation54_spill] sm:$0xff] }
 0x7b2   :  { %6031 = vmatprep.subr.bf16.mxu0 %v8968_v8  ;;  %6063 = vmatprep.subr.bf16.mxu1 %v8969_v37  ;;  %v8977_v8 = vld [vmem:[#allocation55_spill] sm:$0xff]  ;;  %v8978_v37 = vld [vmem:[#allocation56_spill] sm:$0xff] }
 0x7b3   :  { %3749 = vmatprep.mubr.f32.mxu0 %v8629_v38  ;;  %3820 = vmatprep.mubr.f32.mxu1 %v8629_v38 }
 0x7b5   :  { %6033 = vmatpush1.bf16.msra.mxu0 %v8970_v48  ;;  %6065 = vmatpush1.bf16.msra.mxu1 %v8971_v54  ;;  %v8981_v48 = vld [vmem:[#allocation59_spill] sm:$0xff]  ;;  %v8982_v54 = vld [vmem:[#allocation60_spill] sm:$0xff] }
 0x7b6   :  { %6035 = vmatprep.subr.bf16.mxu0 %v8972_v3  ;;  %6067 = vmatprep.subr.bf16.mxu1 %v8973_v12  ;;  %v8983_v3 = vld [vmem:[#allocation61_spill] sm:$0xff]  ;;  %v8984_v12 = vld [vmem:[#allocation62_spill] sm:$0xff] }
 0x7b9   :  { %6037 = vmatpush1.bf16.msra.mxu0 %v8974_v11  ;;  %6069 = vmatpush1.bf16.msra.mxu1 %v8975_v41  ;;  %v8985_v11 = vld [vmem:[#allocation63_spill] sm:$0xff]  ;;  %v8986_v41 = vld [vmem:[#allocation64_spill] sm:$0xff] }
 0x7ba   :  { %6039 = vmatprep.subr.bf16.mxu0 %v8976_v44  ;;  %6071 = vmatprep.subr.bf16.mxu1 %v8977_v8  ;;  %v8987_v44 = vld [vmem:[#allocation65_spill] sm:$0xff]  ;;  %v8988_v8 = vld [vmem:[#allocation66_spill] sm:$0xff] }
 0x7bd   :  { %6041 = vmatpush1.bf16.msra.mxu0 %v8978_v37  ;;  %6073 = vmatpush1.bf16.msra.mxu1 %v8979_v35  ;;  %v8989_v37 = vld [vmem:[#allocation67_spill] sm:$0xff]  ;;  %v8990_v35 = vld [vmem:[#allocation68_spill] sm:$0xff] }
 0x7be   :  { %6043 = vmatprep.subr.bf16.mxu0 %v8980_v57  ;;  %6075 = vmatprep.subr.bf16.mxu1 %v8981_v48  ;;  %v8991_v57 = vld [vmem:[#allocation69_spill] sm:$0xff]  ;;  %v8992_v48 = vld [vmem:[#allocation70_spill] sm:$0xff] }
 0x7c1   :  { %6045 = vmatpush1.bf16.msra.mxu0 %v8982_v54  ;;  %6077 = vmatpush1.bf16.msra.mxu1 %v8983_v3  ;;  %v8993_v54 = vld [vmem:[#allocation71_spill] sm:$0xff]  ;;  %v8994_v3 = vld [vmem:[#allocation72_spill] sm:$0xff] }
 0x7c2   :  { %6047 = vmatprep.subr.bf16.mxu0 %v8984_v12  ;;  %6079 = vmatprep.subr.bf16.mxu1 %v8985_v11  ;;  %v8995_v12 = vld [vmem:[#allocation73_spill] sm:$0xff]  ;;  %v8996_v11 = vld [vmem:[#allocation74_spill] sm:$0xff] }
 0x7c5   :  { %6049 = vmatpush1.bf16.msra.mxu0 %v8986_v41  ;;  %6081 = vmatpush1.bf16.msra.mxu1 %v8987_v44  ;;  %v8997_v41 = vld [vmem:[#allocation75_spill] sm:$0xff] }
 0x7c6   :  { %6051 = vmatprep.subr.bf16.mxu0 %v8988_v8  ;;  %6083 = vmatprep.subr.bf16.mxu1 %v8989_v37 }
 0x7c9   :  { %6053 = vmatpush1.bf16.msra.mxu0 %v8990_v35  ;;  %6085 = vmatpush1.bf16.msra.mxu1 %v8991_v57 }
 0x7ca   :  { %6055 = vmatprep.subr.bf16.mxu0 %v8992_v48  ;;  %6087 = vmatprep.subr.bf16.mxu1 %v8993_v54  ;;  %v9000_v54 = vld [vmem:[#allocation112_spill] sm:$0xff] }
 0x7cd   :  { %6057 = vmatpush1.bf16.msra.mxu0 %v8994_v3  ;;  %6089 = vmatpush1.bf16.msra.mxu1 %v8995_v12  ;;  %v9001_v12 = vld [vmem:[#allocation113_spill] sm:$0xff] }
 0x7ce   :  { %6091 = vmatprep.subr.bf16.mxu0 %v8996_v11  ;;  %6123 = vmatprep.subr.bf16.mxu1 %v8997_v41 }
 0x863   :  { %v3396_v44 = vpop.f32.mrb[22].mxu0  ;;  %v3467_v8 = vpop.f32.mrb[30].mxu1 }
 0x864   :  { %v3472_v37 = vadd.f32 %v3396_v44, %v8998_v52  ;;  %v3398_v5 = vpop.f32.mrb[23].mxu0  ;;  %v3469_v35 = vpop.f32.mrb[31].mxu1  ;;  %v3474_v20 = vadd.f32 %v3467_v8, %v9001_v12 }
 0x865   :  { %v3473_v57 = vadd.f32 %v3398_v5, %v8999_v43  ;;  %v3475_v3 = vadd.f32 %v3469_v35, %v9000_v54 }
 0x866   :  { %v4733_v40 = vmul.f32 -1.442695, %v3472_v37 }
 0x867   :  { %v4734_v48 = vmul.f32 -1.442695, %v3473_v57  ;;  %v4735_v28 = vmul.f32 -1.442695, %v3475_v3 }
 0x868   :  { %6600 = vpow2.f32 %v4733_v40 }
 0x869   :  { %6602 = vpow2.f32 %v4734_v48 }
 0x86a   :  { %6604 = vpow2.f32 %v4735_v28 }
 0x86b   :  { %6606 = vtanh.f32 %v3474_v20 }
 0x872   :  { %v6601_v11 = vpop.eup %6600 }
 0x873   :  { %v6603_v33 = vpop.eup %6602  ;;  %v3485_v41 = vadd.f32 1.0, %v6601_v11 }
 0x874   :  { %v3486_v18 = vadd.f32 1.0, %v6603_v33  ;;  %v6605_v44 = vpop.eup %6604 }
 0x875   :  { %6608 = vrcp.f32 %v3485_v41  ;;  %v6607_v52 = vpop.eup %6606  ;;  %v3487_v40 = vadd.f32 1.0, %v6605_v44 }
 0x876   :  { %6610 = vrcp.f32 %v3486_v18 }
 0x877   :  { %6612 = vrcp.f32 %v3487_v40 }
 0x87f   :  { %v6609_v5 = vpop.eup %6608 }
 0x880   :  { %v6611_v37 = vpop.eup %6610  ;;  %v3496_v57 = vmul.f32 %v6609_v5, %v6607_v52 }
 0x881   :  { %v3495_v48 = vmul.f32 %v6611_v37, %v7958_v6  ;;  %v6613_v5 = vpop.eup %6612 }
 0x883   :  { %v8080_v35 = vadd.f32 %v3496_v57, %v3495_v48  ;;  %v3566_v3 = vpop.f32.mrb[24].mxu0  ;;  %v3637_v8 = vpop.f32.mrb[32].mxu1 }
 0x884   :  { %v3646_v12 = vrot.slane %v3566_v3, 4  ;;  %v3568_v11 = vpop.f32.mrb[25].mxu0  ;;  %v3639_v28 = vpop.f32.mrb[33].mxu1  ;;  %v3648_v37 = vrot.slane %v3637_v8, 4 }
 0x885   :  { %v3647_v20 = vrot.slane %v3568_v11, 4  ;;  %6614 = vtanh.f32 %v8080_v35  ;;  %v3649_v44 = vrot.slane %v3639_v28, 4 }
 0x886   :  { %v3654_v18 = vadd.f32 %v3646_v12, %v8939_v24  ;;  %v3656_v3 = vadd.f32 %v3648_v37, %v8879_v63 }
 0x887   :  { %v3655_v33 = vadd.f32 %v3647_v20, %v8940_v30  ;;  %v3657_v6 = vadd.f32 %v3649_v44, %v8878_v0 }
 0x888   :  { %v4736_v41 = vmul.f32 -1.442695, %v3654_v18 }
 0x889   :  { %v4737_v52 = vmul.f32 -1.442695, %v3655_v33  ;;  %v4738_v48 = vmul.f32 -1.442695, %v3657_v6 }
 0x88a   :  { %6616 = vpow2.f32 %v4736_v41  ;;  %v3678_v41 = vrot.slane %v7992_v62, 6 }
 0x88b   :  { %6618 = vpow2.f32 %v4737_v52 }
 0x88c   :  { %6620 = vpow2.f32 %v4738_v48 }
 0x88d   :  { %6622 = vtanh.f32 %v3656_v3 }
 0x88f   :  { %v6615_v57 = vpop.eup %6614 }
 0x890   :  { %v8086_v40 = vmul.f32 %v6615_v57, %v6613_v5 }
 0x892   :  { %3750 = vmatmul.mubr.f32.vlgmr.msra.gmra.mrb[26].mxu0 %v8086_v40  ;;  %3821 = vmatmul.mubr.f32.vlgmr.msra.gmra.mrb[34].mxu1 %v8086_v40 }
 0x893   :  { %6093 = vmatpush1.bf16.msra.mxu0 %v8693_v61  ;;  %6125 = vmatpush1.bf16.msra.mxu1 %v8694_v10 }
 0x894   :  { %v6617_v12 = vpop.eup %6616  ;;  %6095 = vmatprep.subr.bf16.mxu0 %v8695_v15  ;;  %6127 = vmatprep.subr.bf16.mxu1 %v8754_v2 }
 0x895   :  { %v6619_v8 = vpop.eup %6618  ;;  %v3667_v11 = vadd.f32 1.0, %v6617_v12  ;;  %3894 = vmatprep.mubr.f32.mxu0 %v8629_v38  ;;  %3965 = vmatprep.mubr.f32.mxu1 %v8629_v38  ;;  %v9004_v12 = vld [vmem:[#allocation18_spill] sm:$0xff] }
 0x896   :  { %v3668_v28 = vadd.f32 1.0, %v6619_v8  ;;  %v6621_v20 = vpop.eup %6620  ;;  %v9009_v8 = vld [vmem:[#allocation33_spill] sm:$0xff] }
 0x897   :  { %6624 = vrcp.f32 %v3667_v11  ;;  %6097 = vmatpush1.bf16.msra.mxu0 %v8755_v58  ;;  %6129 = vmatpush1.bf16.msra.mxu1 %v8815_v46  ;;  %v6623_v18 = vpop.eup %6622  ;;  %v3669_v6 = vadd.f32 1.0, %v6621_v20  ;;  %v9010_v11 = vld [vmem:[#allocation21_spill] sm:$0xff]  ;;  %v9014_v20 = vld [vmem:[#allocation23_spill] sm:$0xff] }
 0x898   :  { %6626 = vrcp.f32 %v3668_v28  ;;  %6099 = vmatprep.subr.bf16.mxu0 %v8816_v39  ;;  %6131 = vmatprep.subr.bf16.mxu1 %v8817_v53  ;;  %v9013_v28 = vld [vmem:[#allocation35_spill] sm:$0xff] }
 0x899   :  { %6628 = vrcp.f32 %v3669_v6  ;;  %v9020_v6 = vld [vmem:[#allocation26_spill] sm:$0xff] }
 0x89b   :  { %6101 = vmatpush1.bf16.msra.mxu0 %v8818_v49  ;;  %6133 = vmatpush1.bf16.msra.mxu1 %v8819_v4 }
 0x89c   :  { %6103 = vmatprep.subr.bf16.mxu0 %v8761_v27  ;;  %6135 = vmatprep.subr.bf16.mxu1 %v8762_v55 }
 0x89f   :  { %6105 = vmatpush1.bf16.msra.mxu0 %v8820_v42  ;;  %6137 = vmatpush1.bf16.msra.mxu1 %v8821_v47 }
 0x8a0   :  { %6107 = vmatprep.subr.bf16.mxu0 %v8822_v59  ;;  %6139 = vmatprep.subr.bf16.mxu1 %v8823_v56 }
 0x8a1   :  { %v6625_v33 = vpop.eup %6624 }
 0x8a2   :  { %v6627_v52 = vpop.eup %6626  ;;  %v3681_v44 = vmul.f32 %v6625_v33, %v6623_v18  ;;  %v9015_v18 = vld [vmem:[#allocation36_spill] sm:$0xff] }
 0x8a3   :  { %v3680_v5 = vmul.f32 %v6627_v52, %v3678_v41  ;;  %6109 = vmatpush1.bf16.msra.mxu0 %v8709_v51  ;;  %6141 = vmatpush1.bf16.msra.mxu1 %v8710_v7  ;;  %v6629_v62 = vpop.eup %6628  ;;  %v9016_v33 = vld [vmem:[#allocation24_spill] sm:$0xff]  ;;  %v9017_v41 = vld [vmem:[#allocation37_spill] sm:$0xff] }
 0x8a4   :  { %6111 = vmatprep.subr.bf16.mxu0 %v8711_v22  ;;  %6143 = vmatprep.subr.bf16.mxu1 %v8767_v60  ;;  %v9018_v52 = vld [vmem:[#allocation25_spill] sm:$0xff] }
 0x8a5   :  { %v8114_v37 = vadd.f32 %v3681_v44, %v3680_v5  ;;  %v9019_v44 = vld [vmem:[#allocation38_spill] sm:$0xff]  ;;  %v9021_v5 = vld [vmem:[#allocation39_spill] sm:$0xff] }
 0x8a7   :  { %6113 = vmatpush1.bf16.msra.mxu0 %v8768_v45  ;;  %6145 = vmatpush1.bf16.msra.mxu1 %v8769_v14  ;;  %6630 = vtanh.f32 %v8114_v37 }
 0x8a8   :  { %6115 = vmatprep.subr.bf16.mxu0 %v8770_v21  ;;  %6147 = vmatprep.subr.bf16.mxu1 %v8771_v34 }
 0x8ab   :  { %6117 = vmatpush1.bf16.msra.mxu0 %v8717_v1  ;;  %6149 = vmatpush1.bf16.msra.mxu1 %v8718_v23 }
 0x8ac   :  { %6119 = vmatprep.subr.bf16.mxu0 %v8719_v50  ;;  %6151 = vmatprep.subr.bf16.mxu1 %v8720_v19 }
 0x8af   :  { %6121 = vmatpush1.bf16.msra.mxu0 %v8721_v16  ;;  %6153 = vmatpush1.bf16.msra.mxu1 %v8722_v36 }
 0x8b0   :  { %6155 = vmatprep.subr.bf16.mxu0 %v8723_v29  ;;  %6187 = vmatprep.subr.bf16.mxu1 %v8724_v31  ;;  %v9002_v31 = vld [vmem:[#allocation17_spill] sm:$0xff]  ;;  %v9003_v29 = vld [vmem:[#allocation30_spill] sm:$0xff] }
 0x8b1   :  { %v6631_v57 = vpop.eup %6630 }
 0x8b2   :  { %v3684_v48 = vmul.f32 %v6631_v57, %v6629_v62  ;;  %v9022_v62 = vld [vmem:[#allocation27_spill] sm:$0xff]  ;;  %v9023_v57 = vld [vmem:[#allocation40_spill] sm:$0xff] }
 0x8b4   :  { %v3828_v3 = vrot.slane %v3684_v48, 4  ;;  %v9024_v48 = vld [vmem:[#allocation28_spill] sm:$0xff] }
 0x8b6   :  { %3895 = vmatmul.mubr.f32.vlgmr.msra.gmra.mrb[26].mxu0 %v3828_v3  ;;  %3966 = vmatmul.mubr.f32.vlgmr.msra.gmra.mrb[34].mxu1 %v3828_v3 }
 0x8b7   :  { %6157 = vmatpush1.bf16.msra.mxu0 %v6965_v9  ;;  %6189 = vmatpush1.bf16.msra.mxu1 %v7068_v25  ;;  %v9005_v9 = vld [vmem:[#allocation31_spill] sm:$0xff] }
 0x8b8   :  { %6159 = vmatprep.subr.bf16.mxu0 %v6967_v13  ;;  %6191 = vmatprep.subr.bf16.mxu1 %v7071_v26  ;;  %v9006_v25 = vld [vmem:[#allocation19_spill] sm:$0xff]  ;;  %v9007_v13 = vld [vmem:[#allocation32_spill] sm:$0xff] }
 0x8b9   :  { %4064 = vmatprep.mubr.f32.mxu0 %v8629_v38  ;;  %4135 = vmatprep.mubr.f32.mxu1 %v8629_v38  ;;  %v9008_v26 = vld [vmem:[#allocation20_spill] sm:$0xff] }
 0x8bb   :  { %6161 = vmatpush1.bf16.msra.mxu0 %v6971_v17  ;;  %6193 = vmatpush1.bf16.msra.mxu1 %v7076_v32  ;;  %v9011_v17 = vld [vmem:[#allocation34_spill] sm:$0xff] }
 0x8bc   :  { %6163 = vmatprep.subr.bf16.mxu0 %v9002_v31  ;;  %6195 = vmatprep.subr.bf16.mxu1 %v9003_v29  ;;  %v9012_v32 = vld [vmem:[#allocation22_spill] sm:$0xff]  ;;  %v9025_v31 = vld [vmem:[#allocation41_spill] sm:$0xff] }
 0x8bd   :  { %v9026_v29 = vld [vmem:[#allocation42_spill] sm:$0xff] }
 0x8bf   :  { %6165 = vmatpush1.bf16.msra.mxu0 %v9004_v12  ;;  %6197 = vmatpush1.bf16.msra.mxu1 %v9005_v9  ;;  %v9027_v12 = vld [vmem:[#allocation43_spill] sm:$0xff]  ;;  %v9028_v9 = vld [vmem:[#allocation44_spill] sm:$0xff] }
 0x8c0   :  { %6167 = vmatprep.subr.bf16.mxu0 %v9006_v25  ;;  %6199 = vmatprep.subr.bf16.mxu1 %v9007_v13  ;;  %v9029_v25 = vld [vmem:[#allocation45_spill] sm:$0xff]  ;;  %v9030_v13 = vld [vmem:[#allocation46_spill] sm:$0xff] }
 0x8c3   :  { %6169 = vmatpush1.bf16.msra.mxu0 %v9008_v26  ;;  %6201 = vmatpush1.bf16.msra.mxu1 %v9009_v8  ;;  %v9031_v26 = vld [vmem:[#allocation47_spill] sm:$0xff]  ;;  %v9032_v8 = vld [vmem:[#allocation48_spill] sm:$0xff] }
 0x8c4   :  { %6171 = vmatprep.subr.bf16.mxu0 %v9010_v11  ;;  %6203 = vmatprep.subr.bf16.mxu1 %v9011_v17  ;;  %v9033_v11 = vld [vmem:[#allocation49_spill] sm:$0xff]  ;;  %v9034_v17 = vld [vmem:[#allocation50_spill] sm:$0xff] }
 0x8c7   :  { %6173 = vmatpush1.bf16.msra.mxu0 %v9012_v32  ;;  %6205 = vmatpush1.bf16.msra.mxu1 %v9013_v28  ;;  %v9035_v32 = vld [vmem:[#allocation51_spill] sm:$0xff]  ;;  %v9037_v28 = vld [vmem:[#allocation53_spill] sm:$0xff] }
 0x8c8   :  { %6175 = vmatprep.subr.bf16.mxu0 %v9014_v20  ;;  %6207 = vmatprep.subr.bf16.mxu1 %v9015_v18  ;;  %v9038_v20 = vld [vmem:[#allocation54_spill] sm:$0xff]  ;;  %v9039_v18 = vld [vmem:[#allocation55_spill] sm:$0xff] }
 0x8cb   :  { %6177 = vmatpush1.bf16.msra.mxu0 %v9016_v33  ;;  %6209 = vmatpush1.bf16.msra.mxu1 %v9017_v41  ;;  %v9040_v33 = vld [vmem:[#allocation56_spill] sm:$0xff]  ;;  %v9041_v41 = vld [vmem:[#allocation57_spill] sm:$0xff] }
 0x8cc   :  { %6179 = vmatprep.subr.bf16.mxu0 %v9018_v52  ;;  %6211 = vmatprep.subr.bf16.mxu1 %v9019_v44  ;;  %v9042_v52 = vld [vmem:[#allocation58_spill] sm:$0xff]  ;;  %v9043_v44 = vld [vmem:[#allocation59_spill] sm:$0xff] }
 0x8cf   :  { %6181 = vmatpush1.bf16.msra.mxu0 %v9020_v6  ;;  %6213 = vmatpush1.bf16.msra.mxu1 %v9021_v5  ;;  %v9044_v6 = vld [vmem:[#allocation60_spill] sm:$0xff]  ;;  %v9045_v5 = vld [vmem:[#allocation61_spill] sm:$0xff] }
 0x8d0   :  { %6183 = vmatprep.subr.bf16.mxu0 %v9022_v62  ;;  %6215 = vmatprep.subr.bf16.mxu1 %v9023_v57  ;;  %v9046_v62 = vld [vmem:[#allocation62_spill] sm:$0xff]  ;;  %v9047_v57 = vld [vmem:[#allocation63_spill] sm:$0xff] }
 0x8d3   :  { %6185 = vmatpush1.bf16.msra.mxu0 %v9024_v48  ;;  %6217 = vmatpush1.bf16.msra.mxu1 %v9025_v31  ;;  %v9048_v48 = vld [vmem:[#allocation64_spill] sm:$0xff]  ;;  %v9049_v31 = vld [vmem:[#allocation65_spill] sm:$0xff] }
 0x8d4   :  { %6219 = vmatprep.subr.bf16.mxu0 %v9026_v29  ;;  %6251 = vmatprep.subr.bf16.mxu1 %v9027_v12  ;;  %v9050_v29 = vld [vmem:[#allocation66_spill] sm:$0xff]  ;;  %v9051_v12 = vld [vmem:[#allocation67_spill] sm:$0xff] }
 0x8d6   :  { %4065 = vmatmul.mubr.f32.vlgmr.msra.gmra.mrb[28].mxu0 %v3828_v3  ;;  %4136 = vmatmul.mubr.f32.vlgmr.msra.gmra.mrb[36].mxu1 %v3828_v3  ;;  %v9036_v3 = vld [vmem:[#allocation52_spill] sm:$0xff] }
 0x8d7   :  { %6221 = vmatpush1.bf16.msra.mxu0 %v9028_v9  ;;  %6253 = vmatpush1.bf16.msra.mxu1 %v9029_v25  ;;  %v9052_v9 = vld [vmem:[#allocation68_spill] sm:$0xff]  ;;  %v9053_v25 = vld [vmem:[#allocation69_spill] sm:$0xff] }
 0x8d8   :  { %6223 = vmatprep.subr.bf16.mxu0 %v9030_v13  ;;  %6255 = vmatprep.subr.bf16.mxu1 %v9031_v26  ;;  %v9054_v13 = vld [vmem:[#allocation70_spill] sm:$0xff]  ;;  %v9055_v26 = vld [vmem:[#allocation71_spill] sm:$0xff] }
 0x8d9   :  { %4249 = vmatprep.mubr.f32.mxu0 %v8629_v38  ;;  %4320 = vmatprep.mubr.f32.mxu1 %v8629_v38 }
 0x8db   :  { %6225 = vmatpush1.bf16.msra.mxu0 %v9032_v8  ;;  %6257 = vmatpush1.bf16.msra.mxu1 %v9033_v11  ;;  %v9056_v8 = vld [vmem:[#allocation72_spill] sm:$0xff]  ;;  %v9057_v11 = vld [vmem:[#allocation73_spill] sm:$0xff] }
 0x8dc   :  { %6227 = vmatprep.subr.bf16.mxu0 %v9034_v17  ;;  %6259 = vmatprep.subr.bf16.mxu1 %v9035_v32  ;;  %v9058_v17 = vld [vmem:[#allocation74_spill] sm:$0xff]  ;;  %v9059_v32 = vld [vmem:[#allocation75_spill] sm:$0xff] }
 0x8df   :  { %6229 = vmatpush1.bf16.msra.mxu0 %v9036_v3  ;;  %6261 = vmatpush1.bf16.msra.mxu1 %v9037_v28 }
 0x8e0   :  { %6231 = vmatprep.subr.bf16.mxu0 %v9038_v20  ;;  %6263 = vmatprep.subr.bf16.mxu1 %v9039_v18  ;;  %v9060_v20 = vld [vmem:[#allocation110_spill] sm:$0xff] }
 0x8e3   :  { %6233 = vmatpush1.bf16.msra.mxu0 %v9040_v33  ;;  %6265 = vmatpush1.bf16.msra.mxu1 %v9041_v41 }
 0x8e4   :  { %6235 = vmatprep.subr.bf16.mxu0 %v9042_v52  ;;  %6267 = vmatprep.subr.bf16.mxu1 %v9043_v44 }
 0x8e7   :  { %6237 = vmatpush1.bf16.msra.mxu0 %v9044_v6  ;;  %6269 = vmatpush1.bf16.msra.mxu1 %v9045_v5 }
 0x8e8   :  { %6239 = vmatprep.subr.bf16.mxu0 %v9046_v62  ;;  %6271 = vmatprep.subr.bf16.mxu1 %v9047_v57  ;;  %v9061_v57 = vld [vmem:[#allocation113_spill] sm:$0xff] }
 0x8eb   :  { %6241 = vmatpush1.bf16.msra.mxu0 %v9048_v48  ;;  %6273 = vmatpush1.bf16.msra.mxu1 %v9049_v31 }
 0x8ec   :  { %6243 = vmatprep.subr.bf16.mxu0 %v9050_v29  ;;  %6275 = vmatprep.subr.bf16.mxu1 %v9051_v12 }
 0x8ef   :  { %6245 = vmatpush1.bf16.msra.mxu0 %v9052_v9  ;;  %6277 = vmatpush1.bf16.msra.mxu1 %v9053_v25 }
 0x8f0   :  { %6247 = vmatprep.subr.bf16.mxu0 %v9054_v13  ;;  %6279 = vmatprep.subr.bf16.mxu1 %v9055_v26 }
 0x8f3   :  { %6249 = vmatpush1.bf16.msra.mxu0 %v9056_v8  ;;  %6281 = vmatpush1.bf16.msra.mxu1 %v9057_v11 }
 0x8f4   :  { %6283 = vmatprep.subr.bf16.mxu0 %v9058_v17  ;;  %6315 = vmatprep.subr.bf16.mxu1 %v9059_v32 }
 0x989   :  { %v3896_v3 = vpop.f32.mrb[26].mxu0  ;;  %v3967_v28 = vpop.f32.mrb[34].mxu1 }
 0x98a   :  { %v3972_v18 = vadd.f32 %v3896_v3, %v9060_v20  ;;  %v3898_v33 = vpop.f32.mrb[27].mxu0  ;;  %v3969_v41 = vpop.f32.mrb[35].mxu1  ;;  %v3974_v48 = vadd.f32 %v3967_v28, %v9061_v57 }
 0x98b   :  { %v3973_v52 = vadd.f32 %v3898_v33, %v8999_v43  ;;  %v3975_v5 = vadd.f32 %v3969_v41, %v9000_v54 }
 0x98c   :  { %v4739_v44 = vmul.f32 -1.442695, %v3972_v18 }
 0x98d   :  { %v4740_v6 = vmul.f32 -1.442695, %v3973_v52  ;;  %v4741_v62 = vmul.f32 -1.442695, %v3975_v5 }
 0x98e   :  { %6632 = vpow2.f32 %v4739_v44 }
 0x98f   :  { %6634 = vpow2.f32 %v4740_v6 }
 0x990   :  { %6636 = vpow2.f32 %v4741_v62 }
 0x991   :  { %6638 = vtanh.f32 %v3974_v48 }
 0x998   :  { %v6633_v31 = vpop.eup %6632 }
 0x999   :  { %v6635_v29 = vpop.eup %6634  ;;  %v3985_v12 = vadd.f32 1.0, %v6633_v31 }
 0x99a   :  { %v3986_v9 = vadd.f32 1.0, %v6635_v29  ;;  %v6637_v25 = vpop.eup %6636 }
 0x99b   :  { %6640 = vrcp.f32 %v3985_v12  ;;  %v6639_v13 = vpop.eup %6638  ;;  %v3987_v17 = vadd.f32 1.0, %v6637_v25  ;;  %v4510_v25 = vrot.slane %v8086_v40, 6 }
 0x99c   :  { %6642 = vrcp.f32 %v3986_v9 }
 0x99d   :  { %6644 = vrcp.f32 %v3987_v17 }
 0x9a5   :  { %v6641_v26 = vpop.eup %6640 }
 0x9a6   :  { %v6643_v8 = vpop.eup %6642  ;;  %v3996_v11 = vmul.f32 %v6641_v26, %v6639_v13 }
 0x9a7   :  { %v3995_v32 = vmul.f32 %v6643_v8, %v8080_v35  ;;  %v6645_v29 = vpop.eup %6644 }
 0x9a9   :  { %v8202_v3 = vadd.f32 %v3996_v11, %v3995_v32  ;;  %v4066_v18 = vpop.f32.mrb[28].mxu0  ;;  %v4137_v28 = vpop.f32.mrb[36].mxu1  ;;  %v4538_v32 = vld [vmem:[%s8358_s9 + $0x60] sm:$0xff] }
 0x9aa   :  { %v4146_v33 = vrot.slane %v4066_v18, 2  ;;  %v4068_v41 = vpop.f32.mrb[29].mxu0  ;;  %v4139_v52 = vpop.f32.mrb[37].mxu1  ;;  %v4148_v12 = vrot.slane %v4137_v28, 2  ;;  %v4539_v28 = vld [vmem:[%s8358_s9 + $0x68] sm:$0xff] }
 0x9ab   :  { %v4147_v44 = vrot.slane %v4068_v41, 2  ;;  %6646 = vtanh.f32 %v8202_v3  ;;  %v4149_v31 = vrot.slane %v4139_v52, 2  ;;  %v4540_v41 = vld [vmem:[%s8358_s9 + $0x70] sm:$0xff]  ;;  %v4541_v52 = vld [vmem:[%s8358_s9 + $0x78] sm:$0xff] }
 0x9ac   :  { %v4154_v6 = vadd.f32 %v4146_v33, %v8939_v24  ;;  %v4156_v8 = vadd.f32 %v4148_v12, %v8879_v63  ;;  %v6370_v33 = vpack.c.bf16 %v4539_v28, %v4538_v32 }
 0x9ad   :  { %v4155_v5 = vadd.f32 %v4147_v44, %v8940_v30  ;;  %v4157_v35 = vadd.f32 %v4149_v31, %v8878_v0  ;;  %v9062_v30 = vld [vmem:[#allocation77_spill] sm:$0xff]  ;;  %v6374_v44 = vpack.c.bf16 %v4541_v52, %v4540_v41 }
 0x9ae   :  { %v4742_v62 = vmul.f32 -1.442695, %v4154_v6  ;;  %v4523_v11 = vsel %vm4518_vm5, %v9062_v30, %v4510_v25 }
 0x9af   :  { %v4743_v48 = vmul.f32 -1.442695, %v4155_v5  ;;  %v4744_v26 = vmul.f32 -1.442695, %v4157_v35 }
 0x9b0   :  { %6648 = vpow2.f32 %v4742_v62 }
 0x9b1   :  { %6650 = vpow2.f32 %v4743_v48 }
 0x9b2   :  { %6652 = vpow2.f32 %v4744_v26 }
 0x9b3   :  { %6654 = vtanh.f32 %v4156_v8 }
 0x9b5   :  { %v6647_v9 = vpop.eup %6646 }
 0x9b6   :  { %v3999_v13 = vmul.f32 %v6647_v9, %v6645_v29 }
 0x9b8   :  { %4250 = vmatmul.mubr.f32.vlgmr.msra.gmra.mrb[30].mxu0 %v3999_v13  ;;  %4321 = vmatmul.mubr.f32.vlgmr.msra.gmra.mrb[38].mxu1 %v3999_v13  ;;  %v4513_v24 = vrot.slane %v3999_v13, 4 }
 0x9b9   :  { %6285 = vmatpush1.bf16.msra.mxu0 %v8693_v61  ;;  %6317 = vmatpush1.bf16.msra.mxu1 %v8694_v10 }
 0x9ba   :  { %v6649_v0 = vpop.eup %6648  ;;  %6287 = vmatprep.subr.bf16.mxu0 %v8695_v15  ;;  %6319 = vmatprep.subr.bf16.mxu1 %v8754_v2  ;;  %v8217_v40 = vsel %vm141_vm0, %v4523_v11, %v4513_v24  ;;  %v4178_v2 = vrot.slane %v8114_v37, 6  ;;  %v4537_v37 = vld [vmem:[%s8358_s9 + $0x58] sm:$0xff] }
 0x9bb   :  { %v6651_v17 = vpop.eup %6650  ;;  %v4167_v63 = vadd.f32 1.0, %v6649_v0  ;;  %4394 = vmatprep.mubr.f32.mxu0 %v8629_v38  ;;  %4465 = vmatprep.mubr.f32.mxu1 %v8629_v38 }
 0x9bc   :  { %v4168_v61 = vadd.f32 1.0, %v6651_v17  ;;  %v6653_v38 = vpop.eup %6652 }
 0x9bd   :  { %6656 = vrcp.f32 %v4167_v63  ;;  %6289 = vmatpush1.bf16.msra.mxu0 %v8755_v58  ;;  %6321 = vmatpush1.bf16.msra.mxu1 %v8815_v46  ;;  %v6655_v10 = vpop.eup %6654 }
 0x9be   :  { %6658 = vrcp.f32 %v4168_v61  ;;  %6291 = vmatprep.subr.bf16.mxu0 %v8816_v39  ;;  %6323 = vmatprep.subr.bf16.mxu1 %v8817_v53  ;;  %v4169_v39 = vadd.f32 1.0, %v6653_v38 }
 0x9c0   :  { %6660 = vrcp.f32 %v4169_v39 }
 0x9c1   :  { %6293 = vmatpush1.bf16.msra.mxu0 %v8818_v49  ;;  %6325 = vmatpush1.bf16.msra.mxu1 %v8819_v4  ;;  %v4533_v49 = vld [vmem:[%s8358_s9 + $0x38] sm:$0xff] }
 0x9c2   :  { %6295 = vmatprep.subr.bf16.mxu0 %v8761_v27  ;;  %6327 = vmatprep.subr.bf16.mxu1 %v8762_v55 }
 0x9c5   :  { %6297 = vmatpush1.bf16.msra.mxu0 %v8820_v42  ;;  %6329 = vmatpush1.bf16.msra.mxu1 %v8821_v47  ;;  %v4534_v42 = vld [vmem:[%s8358_s9 + $0x40] sm:$0xff]  ;;  %v4535_v47 = vld [vmem:[%s8358_s9 + $0x48] sm:$0xff] }
 0x9c6   :  { %6299 = vmatprep.subr.bf16.mxu0 %v8822_v59  ;;  %6331 = vmatprep.subr.bf16.mxu1 %v8823_v56  ;;  %v6362_v59 = vpack.c.bf16 %v4535_v47, %v4534_v42  ;;  %v4536_v56 = vld [vmem:[%s8358_s9 + $0x50] sm:$0xff] }
 0x9c7   :  { %v6657_v15 = vpop.eup %6656  ;;  %v6366_v18 = vpack.c.bf16 %v4537_v37, %v4536_v56 }
 0x9c8   :  { %v6659_v58 = vpop.eup %6658  ;;  %v4181_v46 = vmul.f32 %v6657_v15, %v6655_v10 }
 0x9c9   :  { %v4180_v53 = vmul.f32 %v6659_v58, %v4178_v2  ;;  %6301 = vmatpush1.bf16.msra.mxu0 %v8709_v51  ;;  %6333 = vmatpush1.bf16.msra.mxu1 %v8710_v7 }
 0x9ca   :  { %6303 = vmatprep.subr.bf16.mxu0 %v8711_v22  ;;  %6335 = vmatprep.subr.bf16.mxu1 %v8767_v60  ;;  %v6661_v22 = vpop.eup %6660  ;;  %v9063_v60 = vld [vmem:[#allocation76_spill] sm:$0xff] }
 0x9cb   :  { %v4182_v27 = vadd.f32 %v4181_v46, %v4180_v53 }
 0x9cd   :  { %6305 = vmatpush1.bf16.msra.mxu0 %v8768_v45  ;;  %6337 = vmatpush1.bf16.msra.mxu1 %v8769_v14  ;;  %6662 = vtanh.f32 %v4182_v27  ;;  %4629 = vst.msk [vmem:[#allocation11 - $0x6] sm:$0xc0] %vm4627_vm7, %v4182_v27  ;;  %v4530_v45 = vld [vmem:[%s8358_s9 + $0x20] sm:$0xff]  ;;  %v4531_v14 = vld [vmem:[%s8358_s9 + $0x28] sm:$0xff] }
 0x9ce   :  { %6307 = vmatprep.subr.bf16.mxu0 %v8770_v21  ;;  %6339 = vmatprep.subr.bf16.mxu1 %v8771_v34  ;;  %v6354_v21 = vpack.c.bf16 %v4531_v14, %v4530_v45  ;;  %v4532_v34 = vld [vmem:[%s8358_s9 + $0x30] sm:$0xff] }
 0x9cf   :  { %v6358_v4 = vpack.c.bf16 %v4533_v49, %v4532_v34 }
 0x9d1   :  { %6309 = vmatpush1.bf16.msra.mxu0 %v8717_v1  ;;  %6341 = vmatpush1.bf16.msra.mxu1 %v8718_v23  ;;  %v4526_v1 = vld [vmem:[%s8358_s9] sm:$0xff]  ;;  %v4527_v23 = vld [vmem:[%s8358_s9 + $0x8] sm:$0xff] }
 0x9d2   :  { %6311 = vmatprep.subr.bf16.mxu0 %v8719_v50  ;;  %6343 = vmatprep.subr.bf16.mxu1 %v8720_v19  ;;  %v6346_v50 = vpack.c.bf16 %v4527_v23, %v4526_v1  ;;  %v4528_v19 = vld [vmem:[%s8358_s9 + $0x10] sm:$0xff] }
 0x9d5   :  { %6313 = vmatpush1.bf16.msra.mxu0 %v8721_v16  ;;  %6345 = vmatpush1.bf16.msra.mxu1 %v8722_v36  ;;  %v4529_v16 = vld [vmem:[%s8358_s9 + $0x18] sm:$0xff]  ;;  %s6827_s9 = smov [#allocation9]  }
 0x9d6   :  { %6347 = vmatprep.subr.bf16.mxu0 %v6346_v50  ;;  %v6350_v36 = vpack.c.bf16 %v4529_v16, %v4528_v19  ;;  %s4652_s16 = sshll.u32 %s6827_s9, 4  ;;  %s4653_s16 = int_to_ptr.vmem [resolvable:$true] %s4652_s16 }
 0x9d7   :  { %v6663_v51 = vpop.eup %6662  ;;  %s6746_s6 = scalar_lea.vmem %s4653_s16, 64  ;;  %p6751_p11 = scmp.lt.s32.totalorder %s4653_s16, %s4653_s16 }
 0x9d8   :  { %v4184_v7 = vmul.f32 %v6663_v51, %v6661_v22  ;;  %p6747_p10 = scmp.ne.s32.totalorder %s4653_s16, %s6746_s6  ;;  %p6752_p12 = scmp.lt.s32.totalorder %s6746_s6, %s6746_s6 }
 0x9da   :  { %v4328_v55 = vrot.slane %v4184_v7, 6  ;;  %4628 = vst.msk [vmem:[#allocation9 - $0x6] sm:$0xc0] %vm4627_vm7, %v4184_v7  ;;  %p6753_p13 = por %p6752_p12, %p6751_p11 }
 0x9dc   :  { %4395 = vmatmul.mubr.f32.vlgmr.msra.gmra.mrb[30].mxu0 %v4328_v55  ;;  %4466 = vmatmul.mubr.f32.vlgmr.msra.gmra.mrb[38].mxu1 %v4328_v55  ;;  %p6754_p0 = pnand %p6753_p13, %p6747_p10 }
 0x9dd   :  { %4799 = vmatprep.mubr.f32.mxu0 %v9063_v60  ;;  %6349 = vmatpush3.bf16.msra.mxu0 %v6346_v50 }
 0x9de   :  { %6351 = vmatprep.subr.bf16.mxu0 %v6350_v36 }
 0x9e1   :  { %6353 = vmatpush3.bf16.msra.mxu0 %v6350_v36 }
 0x9e2   :  { %6355 = vmatprep.subr.bf16.mxu0 %v6354_v21 }
 0x9e5   :  { %6357 = vmatpush3.bf16.msra.mxu0 %v6354_v21 }
 0x9e6   :  { %6359 = vmatprep.subr.bf16.mxu0 %v6358_v4 }
 0x9e9   :  { %6361 = vmatpush3.bf16.msra.mxu0 %v6358_v4 }
 0x9ea   :  { %6363 = vmatprep.subr.bf16.mxu0 %v6362_v59 }
 0x9ed   :  { %6365 = vmatpush3.bf16.msra.mxu0 %v6362_v59 }
 0x9ee   :  { %6367 = vmatprep.subr.bf16.mxu0 %v6366_v18 }
 0x9f1   :  { %6369 = vmatpush3.bf16.msra.mxu0 %v6366_v18 }
 0x9f2   :  { %6371 = vmatprep.subr.bf16.mxu0 %v6370_v33 }
 0x9f5   :  { %6373 = vmatpush3.bf16.msra.mxu0 %v6370_v33 }
 0x9f6   :  { %6375 = vmatprep.subr.bf16.mxu0 %v6374_v44 }
 0x9f9   :  { %6377 = vmatpush3.bf16.msra.mxu0 %v6374_v44 }
 0xaaf   :  { %v4396_v6 = vpop.f32.mrb[30].mxu0  ;;  %v4467_v5 = vpop.f32.mrb[38].mxu1 }
 0xab0   :  { %v4472_v62 = vadd.f32 %v4396_v6, %v9060_v20  ;;  %v4398_v48 = vpop.f32.mrb[31].mxu0  ;;  %v4469_v31 = vpop.f32.mrb[39].mxu1  ;;  %v4474_v13 = vadd.f32 %v4467_v5, %v9061_v57 }
 0xab1   :  { %v4473_v35 = vadd.f32 %v4398_v48, %v8999_v43  ;;  %v4475_v9 = vadd.f32 %v4469_v31, %v9000_v54 }
 0xab2   :  { %v4745_v29 = vmul.f32 -1.442695, %v4472_v62 }
 0xab3   :  { %v4746_v12 = vmul.f32 -1.442695, %v4473_v35  ;;  %v4747_v25 = vmul.f32 -1.442695, %v4475_v9 }
 0xab4   :  { %6664 = vpow2.f32 %v4745_v29 }
 0xab5   :  { %6666 = vpow2.f32 %v4746_v12 }
 0xab6   :  { %6668 = vpow2.f32 %v4747_v25 }
 0xab7   :  { %6670 = vtanh.f32 %v4474_v13 }
 0xabe   :  { %v6665_v26 = vpop.eup %6664 }
 0xabf   :  { %v6667_v8 = vpop.eup %6666  ;;  %v4485_v24 = vadd.f32 1.0, %v6665_v26 }
 0xac0   :  { %v4486_v30 = vadd.f32 1.0, %v6667_v8  ;;  %v6669_v20 = vpop.eup %6668 }
 0xac1   :  { %6672 = vrcp.f32 %v4485_v24  ;;  %v6671_v11 = vpop.eup %6670  ;;  %v4487_v63 = vadd.f32 1.0, %v6669_v20 }
 0xac2   :  { %6674 = vrcp.f32 %v4486_v30 }
 0xac3   :  { %6676 = vrcp.f32 %v4487_v63 }
 0xacb   :  { %v6673_v43 = vpop.eup %6672 }
 0xacc   :  { %v6675_v0 = vpop.eup %6674  ;;  %v4496_v17 = vmul.f32 %v6673_v43, %v6671_v11 }
 0xacd   :  { %v4495_v61 = vmul.f32 %v6675_v0, %v8202_v3  ;;  %v6677_v57 = vpop.eup %6676 }
 0xacf   :  { %v4497_v54 = vadd.f32 %v4496_v17, %v4495_v61 }
 0xad1   :  { %6678 = vtanh.f32 %v4497_v54  ;;  %4634 = vst.msk [vmem:[#allocation11 + $0x2] sm:$0x3] %vm4631_vm8, %v4497_v54 }
 0xadb   :  { %v6679_v38 = vpop.eup %6678 }
 0xadc   :  { %v4499_v10 = vmul.f32 %v6679_v38, %v6677_v57 }
 0xade   :  { %v4516_v15 = vrot.slane %v4499_v10, 2  ;;  %4632 = vst.msk [vmem:[#allocation9 + $0x2] sm:$0x3] %vm4631_vm8, %v4499_v10 }
 0xae0   :  { %v4525_v2 = vsel %vm4521_vm6, %v8217_v40, %v4516_v15 }
 0xae1   :  { %4800 = vmatmul.mubr.f32.vlgmr.msra.gmra.mrb[32].mxu0 %v4525_v2 }
 0xae2   :  { %6757 = shalt.err (!%p6754_p0)
}
 0xae3   :  { %s6758_s20 = scalar_lea.hbm %s8361_s12, 64 }
 0xae4   :  { %p6759_p1 = scmp.ne.s32.totalorder %s8361_s12, %s6758_s20  ;;  %p6762_p2 = scmp.lt.u32.totalorder %s6758_s20, %s8361_s12 }
 0xae6   :  { %p6764_p3 = pnand %p6762_p2, %p6759_p1 }
 0xae8   :  { %6767 = shalt.err (!%p6764_p3)
}
 0xae9   :  { %s6828_s19 = smov 2   ;;  %s6829_s5 = smov [#allocation11]  }
 0xaea   :  { %4658 = dma.vmem_to_hbm [thread:$0]  %s4653_s16, 64, %s8361_s12, [#allocation10], %s6823_s21, %s6823_s21, %s6828_s19  }
 0xaeb   :  { %s4664_s23 = sshll.u32 %s6829_s5, 4  ;;  %s4665_s23 = int_to_ptr.vmem [resolvable:$true] %s4664_s23 }
 0xaec   :  { %s6768_s24 = scalar_lea.vmem %s4665_s23, 64  ;;  %p6773_p5 = scmp.lt.s32.totalorder %s4665_s23, %s4665_s23 }
 0xaed   :  { %p6769_p4 = scmp.ne.s32.totalorder %s4665_s23, %s6768_s24  ;;  %p6774_p6 = scmp.lt.s32.totalorder %s6768_s24, %s6768_s24 }
 0xaef   :  { %p6775_p7 = por %p6774_p6, %p6773_p5 }
 0xaf1   :  { %p6776_p8 = pnand %p6775_p7, %p6769_p4 }
 0xaf3   :  { %6779 = shalt.err (!%p6776_p8)
}
 0xaf4   :  { %s6780_s27 = scalar_lea.hbm %s8362_s13, 64 }
 0xaf5   :  { %p6781_p9 = scmp.ne.s32.totalorder %s8362_s13, %s6780_s27  ;;  %p6784_p10 = scmp.lt.u32.totalorder %s6780_s27, %s8362_s13 }
 0xaf7   :  { %p6786_p11 = pnand %p6784_p10, %p6781_p9 }
 0xaf9   :  { %6789 = shalt.err (!%p6786_p11)
}
 0xafa   :  { %4670 = dma.vmem_to_hbm [thread:$0]  %s4665_s23, 64, %s8362_s13, [#allocation10], %s6823_s21, %s6823_s21, %s6828_s19   ;;  %vm4624_vm9 = vcmask 195584  }
 0xafb   :  { %v4748_v3 = vld [vmem:[%s8359_s10] ss:$0 sm:$0xff]  ;;  %s6830_s9 = smov [#allocation8]  }
 0xafc   :  { %s4640_s16 = sshll.u32 %s6830_s9, 4  ;;  %s4641_s16 = int_to_ptr.vmem [resolvable:$true] %s4640_s16 }
 0xafd   :  { %s6790_s6 = scalar_lea.vmem %s4641_s16, 256  ;;  %p6795_p13 = scmp.lt.s32.totalorder %s4641_s16, %s4641_s16 }
 0xafe   :  { %p6791_p12 = scmp.ne.s32.totalorder %s4641_s16, %s6790_s6  ;;  %p6796_p0 = scmp.lt.s32.totalorder %s6790_s6, %s6790_s6 }
 0xb00   :  { %p6797_p1 = por %p6796_p0, %p6795_p13 }
 0xb02   :  { %p6798_p2 = pnand %p6797_p1, %p6791_p12 }
 0xbb4   :  { %v4801_v40 = vpop.f32.mrb[32].mxu0 }
 0xbb5   :  { %v4621_v58 = vadd.f32 %v4801_v40, %v4748_v3  ;;  %v4615_v46 = vpop.f32.mrb[33].mxu0 }
 0xbb6   :  { %v4616_v39 = vadd.f32 %v4748_v3, %v4615_v46 }
 0xbb7   :  { %4626 = vst.msk [vmem:[#allocation8 + $0x8] sm:$0xff] %vm4624_vm9, %v4621_v58 }
 0xbb8   :  { %4625 = vst.msk [vmem:[#allocation8] sm:$0xff] %vm4624_vm9, %v4616_v39 }
 0xbb9   :  { %6801 = shalt.err (!%p6798_p2)
}
 0xbba   :  { %s6802_s10 = scalar_lea.hbm %s8360_s11, 256 }
 0xbbb   :  { %p6803_p3 = scmp.ne.s32.totalorder %s8360_s11, %s6802_s10  ;;  %p6806_p4 = scmp.lt.u32.totalorder %s6802_s10, %s8360_s11 }
 0xbbd   :  { %p6808_p5 = pnand %p6806_p4, %p6803_p3 }
 0xbbf   :  { %6811 = shalt.err (!%p6808_p5)
}
 0xbc0   :  { %s6831_s17 = smov 128   ;;  %s6832_s18 = smov 8  }
 0xbc1   :  { %4646 = dma.vmem_to_hbm [thread:$0]  %s4641_s16, 256, %s8360_s11, [#allocation4], %s6831_s17, %s6831_s17, %s6832_s18  }
 0xbc2   :  { %6816 = dma.done.wait [#allocation4], 256  }
 0xbc3   :  { %6817 = vsyncadd [#allocation4], 4294967040 }
 0xbc4   :  { %6818 = dma.done.wait [#allocation10], 128  }
 0xbc5   :  { %6819 = vsyncadd [#allocation10], 4294967168 }
 0xbc6   :  { %4680 = vsyncpa [#allocation3], 1 }
 0xbc7   :  { %4681 = vsyncpa [#allocation6], 1 }
 0xbc8   :  { %4682 = vsyncpa [#allocation4], 1 }
 0xbc9   :  { %4683 = vsyncpa [#allocation10], 1 }

</bundles_post_ra>
